<compile_context>
chip_gen: v6e
topology: v6e:2x2x1
jax: 0.10.0
libtpu: 0.0.40
codegen_flags: <defaults>
</compile_context>

<pallas_src>
import functools
import math

import jax
import jax.numpy as jnp
from jax.experimental import pallas as pl
from jax.experimental.pallas import tpu as pltpu

PAD_ID = 0
VOCAB_SIZE = 21  # 20 amino acids + pad token
NEG_INF = -1e9


def _round_up(x, m):
  return ((x + m - 1) // m) * m


def sidechain_transformer_kernel(
    x_ref, mask_ref,
    w_ff1_ref, b_ff1_ref,
    g1_ref, be1_ref,
    wqkv_ref, bqkv_ref,
    wo_ref, bo_ref,
    g2_ref, be2_ref,
    wl1_ref, bl1_ref, wl2_ref, bl2_ref,
    w_ff2_ref, b_ff2_ref,
    o_ref, ctx_ref,
    *, n_heads, seqs_per_block, seq_len, d_in):
  """ff1 -> pre-norm encoder layer -> ff2 -> tanh for `seqs_per_block` sequences."""
  eps = 1e-5
  L = seq_len
  TB = seqs_per_block
  H = n_heads
  hd = d_in // H
  f32 = jnp.float32
  bf16 = jnp.bfloat16
  inv_d = 1.0 / d_in

  def layer_norm(t, g, b):
    # Statistics over the TRUE d_in lanes only.  Padded lanes are guaranteed
    # zero everywhere in the residual stream, so plain lane-sums divided by the
    # true d_in are exact (E[x^2] - mu^2 form).  g/b are zero on padded lanes,
    # so the normalized output stays zero there as well.
    mu = jnp.sum(t, axis=-1, keepdims=True) * inv_d
    ex2 = jnp.sum(t * t, axis=-1, keepdims=True) * inv_d
    var = ex2 - mu * mu
    return (t - mu) * jax.lax.rsqrt(var + eps) * g + b

  x = x_ref[...]                                    # [TB*L, d_model_pad] bf16

  # ---- ff1 (one big MXU matmul, f32 accumulation) ----
  h = jnp.dot(x, w_ff1_ref[...], preferred_element_type=f32) + b_ff1_ref[...]

  # ---- self-attention block (norm_first=True) ----
  hn = layer_norm(h, g1_ref[...], be1_ref[...])
  # Fused Q/K/V projection; 1/sqrt(head_dim) scale pre-folded into Wq / bq.
  qkv = jnp.dot(hn.astype(bf16), wqkv_ref[...],
                preferred_element_type=f32) + bqkv_ref[...]
  qkv_b = qkv.astype(bf16)                          # single cast for MXU operands

  mask = mask_ref[...]                              # [TB, 1, L]; 0 or -1e9 per key

  # TODO(synk): for long production L, stream key blocks with an online softmax
  # (flash-style) instead of materializing [TB, L, L] score tiles per head.
  for hh in range(H):                               # short static loop over heads
    qs = hh * hd
    ks = d_in + hh * hd
    vs = 2 * d_in + hh * hd
    # [TB*L, hd] -> [TB, L, hd] is a free major-dim split (L is a sublane multiple)
    qh = qkv_b[:, qs:qs + hd].reshape(TB, L, hd)
    kh = qkv_b[:, ks:ks + hd].reshape(TB, L, hd)
    vh = qkv_b[:, vs:vs + hd].reshape(TB, L, hd)

    # all TB sequences batched in one MXU call per head
    s = jnp.einsum('bqd,bkd->bqk', qh, kh, preferred_element_type=f32)  # [TB,L,L]
    s = s + mask                                    # implicit [TB,1,L] broadcast
    m = jnp.max(s, axis=-1, keepdims=True)
    p = jnp.exp(s - m)
    p = p * pl.reciprocal(jnp.sum(p, axis=-1, keepdims=True), approx=True)
    ctx_h = jnp.einsum('bqk,bkd->bqd', p.astype(bf16), vh,
                       preferred_element_type=f32)  # [TB, L, hd]
    # write straight into the VMEM scratch accumulator (no concatenates)
    ctx_ref[:, qs:qs + hd] = ctx_h.reshape(TB * L, hd).astype(bf16)

  # single full-width (K = d_in) output projection over all heads & sequences
  attn = jnp.dot(ctx_ref[...], wo_ref[...], preferred_element_type=f32) + bo_ref[...]
  h = h + attn

  # ---- feed-forward block (norm_first=True) ----
  hn2 = layer_norm(h, g2_ref[...], be2_ref[...])
  ff = jnp.dot(hn2.astype(bf16), wl1_ref[...], preferred_element_type=f32) + bl1_ref[...]
  ff = jnp.maximum(ff, 0.0)  # relu
  ff = jnp.dot(ff.astype(bf16), wl2_ref[...], preferred_element_type=f32) + bl2_ref[...]
  h = h + ff

  # ---- ff2 + tanh (output lanes padded to 128 => unmasked stores) ----
  out = jnp.tanh(
      jnp.dot(h.astype(bf16), w_ff2_ref[...], preferred_element_type=f32)
      + b_ff2_ref[...])
  o_ref[...] = out


def sidechain_transformer_forward(x, seq, params, n_heads, seqs_per_block=None):
  B, L0, _ = x.shape

  # ---- plain-JAX glue: embedding gather, concat, padding, key-padding mask ----
  emb = jnp.take(params["emb"], seq, axis=0)                      # [B, L0, d_seq_emb]
  xcat = jnp.concatenate([x, emb], axis=-1).astype(jnp.float32)   # [B, L0, d_model]
  d_model = xcat.shape[-1]

  # Sequence-length padding: 8 for tiny sequences, 128 for production lengths
  # (the [L, L] score matmuls have N = L on the lane axis).  Padded positions
  # behave like PAD keys (masked out).
  l_mult = 8 if L0 <= 64 else 128
  L = _round_up(max(L0, 8), l_mult)
  if L > L0:
    xcat = jnp.pad(xcat, ((0, 0), (0, L - L0), (0, 0)))
    seq = jnp.pad(seq, ((0, 0), (0, L - L0)), constant_values=PAD_ID)

  d_in = params["w_ff1"].shape[1]
  d_ff = params["wl1"].shape[1]
  d_out = params["w_ff2"].shape[1]
  d_model_pad = _round_up(d_model, 128)
  d_in_pad = _round_up(d_in, 128)
  d_ff_pad = _round_up(d_ff, 128)
  d_out_pad = _round_up(d_out, 128)
  hd = d_in // n_heads
  scale = 1.0 / math.sqrt(hd)

  # ---- sequences-per-block: target ~512 rows/step, keep the grid >= 2 steps ----
  if seqs_per_block is None:
    TB = max(1, min(B, 512 // L))
    # bound the per-head [TB, L, L] score tile (VMEM headroom, esp. v7x 64 MiB)
    while TB > 1 and TB * L * L * 4 > 4 * 1024 * 1024:
      TB //= 2
    # at least two grid steps so both TensorCores (v7x) / megacore get work
    if B >= 2 and -(-B // TB) < 2:
      TB = max(1, (B + 1) // 2)
  else:
    TB = seqs_per_block
  B_pad = _round_up(B, TB)
  if B_pad > B:                                   # pad batch instead of B % TB == 0
    xcat = jnp.pad(xcat, ((0, B_pad - B), (0, 0), (0, 0)))
    seq = jnp.pad(seq, ((0, B_pad - B), (0, 0)), constant_values=PAD_ID)
  grid = (B_pad // TB,)

  mask = jnp.where(seq == PAD_ID, NEG_INF, 0.0).astype(jnp.float32)[:, None, :]  # [B_pad,1,L]

  # lane-pad d_model; activations go to bf16 for the MXU
  if d_model_pad > d_model:
    xcat = jnp.pad(xcat, ((0, 0), (0, 0), (0, d_model_pad - d_model)))
  x_flat = xcat.reshape(B_pad * L, d_model_pad).astype(jnp.bfloat16)

  # ---- fused / lane-padded weights (built once, outside the kernel) ----
  bf16 = jnp.bfloat16

  def pad2(w, rows, cols):
    return jnp.pad(w, ((0, rows - w.shape[0]), (0, cols - w.shape[1])))

  w_ff1 = pad2(params["w_ff1"], d_model_pad, d_in_pad).astype(bf16)
  b_ff1 = pad2(params["b_ff1"], 1, d_in_pad)
  g1 = pad2(params["g1"], 1, d_in_pad)
  be1 = pad2(params["be1"], 1, d_in_pad)
  w_qkv = jnp.concatenate(
      [params["wq"] * scale, params["wk"], params["wv"]], axis=1)   # [d_in, 3*d_in]
  w_qkv = jnp.pad(w_qkv, ((0, d_in_pad - d_in), (0, 0))).astype(bf16)
  b_qkv = jnp.concatenate(
      [params["bq"] * scale, params["bk"], params["bv"]], axis=1)   # [1, 3*d_in]
  wo = jnp.pad(params["wo"], ((0, 0), (0, d_in_pad - d_in))).astype(bf16)
  bo = pad2(params["bo"], 1, d_in_pad)
  g2 = pad2(params["g2"], 1, d_in_pad)
  be2 = pad2(params["be2"], 1, d_in_pad)
  wl1 = pad2(params["wl1"], d_in_pad, d_ff_pad).astype(bf16)
  bl1 = pad2(params["bl1"], 1, d_ff_pad)
  wl2 = pad2(params["wl2"], d_ff_pad, d_in_pad).astype(bf16)
  bl2 = pad2(params["bl2"], 1, d_in_pad)
  w_ff2 = pad2(params["w_ff2"], d_in_pad, d_out_pad).astype(bf16)
  b_ff2 = pad2(params["b_ff2"], 1, d_out_pad)

  weight_args = [
      w_ff1, b_ff1, g1, be1,
      w_qkv, b_qkv, wo, bo,
      g2, be2,
      wl1, bl1, wl2, bl2,
      w_ff2, b_ff2,
  ]

  # ---- VMEM budget: real per-step footprint with headroom, capped < 64 MiB (v7x) ----
  rows = TB * L
  weight_bytes = sum(int(w.size) * w.dtype.itemsize for w in weight_args)
  io_bytes = 2 * rows * (2 * d_model_pad + 4 * d_out_pad) + 2 * TB * L * 4
  inter_bytes = rows * 4 * (4 * d_in_pad + 3 * d_in + d_ff_pad) + 2 * TB * L * L * 4
  vmem_limit = int(min(48 * 1024 * 1024,
                       max(16 * 1024 * 1024,
                           2 * (weight_bytes + io_bytes + inter_bytes))))

  kernel = functools.partial(sidechain_transformer_kernel,
                             n_heads=n_heads, seqs_per_block=TB,
                             seq_len=L, d_in=d_in)

  def make_call(buffer_weights):
    spec_kwargs = dict(pipeline_mode=pl.Buffered(1)) if buffer_weights else {}

    def wspec(shape):
      n = len(shape)
      return pl.BlockSpec(shape, lambda i, _n=n: (0,) * _n, **spec_kwargs)

    in_specs = [
        pl.BlockSpec((TB * L, d_model_pad), lambda i: (i, 0)),
        pl.BlockSpec((TB, 1, L), lambda i: (i, 0, 0)),
    ] + [wspec(w.shape) for w in weight_args]

    return pl.pallas_call(
        kernel,
        out_shape=jax.ShapeDtypeStruct((B_pad * L, d_out_pad), jnp.float32),
        grid_spec=pltpu.PrefetchScalarGridSpec(
            num_scalar_prefetch=0,
            grid=grid,
            in_specs=in_specs,
            out_specs=pl.BlockSpec((TB * L, d_out_pad), lambda i: (i, 0)),
            scratch_shapes=[pltpu.VMEM((TB * L, d_in), jnp.bfloat16)],
        ),
        compiler_params=pltpu.CompilerParams(
            dimension_semantics=("parallel",),
            vmem_limit_bytes=vmem_limit,
        ),
    )

  try:
    # single-buffered resident weights (constant index maps) — frees VMEM for TB
    out_flat = jax.block_until_ready(
        make_call(buffer_weights=True)(x_flat, mask, *weight_args))
  except Exception:
    # fallback if pipeline_mode=pl.Buffered(1) is unsupported on this jax/backend
    out_flat = make_call(buffer_weights=False)(x_flat, mask, *weight_args)

  return out_flat.reshape(B_pad, L, d_out_pad)[:B, :L0, :d_out]


def init_params(key, d_nonseq, d_seq_emb, d_in, d_ff, d_out, vocab_size):
  d_model = d_nonseq + d_seq_emb
  ks = jax.random.split(key, 12)

  def w(k, shape):
    fan_in = shape[0]
    return jax.random.normal(k, shape, jnp.float32) * (1.0 / (fan_in ** 0.5))

  emb = jax.random.normal(ks[0], (vocab_size, d_seq_emb), jnp.float32) * 0.1
  emb = emb.at[PAD_ID].set(0.0)  # padding_idx=pad_id -> zero embedding row

  params = dict(
      emb=emb,
      # ff1
      w_ff1=w(ks[1], (d_model, d_in)),
      b_ff1=jnp.zeros((1, d_in), jnp.float32),
      # norm1
      g1=jnp.ones((1, d_in), jnp.float32),
      be1=jnp.zeros((1, d_in), jnp.float32),
      # multi-head attention (in_proj split into q/k/v; weights as [in, out])
      wq=w(ks[2], (d_in, d_in)), bq=jnp.zeros((1, d_in), jnp.float32),
      wk=w(ks[3], (d_in, d_in)), bk=jnp.zeros((1, d_in), jnp.float32),
      wv=w(ks[4], (d_in, d_in)), bv=jnp.zeros((1, d_in), jnp.float32),
      wo=w(ks[5], (d_in, d_in)), bo=jnp.zeros((1, d_in), jnp.float32),
      # norm2
      g2=jnp.ones((1, d_in), jnp.float32),
      be2=jnp.zeros((1, d_in), jnp.float32),
      # FFN
      wl1=w(ks[6], (d_in, d_ff)), bl1=jnp.zeros((1, d_ff), jnp.float32),
      wl2=w(ks[7], (d_ff, d_in)), bl2=jnp.zeros((1, d_in), jnp.float32),
      # ff2 (angle_means=None -> plain deterministic init)
      w_ff2=w(ks[8], (d_in, d_out)),
      b_ff2=jnp.zeros((1, d_out), jnp.float32),
  )
  return params


if __name__ == "__main__":
  key = jax.random.PRNGKey(0)
  B, L = 2, 8
  d_nonseq, d_seq_emb = 8, 8      # small stand-ins for d_nonseq_data=35, d_seq_embedding=20
  d_in, d_ff, d_out = 32, 64, 6
  n_heads = 4
  while d_in % n_heads != 0:      # same head-adjustment logic as the module
    n_heads -= 1

  k_x, k_seq, k_p = jax.random.split(key, 3)
  x = jax.random.normal(k_x, (B, L, d_nonseq), jnp.float32)
  seq = jax.random.randint(k_seq, (B, L), 1, VOCAB_SIZE).astype(jnp.int32)
  seq = seq.at[:, -2:].set(PAD_ID)  # a couple of padded positions per sequence

  params = init_params(k_p, d_nonseq, d_seq_emb, d_in, d_ff, d_out, VOCAB_SIZE)

  out = sidechain_transformer_forward(x, seq, params, n_heads)
  jax.block_until_ready(out)
  assert out.shape == (B, L, d_out)
  assert bool(jnp.all(jnp.isfinite(out)))
  print("KERNEL_OK")
</pallas_src>

<mosaic_0001>
module attributes {stable_mosaic.version = 11 : i64} {
  func.func @sidechain_transformer_kernel(%arg0: i32, %arg1: memref<8x128xbf16, #tpu.memory_space<vmem>>, %arg2: memref<1x1x8xf32, #tpu.memory_space<vmem>>, %arg3: memref<128x128xbf16, #tpu.memory_space<vmem>>, %arg4: memref<1x128xf32, #tpu.memory_space<vmem>>, %arg5: memref<1x128xf32, #tpu.memory_space<vmem>>, %arg6: memref<1x128xf32, #tpu.memory_space<vmem>>, %arg7: memref<128x96xbf16, #tpu.memory_space<vmem>>, %arg8: memref<1x96xf32, #tpu.memory_space<vmem>>, %arg9: memref<32x128xbf16, #tpu.memory_space<vmem>>, %arg10: memref<1x128xf32, #tpu.memory_space<vmem>>, %arg11: memref<1x128xf32, #tpu.memory_space<vmem>>, %arg12: memref<1x128xf32, #tpu.memory_space<vmem>>, %arg13: memref<128x128xbf16, #tpu.memory_space<vmem>>, %arg14: memref<1x128xf32, #tpu.memory_space<vmem>>, %arg15: memref<128x128xbf16, #tpu.memory_space<vmem>>, %arg16: memref<1x128xf32, #tpu.memory_space<vmem>>, %arg17: memref<128x128xbf16, #tpu.memory_space<vmem>>, %arg18: memref<1x128xf32, #tpu.memory_space<vmem>>, %arg19: memref<8x128xf32, #tpu.memory_space<vmem>>, %arg20: memref<8x32xbf16, #tpu.memory_space<vmem>>) attributes {dimension_semantics = [#tpu.dimension_semantics<parallel>], iteration_bounds = array<i64: 2>, scalar_prefetch = 0 : i64, scratch_operands = 1 : i64, tpu.core_type = #tpu.core_type<tc>, window_params = [{transform_indices = @transform_0, window_bounds = array<i64: 8, 128>}, {transform_indices = @transform_1, window_bounds = array<i64: 1, 1, 8>}, {pipeline_mode = #tpu.pipeline_mode<synchronous>, transform_indices = @transform_2, window_bounds = array<i64: 128, 128>}, {pipeline_mode = #tpu.pipeline_mode<synchronous>, transform_indices = @transform_3, window_bounds = array<i64: 1, 128>}, {pipeline_mode = #tpu.pipeline_mode<synchronous>, transform_indices = @transform_4, window_bounds = array<i64: 1, 128>}, {pipeline_mode = #tpu.pipeline_mode<synchronous>, transform_indices = @transform_5, window_bounds = array<i64: 1, 128>}, {pipeline_mode = #tpu.pipeline_mode<synchronous>, transform_indices = @transform_6, window_bounds = array<i64: 128, 96>}, {pipeline_mode = #tpu.pipeline_mode<synchronous>, transform_indices = @transform_7, window_bounds = array<i64: 1, 96>}, {pipeline_mode = #tpu.pipeline_mode<synchronous>, transform_indices = @transform_8, window_bounds = array<i64: 32, 128>}, {pipeline_mode = #tpu.pipeline_mode<synchronous>, transform_indices = @transform_9, window_bounds = array<i64: 1, 128>}, {pipeline_mode = #tpu.pipeline_mode<synchronous>, transform_indices = @transform_10, window_bounds = array<i64: 1, 128>}, {pipeline_mode = #tpu.pipeline_mode<synchronous>, transform_indices = @transform_11, window_bounds = array<i64: 1, 128>}, {pipeline_mode = #tpu.pipeline_mode<synchronous>, transform_indices = @transform_12, window_bounds = array<i64: 128, 128>}, {pipeline_mode = #tpu.pipeline_mode<synchronous>, transform_indices = @transform_13, window_bounds = array<i64: 1, 128>}, {pipeline_mode = #tpu.pipeline_mode<synchronous>, transform_indices = @transform_14, window_bounds = array<i64: 128, 128>}, {pipeline_mode = #tpu.pipeline_mode<synchronous>, transform_indices = @transform_15, window_bounds = array<i64: 1, 128>}, {pipeline_mode = #tpu.pipeline_mode<synchronous>, transform_indices = @transform_16, window_bounds = array<i64: 128, 128>}, {pipeline_mode = #tpu.pipeline_mode<synchronous>, transform_indices = @transform_17, window_bounds = array<i64: 1, 128>}, {transform_indices = @transform_18, window_bounds = array<i64: 8, 128>}]} {
    %c0 = arith.constant 0 : index
    %c0_0 = arith.constant 0 : index
    %0 = vector.load %arg1[%c0, %c0_0] : memref<8x128xbf16, #tpu.memory_space<vmem>>, vector<8x128xbf16>
    %c0_1 = arith.constant 0 : index
    %c0_2 = arith.constant 0 : index
    %1 = vector.load %arg3[%c0_1, %c0_2] : memref<128x128xbf16, #tpu.memory_space<vmem>>, vector<128x128xbf16>
    %cst = arith.constant dense<0.000000e+00> : vector<8x128xf32>
    %2 = tpu.matmul %0, %1, %cst {dimension_numbers = #tpu.dot_dimension_numbers<[1], [0], [0], [1], [0, 0, 1, 1], [], []>} : vector<8x128xbf16>, vector<128x128xbf16>, vector<8x128xf32> -> vector<8x128xf32>
    %c0_3 = arith.constant 0 : index
    %c0_4 = arith.constant 0 : index
    %3 = vector.load %arg4[%c0_3, %c0_4] : memref<1x128xf32, #tpu.memory_space<vmem>>, vector<1x128xf32>
    %4 = vector.broadcast %3 : vector<1x128xf32> to vector<8x128xf32>
    %5 = arith.addf %2, %4 : vector<8x128xf32>
    %c0_5 = arith.constant 0 : index
    %c0_6 = arith.constant 0 : index
    %6 = vector.load %arg5[%c0_5, %c0_6] : memref<1x128xf32, #tpu.memory_space<vmem>>, vector<1x128xf32>
    %c0_7 = arith.constant 0 : index
    %c0_8 = arith.constant 0 : index
    %7 = vector.load %arg6[%c0_7, %c0_8] : memref<1x128xf32, #tpu.memory_space<vmem>>, vector<1x128xf32>
    %cst_9 = arith.constant dense<0.000000e+00> : vector<8xf32>
    %8 = vector.multi_reduction <add>, %5, %cst_9 [1] : vector<8x128xf32> to vector<8xf32>
    %9 = vector.shape_cast %8 : vector<8xf32> to vector<8x1xf32>
    %cst_10 = arith.constant 3.125000e-02 : f32
    %10 = vector.broadcast %cst_10 : f32 to vector<8x1xf32>
    %11 = arith.mulf %9, %10 : vector<8x1xf32>
    %12 = arith.mulf %5, %5 : vector<8x128xf32>
    %cst_11 = arith.constant dense<0.000000e+00> : vector<8xf32>
    %13 = vector.multi_reduction <add>, %12, %cst_11 [1] : vector<8x128xf32> to vector<8xf32>
    %14 = vector.shape_cast %13 : vector<8xf32> to vector<8x1xf32>
    %cst_12 = arith.constant 3.125000e-02 : f32
    %15 = vector.broadcast %cst_12 : f32 to vector<8x1xf32>
    %16 = arith.mulf %14, %15 : vector<8x1xf32>
    %17 = arith.mulf %11, %11 : vector<8x1xf32>
    %18 = arith.subf %16, %17 : vector<8x1xf32>
    %19 = vector.broadcast %11 : vector<8x1xf32> to vector<8x128xf32>
    %20 = arith.subf %5, %19 : vector<8x128xf32>
    %cst_13 = arith.constant 9.99999974E-6 : f32
    %21 = vector.broadcast %cst_13 : f32 to vector<8x1xf32>
    %22 = arith.addf %18, %21 : vector<8x1xf32>
    %23 = math.rsqrt %22 : vector<8x1xf32>
    %24 = vector.broadcast %23 : vector<8x1xf32> to vector<8x128xf32>
    %25 = arith.mulf %20, %24 : vector<8x128xf32>
    %26 = vector.broadcast %6 : vector<1x128xf32> to vector<8x128xf32>
    %27 = arith.mulf %25, %26 : vector<8x128xf32>
    %28 = vector.broadcast %7 : vector<1x128xf32> to vector<8x128xf32>
    %29 = arith.addf %27, %28 : vector<8x128xf32>
    %30 = arith.truncf %29 : vector<8x128xf32> to vector<8x128xbf16>
    %c0_14 = arith.constant 0 : index
    %c0_15 = arith.constant 0 : index
    %31 = vector.load %arg7[%c0_14, %c0_15] : memref<128x96xbf16, #tpu.memory_space<vmem>>, vector<128x96xbf16>
    %cst_16 = arith.constant dense<0.000000e+00> : vector<8x96xf32>
    %32 = tpu.matmul %30, %31, %cst_16 {dimension_numbers = #tpu.dot_dimension_numbers<[1], [0], [0], [1], [0, 0, 1, 1], [], []>} : vector<8x128xbf16>, vector<128x96xbf16>, vector<8x96xf32> -> vector<8x96xf32>
    %c0_17 = arith.constant 0 : index
    %c0_18 = arith.constant 0 : index
    %33 = vector.load %arg8[%c0_17, %c0_18] : memref<1x96xf32, #tpu.memory_space<vmem>>, vector<1x96xf32>
    %34 = vector.broadcast %33 : vector<1x96xf32> to vector<8x96xf32>
    %35 = arith.addf %32, %34 : vector<8x96xf32>
    %36 = arith.truncf %35 : vector<8x96xf32> to vector<8x96xbf16>
    %c0_19 = arith.constant 0 : index
    %c0_20 = arith.constant 0 : index
    %c0_21 = arith.constant 0 : index
    %37 = vector.load %arg2[%c0_19, %c0_20, %c0_21] : memref<1x1x8xf32, #tpu.memory_space<vmem>>, vector<1x1x8xf32>
    %38 = vector.extract_strided_slice %36 {offsets = [0, 0], sizes = [8, 8], strides = [1, 1]} : vector<8x96xbf16> to vector<8x8xbf16>
    %39 = vector.shape_cast %38 : vector<8x8xbf16> to vector<1x8x8xbf16>
    %40 = vector.extract_strided_slice %36 {offsets = [0, 32], sizes = [8, 8], strides = [1, 1]} : vector<8x96xbf16> to vector<8x8xbf16>
    %41 = vector.shape_cast %40 : vector<8x8xbf16> to vector<1x8x8xbf16>
    %42 = vector.extract_strided_slice %36 {offsets = [0, 64], sizes = [8, 8], strides = [1, 1]} : vector<8x96xbf16> to vector<8x8xbf16>
    %43 = vector.shape_cast %42 : vector<8x8xbf16> to vector<1x8x8xbf16>
    "tpu.trace_start"() <{level = 10 : i32, message = "bqd,bkd->bqk"}> : () -> ()
    %cst_22 = arith.constant dense<0.000000e+00> : vector<1x8x8xf32>
    %44 = tpu.matmul %39, %41, %cst_22 {dimension_numbers = #tpu.dot_dimension_numbers<[2], [2], [1], [1], [0, 0, 0, 1, 1, 1], [0], [0]>} : vector<1x8x8xbf16>, vector<1x8x8xbf16>, vector<1x8x8xf32> -> vector<1x8x8xf32>
    "tpu.trace_stop"() : () -> ()
    %45 = vector.broadcast %37 : vector<1x1x8xf32> to vector<1x8x8xf32>
    %46 = arith.addf %44, %45 : vector<1x8x8xf32>
    %cst_23 = arith.constant dense<0xFF800000> : vector<1x8xf32>
    %47 = vector.multi_reduction <maximumf>, %46, %cst_23 [2] : vector<1x8x8xf32> to vector<1x8xf32>
    %48 = vector.shape_cast %47 : vector<1x8xf32> to vector<1x8x1xf32>
    %49 = vector.broadcast %48 : vector<1x8x1xf32> to vector<1x8x8xf32>
    %50 = arith.subf %46, %49 : vector<1x8x8xf32>
    %51 = math.exp %50 : vector<1x8x8xf32>
    %cst_24 = arith.constant dense<0.000000e+00> : vector<1x8xf32>
    %52 = vector.multi_reduction <add>, %51, %cst_24 [2] : vector<1x8x8xf32> to vector<1x8xf32>
    %53 = vector.shape_cast %52 : vector<1x8xf32> to vector<1x8x1xf32>
    %54 = tpu.reciprocal %53 {approx = true} : vector<1x8x1xf32> -> vector<1x8x1xf32>
    %55 = vector.broadcast %54 : vector<1x8x1xf32> to vector<1x8x8xf32>
    %56 = arith.mulf %51, %55 : vector<1x8x8xf32>
    %57 = arith.truncf %56 : vector<1x8x8xf32> to vector<1x8x8xbf16>
    "tpu.trace_start"() <{level = 10 : i32, message = "bqk,bkd->bqd"}> : () -> ()
    %cst_25 = arith.constant dense<0.000000e+00> : vector<1x8x8xf32>
    %58 = tpu.matmul %57, %43, %cst_25 {dimension_numbers = #tpu.dot_dimension_numbers<[2], [1], [1], [2], [0, 0, 0, 1, 1, 2], [0], [0]>} : vector<1x8x8xbf16>, vector<1x8x8xbf16>, vector<1x8x8xf32> -> vector<1x8x8xf32>
    "tpu.trace_stop"() : () -> ()
    %59 = vector.shape_cast %58 : vector<1x8x8xf32> to vector<8x8xf32>
    %60 = arith.truncf %59 : vector<8x8xf32> to vector<8x8xbf16>
    %c0_26 = arith.constant 0 : index
    %c0_27 = arith.constant 0 : index
    %61 = vector.load %arg20[%c0_26, %c0_27] : memref<8x32xbf16, #tpu.memory_space<vmem>>, vector<8x8xbf16>
    tpu.vector_store %arg20[%c0_26, %c0_27], %60 {strides = array<i32>} : memref<8x32xbf16, #tpu.memory_space<vmem>>, vector<8x8xbf16>,
    %62 = vector.extract_strided_slice %36 {offsets = [0, 8], sizes = [8, 8], strides = [1, 1]} : vector<8x96xbf16> to vector<8x8xbf16>
    %63 = vector.shape_cast %62 : vector<8x8xbf16> to vector<1x8x8xbf16>
    %64 = vector.extract_strided_slice %36 {offsets = [0, 40], sizes = [8, 8], strides = [1, 1]} : vector<8x96xbf16> to vector<8x8xbf16>
    %65 = vector.shape_cast %64 : vector<8x8xbf16> to vector<1x8x8xbf16>
    %66 = vector.extract_strided_slice %36 {offsets = [0, 72], sizes = [8, 8], strides = [1, 1]} : vector<8x96xbf16> to vector<8x8xbf16>
    %67 = vector.shape_cast %66 : vector<8x8xbf16> to vector<1x8x8xbf16>
    "tpu.trace_start"() <{level = 10 : i32, message = "bqd,bkd->bqk"}> : () -> ()
    %cst_28 = arith.constant dense<0.000000e+00> : vector<1x8x8xf32>
    %68 = tpu.matmul %63, %65, %cst_28 {dimension_numbers = #tpu.dot_dimension_numbers<[2], [2], [1], [1], [0, 0, 0, 1, 1, 1], [0], [0]>} : vector<1x8x8xbf16>, vector<1x8x8xbf16>, vector<1x8x8xf32> -> vector<1x8x8xf32>
    "tpu.trace_stop"() : () -> ()
    %69 = vector.broadcast %37 : vector<1x1x8xf32> to vector<1x8x8xf32>
    %70 = arith.addf %68, %69 : vector<1x8x8xf32>
    %cst_29 = arith.constant dense<0xFF800000> : vector<1x8xf32>
    %71 = vector.multi_reduction <maximumf>, %70, %cst_29 [2] : vector<1x8x8xf32> to vector<1x8xf32>
    %72 = vector.shape_cast %71 : vector<1x8xf32> to vector<1x8x1xf32>
    %73 = vector.broadcast %72 : vector<1x8x1xf32> to vector<1x8x8xf32>
    %74 = arith.subf %70, %73 : vector<1x8x8xf32>
    %75 = math.exp %74 : vector<1x8x8xf32>
    %cst_30 = arith.constant dense<0.000000e+00> : vector<1x8xf32>
    %76 = vector.multi_reduction <add>, %75, %cst_30 [2] : vector<1x8x8xf32> to vector<1x8xf32>
    %77 = vector.shape_cast %76 : vector<1x8xf32> to vector<1x8x1xf32>
    %78 = tpu.reciprocal %77 {approx = true} : vector<1x8x1xf32> -> vector<1x8x1xf32>
    %79 = vector.broadcast %78 : vector<1x8x1xf32> to vector<1x8x8xf32>
    %80 = arith.mulf %75, %79 : vector<1x8x8xf32>
    %81 = arith.truncf %80 : vector<1x8x8xf32> to vector<1x8x8xbf16>
    "tpu.trace_start"() <{level = 10 : i32, message = "bqk,bkd->bqd"}> : () -> ()
    %cst_31 = arith.constant dense<0.000000e+00> : vector<1x8x8xf32>
    %82 = tpu.matmul %81, %67, %cst_31 {dimension_numbers = #tpu.dot_dimension_numbers<[2], [1], [1], [2], [0, 0, 0, 1, 1, 2], [0], [0]>} : vector<1x8x8xbf16>, vector<1x8x8xbf16>, vector<1x8x8xf32> -> vector<1x8x8xf32>
    "tpu.trace_stop"() : () -> ()
    %83 = vector.shape_cast %82 : vector<1x8x8xf32> to vector<8x8xf32>
    %84 = arith.truncf %83 : vector<8x8xf32> to vector<8x8xbf16>
    %c0_32 = arith.constant 0 : index
    %c8 = arith.constant 8 : index
    %85 = vector.load %arg20[%c0_32, %c8] : memref<8x32xbf16, #tpu.memory_space<vmem>>, vector<8x8xbf16>
    tpu.vector_store %arg20[%c0_32, %c8], %84 {strides = array<i32>} : memref<8x32xbf16, #tpu.memory_space<vmem>>, vector<8x8xbf16>,
    %86 = vector.extract_strided_slice %36 {offsets = [0, 16], sizes = [8, 8], strides = [1, 1]} : vector<8x96xbf16> to vector<8x8xbf16>
    %87 = vector.shape_cast %86 : vector<8x8xbf16> to vector<1x8x8xbf16>
    %88 = vector.extract_strided_slice %36 {offsets = [0, 48], sizes = [8, 8], strides = [1, 1]} : vector<8x96xbf16> to vector<8x8xbf16>
    %89 = vector.shape_cast %88 : vector<8x8xbf16> to vector<1x8x8xbf16>
    %90 = vector.extract_strided_slice %36 {offsets = [0, 80], sizes = [8, 8], strides = [1, 1]} : vector<8x96xbf16> to vector<8x8xbf16>
    %91 = vector.shape_cast %90 : vector<8x8xbf16> to vector<1x8x8xbf16>
    "tpu.trace_start"() <{level = 10 : i32, message = "bqd,bkd->bqk"}> : () -> ()
    %cst_33 = arith.constant dense<0.000000e+00> : vector<1x8x8xf32>
    %92 = tpu.matmul %87, %89, %cst_33 {dimension_numbers = #tpu.dot_dimension_numbers<[2], [2], [1], [1], [0, 0, 0, 1, 1, 1], [0], [0]>} : vector<1x8x8xbf16>, vector<1x8x8xbf16>, vector<1x8x8xf32> -> vector<1x8x8xf32>
    "tpu.trace_stop"() : () -> ()
    %93 = vector.broadcast %37 : vector<1x1x8xf32> to vector<1x8x8xf32>
    %94 = arith.addf %92, %93 : vector<1x8x8xf32>
    %cst_34 = arith.constant dense<0xFF800000> : vector<1x8xf32>
    %95 = vector.multi_reduction <maximumf>, %94, %cst_34 [2] : vector<1x8x8xf32> to vector<1x8xf32>
    %96 = vector.shape_cast %95 : vector<1x8xf32> to vector<1x8x1xf32>
    %97 = vector.broadcast %96 : vector<1x8x1xf32> to vector<1x8x8xf32>
    %98 = arith.subf %94, %97 : vector<1x8x8xf32>
    %99 = math.exp %98 : vector<1x8x8xf32>
    %cst_35 = arith.constant dense<0.000000e+00> : vector<1x8xf32>
    %100 = vector.multi_reduction <add>, %99, %cst_35 [2] : vector<1x8x8xf32> to vector<1x8xf32>
    %101 = vector.shape_cast %100 : vector<1x8xf32> to vector<1x8x1xf32>
    %102 = tpu.reciprocal %101 {approx = true} : vector<1x8x1xf32> -> vector<1x8x1xf32>
    %103 = vector.broadcast %102 : vector<1x8x1xf32> to vector<1x8x8xf32>
    %104 = arith.mulf %99, %103 : vector<1x8x8xf32>
    %105 = arith.truncf %104 : vector<1x8x8xf32> to vector<1x8x8xbf16>
    "tpu.trace_start"() <{level = 10 : i32, message = "bqk,bkd->bqd"}> : () -> ()
    %cst_36 = arith.constant dense<0.000000e+00> : vector<1x8x8xf32>
    %106 = tpu.matmul %105, %91, %cst_36 {dimension_numbers = #tpu.dot_dimension_numbers<[2], [1], [1], [2], [0, 0, 0, 1, 1, 2], [0], [0]>} : vector<1x8x8xbf16>, vector<1x8x8xbf16>, vector<1x8x8xf32> -> vector<1x8x8xf32>
    "tpu.trace_stop"() : () -> ()
    %107 = vector.shape_cast %106 : vector<1x8x8xf32> to vector<8x8xf32>
    %108 = arith.truncf %107 : vector<8x8xf32> to vector<8x8xbf16>
    %c0_37 = arith.constant 0 : index
    %c16 = arith.constant 16 : index
    %109 = vector.load %arg20[%c0_37, %c16] : memref<8x32xbf16, #tpu.memory_space<vmem>>, vector<8x8xbf16>
    tpu.vector_store %arg20[%c0_37, %c16], %108 {strides = array<i32>} : memref<8x32xbf16, #tpu.memory_space<vmem>>, vector<8x8xbf16>,
    %110 = vector.extract_strided_slice %36 {offsets = [0, 24], sizes = [8, 8], strides = [1, 1]} : vector<8x96xbf16> to vector<8x8xbf16>
    %111 = vector.shape_cast %110 : vector<8x8xbf16> to vector<1x8x8xbf16>
    %112 = vector.extract_strided_slice %36 {offsets = [0, 56], sizes = [8, 8], strides = [1, 1]} : vector<8x96xbf16> to vector<8x8xbf16>
    %113 = vector.shape_cast %112 : vector<8x8xbf16> to vector<1x8x8xbf16>
    %114 = vector.extract_strided_slice %36 {offsets = [0, 88], sizes = [8, 8], strides = [1, 1]} : vector<8x96xbf16> to vector<8x8xbf16>
    %115 = vector.shape_cast %114 : vector<8x8xbf16> to vector<1x8x8xbf16>
    "tpu.trace_start"() <{level = 10 : i32, message = "bqd,bkd->bqk"}> : () -> ()
    %cst_38 = arith.constant dense<0.000000e+00> : vector<1x8x8xf32>
    %116 = tpu.matmul %111, %113, %cst_38 {dimension_numbers = #tpu.dot_dimension_numbers<[2], [2], [1], [1], [0, 0, 0, 1, 1, 1], [0], [0]>} : vector<1x8x8xbf16>, vector<1x8x8xbf16>, vector<1x8x8xf32> -> vector<1x8x8xf32>
    "tpu.trace_stop"() : () -> ()
    %117 = vector.broadcast %37 : vector<1x1x8xf32> to vector<1x8x8xf32>
    %118 = arith.addf %116, %117 : vector<1x8x8xf32>
    %cst_39 = arith.constant dense<0xFF800000> : vector<1x8xf32>
    %119 = vector.multi_reduction <maximumf>, %118, %cst_39 [2] : vector<1x8x8xf32> to vector<1x8xf32>
    %120 = vector.shape_cast %119 : vector<1x8xf32> to vector<1x8x1xf32>
    %121 = vector.broadcast %120 : vector<1x8x1xf32> to vector<1x8x8xf32>
    %122 = arith.subf %118, %121 : vector<1x8x8xf32>
    %123 = math.exp %122 : vector<1x8x8xf32>
    %cst_40 = arith.constant dense<0.000000e+00> : vector<1x8xf32>
    %124 = vector.multi_reduction <add>, %123, %cst_40 [2] : vector<1x8x8xf32> to vector<1x8xf32>
    %125 = vector.shape_cast %124 : vector<1x8xf32> to vector<1x8x1xf32>
    %126 = tpu.reciprocal %125 {approx = true} : vector<1x8x1xf32> -> vector<1x8x1xf32>
    %127 = vector.broadcast %126 : vector<1x8x1xf32> to vector<1x8x8xf32>
    %128 = arith.mulf %123, %127 : vector<1x8x8xf32>
    %129 = arith.truncf %128 : vector<1x8x8xf32> to vector<1x8x8xbf16>
    "tpu.trace_start"() <{level = 10 : i32, message = "bqk,bkd->bqd"}> : () -> ()
    %cst_41 = arith.constant dense<0.000000e+00> : vector<1x8x8xf32>
    %130 = tpu.matmul %129, %115, %cst_41 {dimension_numbers = #tpu.dot_dimension_numbers<[2], [1], [1], [2], [0, 0, 0, 1, 1, 2], [0], [0]>} : vector<1x8x8xbf16>, vector<1x8x8xbf16>, vector<1x8x8xf32> -> vector<1x8x8xf32>
    "tpu.trace_stop"() : () -> ()
    %131 = vector.shape_cast %130 : vector<1x8x8xf32> to vector<8x8xf32>
    %132 = arith.truncf %131 : vector<8x8xf32> to vector<8x8xbf16>
    %c0_42 = arith.constant 0 : index
    %c24 = arith.constant 24 : index
    %133 = vector.load %arg20[%c0_42, %c24] : memref<8x32xbf16, #tpu.memory_space<vmem>>, vector<8x8xbf16>
    tpu.vector_store %arg20[%c0_42, %c24], %132 {strides = array<i32>} : memref<8x32xbf16, #tpu.memory_space<vmem>>, vector<8x8xbf16>,
    %c0_43 = arith.constant 0 : index
    %c0_44 = arith.constant 0 : index
    %134 = vector.load %arg20[%c0_43, %c0_44] : memref<8x32xbf16, #tpu.memory_space<vmem>>, vector<8x32xbf16>
    %c0_45 = arith.constant 0 : index
    %c0_46 = arith.constant 0 : index
    %135 = vector.load %arg9[%c0_45, %c0_46] : memref<32x128xbf16, #tpu.memory_space<vmem>>, vector<32x128xbf16>
    %cst_47 = arith.constant dense<0.000000e+00> : vector<8x128xf32>
    %136 = tpu.matmul %134, %135, %cst_47 {dimension_numbers = #tpu.dot_dimension_numbers<[1], [0], [0], [1], [0, 0, 1, 1], [], []>} : vector<8x32xbf16>, vector<32x128xbf16>, vector<8x128xf32> -> vector<8x128xf32>
    %c0_48 = arith.constant 0 : index
    %c0_49 = arith.constant 0 : index
    %137 = vector.load %arg10[%c0_48, %c0_49] : memref<1x128xf32, #tpu.memory_space<vmem>>, vector<1x128xf32>
    %138 = vector.broadcast %137 : vector<1x128xf32> to vector<8x128xf32>
    %139 = arith.addf %136, %138 : vector<8x128xf32>
    %140 = arith.addf %5, %139 : vector<8x128xf32>
    %c0_50 = arith.constant 0 : index
    %c0_51 = arith.constant 0 : index
    %141 = vector.load %arg11[%c0_50, %c0_51] : memref<1x128xf32, #tpu.memory_space<vmem>>, vector<1x128xf32>
    %c0_52 = arith.constant 0 : index
    %c0_53 = arith.constant 0 : index
    %142 = vector.load %arg12[%c0_52, %c0_53] : memref<1x128xf32, #tpu.memory_space<vmem>>, vector<1x128xf32>
    %cst_54 = arith.constant dense<0.000000e+00> : vector<8xf32>
    %143 = vector.multi_reduction <add>, %140, %cst_54 [1] : vector<8x128xf32> to vector<8xf32>
    %144 = vector.shape_cast %143 : vector<8xf32> to vector<8x1xf32>
    %cst_55 = arith.constant 3.125000e-02 : f32
    %145 = vector.broadcast %cst_55 : f32 to vector<8x1xf32>
    %146 = arith.mulf %144, %145 : vector<8x1xf32>
    %147 = arith.mulf %140, %140 : vector<8x128xf32>
    %cst_56 = arith.constant dense<0.000000e+00> : vector<8xf32>
    %148 = vector.multi_reduction <add>, %147, %cst_56 [1] : vector<8x128xf32> to vector<8xf32>
    %149 = vector.shape_cast %148 : vector<8xf32> to vector<8x1xf32>
    %cst_57 = arith.constant 3.125000e-02 : f32
    %150 = vector.broadcast %cst_57 : f32 to vector<8x1xf32>
    %151 = arith.mulf %149, %150 : vector<8x1xf32>
    %152 = arith.mulf %146, %146 : vector<8x1xf32>
    %153 = arith.subf %151, %152 : vector<8x1xf32>
    %154 = vector.broadcast %146 : vector<8x1xf32> to vector<8x128xf32>
    %155 = arith.subf %140, %154 : vector<8x128xf32>
    %cst_58 = arith.constant 9.99999974E-6 : f32
    %156 = vector.broadcast %cst_58 : f32 to vector<8x1xf32>
    %157 = arith.addf %153, %156 : vector<8x1xf32>
    %158 = math.rsqrt %157 : vector<8x1xf32>
    %159 = vector.broadcast %158 : vector<8x1xf32> to vector<8x128xf32>
    %160 = arith.mulf %155, %159 : vector<8x128xf32>
    %161 = vector.broadcast %141 : vector<1x128xf32> to vector<8x128xf32>
    %162 = arith.mulf %160, %161 : vector<8x128xf32>
    %163 = vector.broadcast %142 : vector<1x128xf32> to vector<8x128xf32>
    %164 = arith.addf %162, %163 : vector<8x128xf32>
    %165 = arith.truncf %164 : vector<8x128xf32> to vector<8x128xbf16>
    %c0_59 = arith.constant 0 : index
    %c0_60 = arith.constant 0 : index
    %166 = vector.load %arg13[%c0_59, %c0_60] : memref<128x128xbf16, #tpu.memory_space<vmem>>, vector<128x128xbf16>
    %cst_61 = arith.constant dense<0.000000e+00> : vector<8x128xf32>
    %167 = tpu.matmul %165, %166, %cst_61 {dimension_numbers = #tpu.dot_dimension_numbers<[1], [0], [0], [1], [0, 0, 1, 1], [], []>} : vector<8x128xbf16>, vector<128x128xbf16>, vector<8x128xf32> -> vector<8x128xf32>
    %c0_62 = arith.constant 0 : index
    %c0_63 = arith.constant 0 : index
    %168 = vector.load %arg14[%c0_62, %c0_63] : memref<1x128xf32, #tpu.memory_space<vmem>>, vector<1x128xf32>
    %169 = vector.broadcast %168 : vector<1x128xf32> to vector<8x128xf32>
    %170 = arith.addf %167, %169 : vector<8x128xf32>
    %cst_64 = arith.constant 0.000000e+00 : f32
    %171 = vector.broadcast %cst_64 : f32 to vector<8x128xf32>
    %172 = arith.maximumf %170, %171 : vector<8x128xf32>
    %173 = arith.truncf %172 : vector<8x128xf32> to vector<8x128xbf16>
    %c0_65 = arith.constant 0 : index
    %c0_66 = arith.constant 0 : index
    %174 = vector.load %arg15[%c0_65, %c0_66] : memref<128x128xbf16, #tpu.memory_space<vmem>>, vector<128x128xbf16>
    %cst_67 = arith.constant dense<0.000000e+00> : vector<8x128xf32>
    %175 = tpu.matmul %173, %174, %cst_67 {dimension_numbers = #tpu.dot_dimension_numbers<[1], [0], [0], [1], [0, 0, 1, 1], [], []>} : vector<8x128xbf16>, vector<128x128xbf16>, vector<8x128xf32> -> vector<8x128xf32>
    %c0_68 = arith.constant 0 : index
    %c0_69 = arith.constant 0 : index
    %176 = vector.load %arg16[%c0_68, %c0_69] : memref<1x128xf32, #tpu.memory_space<vmem>>, vector<1x128xf32>
    %177 = vector.broadcast %176 : vector<1x128xf32> to vector<8x128xf32>
    %178 = arith.addf %175, %177 : vector<8x128xf32>
    %179 = arith.addf %140, %178 : vector<8x128xf32>
    %180 = arith.truncf %179 : vector<8x128xf32> to vector<8x128xbf16>
    %c0_70 = arith.constant 0 : index
    %c0_71 = arith.constant 0 : index
    %181 = vector.load %arg17[%c0_70, %c0_71] : memref<128x128xbf16, #tpu.memory_space<vmem>>, vector<128x128xbf16>
    %cst_72 = arith.constant dense<0.000000e+00> : vector<8x128xf32>
    %182 = tpu.matmul %180, %181, %cst_72 {dimension_numbers = #tpu.dot_dimension_numbers<[1], [0], [0], [1], [0, 0, 1, 1], [], []>} : vector<8x128xbf16>, vector<128x128xbf16>, vector<8x128xf32> -> vector<8x128xf32>
    %c0_73 = arith.constant 0 : index
    %c0_74 = arith.constant 0 : index
    %183 = vector.load %arg18[%c0_73, %c0_74] : memref<1x128xf32, #tpu.memory_space<vmem>>, vector<1x128xf32>
    %184 = vector.broadcast %183 : vector<1x128xf32> to vector<8x128xf32>
    %185 = arith.addf %182, %184 : vector<8x128xf32>
    %186 = math.tanh %185 : vector<8x128xf32>
    %c0_75 = arith.constant 0 : index
    %c0_76 = arith.constant 0 : index
    %187 = vector.load %arg19[%c0_75, %c0_76] : memref<8x128xf32, #tpu.memory_space<vmem>>, vector<8x128xf32>
    tpu.vector_store %arg19[%c0_75, %c0_76], %186 {strides = array<i32>} : memref<8x128xf32, #tpu.memory_space<vmem>>, vector<8x128xf32>,
    return
  }
  func.func @transform_0(%arg0: i32) -> (i32, i32) {
    %c0_i32 = arith.constant 0 : i32
    %c0_i32_0 = arith.constant 0 : i32
    return %arg0, %c0_i32 : i32, i32
  }
  func.func @transform_1(%arg0: i32) -> (i32, i32, i32) {
    %c0_i32 = arith.constant 0 : i32
    %c0_i32_0 = arith.constant 0 : i32
    %c0_i32_1 = arith.constant 0 : i32
    return %arg0, %c0_i32, %c0_i32_0 : i32, i32, i32
  }
  func.func @transform_2(%arg0: i32) -> (i32, i32) {
    %c0_i32 = arith.constant 0 : i32
    %c0_i32_0 = arith.constant 0 : i32
    %c0_i32_1 = arith.constant 0 : i32
    return %c0_i32, %c0_i32_0 : i32, i32
  }
  func.func @transform_3(%arg0: i32) -> (i32, i32) {
    %c0_i32 = arith.constant 0 : i32
    %c0_i32_0 = arith.constant 0 : i32
    %c0_i32_1 = arith.constant 0 : i32
    return %c0_i32, %c0_i32_0 : i32, i32
  }
  func.func @transform_4(%arg0: i32) -> (i32, i32) {
    %c0_i32 = arith.constant 0 : i32
    %c0_i32_0 = arith.constant 0 : i32
    %c0_i32_1 = arith.constant 0 : i32
    return %c0_i32, %c0_i32_0 : i32, i32
  }
  func.func @transform_5(%arg0: i32) -> (i32, i32) {
    %c0_i32 = arith.constant 0 : i32
    %c0_i32_0 = arith.constant 0 : i32
    %c0_i32_1 = arith.constant 0 : i32
    return %c0_i32, %c0_i32_0 : i32, i32
  }
  func.func @transform_6(%arg0: i32) -> (i32, i32) {
    %c0_i32 = arith.constant 0 : i32
    %c0_i32_0 = arith.constant 0 : i32
    %c0_i32_1 = arith.constant 0 : i32
    return %c0_i32, %c0_i32_0 : i32, i32
  }
  func.func @transform_7(%arg0: i32) -> (i32, i32) {
    %c0_i32 = arith.constant 0 : i32
    %c0_i32_0 = arith.constant 0 : i32
    %c0_i32_1 = arith.constant 0 : i32
    return %c0_i32, %c0_i32_0 : i32, i32
  }
  func.func @transform_8(%arg0: i32) -> (i32, i32) {
    %c0_i32 = arith.constant 0 : i32
    %c0_i32_0 = arith.constant 0 : i32
    %c0_i32_1 = arith.constant 0 : i32
    return %c0_i32, %c0_i32_0 : i32, i32
  }
  func.func @transform_9(%arg0: i32) -> (i32, i32) {
    %c0_i32 = arith.constant 0 : i32
    %c0_i32_0 = arith.constant 0 : i32
    %c0_i32_1 = arith.constant 0 : i32
    return %c0_i32, %c0_i32_0 : i32, i32
  }
  func.func @transform_10(%arg0: i32) -> (i32, i32) {
    %c0_i32 = arith.constant 0 : i32
    %c0_i32_0 = arith.constant 0 : i32
    %c0_i32_1 = arith.constant 0 : i32
    return %c0_i32, %c0_i32_0 : i32, i32
  }
  func.func @transform_11(%arg0: i32) -> (i32, i32) {
    %c0_i32 = arith.constant 0 : i32
    %c0_i32_0 = arith.constant 0 : i32
    %c0_i32_1 = arith.constant 0 : i32
    return %c0_i32, %c0_i32_0 : i32, i32
  }
  func.func @transform_12(%arg0: i32) -> (i32, i32) {
    %c0_i32 = arith.constant 0 : i32
    %c0_i32_0 = arith.constant 0 : i32
    %c0_i32_1 = arith.constant 0 : i32
    return %c0_i32, %c0_i32_0 : i32, i32
  }
  func.func @transform_13(%arg0: i32) -> (i32, i32) {
    %c0_i32 = arith.constant 0 : i32
    %c0_i32_0 = arith.constant 0 : i32
    %c0_i32_1 = arith.constant 0 : i32
    return %c0_i32, %c0_i32_0 : i32, i32
  }
  func.func @transform_14(%arg0: i32) -> (i32, i32) {
    %c0_i32 = arith.constant 0 : i32
    %c0_i32_0 = arith.constant 0 : i32
    %c0_i32_1 = arith.constant 0 : i32
    return %c0_i32, %c0_i32_0 : i32, i32
  }
  func.func @transform_15(%arg0: i32) -> (i32, i32) {
    %c0_i32 = arith.constant 0 : i32
    %c0_i32_0 = arith.constant 0 : i32
    %c0_i32_1 = arith.constant 0 : i32
    return %c0_i32, %c0_i32_0 : i32, i32
  }
  func.func @transform_16(%arg0: i32) -> (i32, i32) {
    %c0_i32 = arith.constant 0 : i32
    %c0_i32_0 = arith.constant 0 : i32
    %c0_i32_1 = arith.constant 0 : i32
    return %c0_i32, %c0_i32_0 : i32, i32
  }
  func.func @transform_17(%arg0: i32) -> (i32, i32) {
    %c0_i32 = arith.constant 0 : i32
    %c0_i32_0 = arith.constant 0 : i32
    %c0_i32_1 = arith.constant 0 : i32
    return %c0_i32, %c0_i32_0 : i32, i32
  }
  func.func @transform_18(%arg0: i32) -> (i32, i32) {
    %c0_i32 = arith.constant 0 : i32
    %c0_i32_0 = arith.constant 0 : i32
    return %arg0, %c0_i32 : i32, i32
  }
}

module attributes {stable_mosaic.version = 11 : i64} {
  func.func @sidechain_transformer_kernel(%arg0: i32, %arg1: memref<8x128xbf16, #tpu.memory_space<vmem>>, %arg2: memref<1x1x8xf32, #tpu.memory_space<vmem>>, %arg3: memref<128x128xbf16, #tpu.memory_space<vmem>>, %arg4: memref<1x128xf32, #tpu.memory_space<vmem>>, %arg5: memref<1x128xf32, #tpu.memory_space<vmem>>, %arg6: memref<1x128xf32, #tpu.memory_space<vmem>>, %arg7: memref<128x96xbf16, #tpu.memory_space<vmem>>, %arg8: memref<1x96xf32, #tpu.memory_space<vmem>>, %arg9: memref<32x128xbf16, #tpu.memory_space<vmem>>, %arg10: memref<1x128xf32, #tpu.memory_space<vmem>>, %arg11: memref<1x128xf32, #tpu.memory_space<vmem>>, %arg12: memref<1x128xf32, #tpu.memory_space<vmem>>, %arg13: memref<128x128xbf16, #tpu.memory_space<vmem>>, %arg14: memref<1x128xf32, #tpu.memory_space<vmem>>, %arg15: memref<128x128xbf16, #tpu.memory_space<vmem>>, %arg16: memref<1x128xf32, #tpu.memory_space<vmem>>, %arg17: memref<128x128xbf16, #tpu.memory_space<vmem>>, %arg18: memref<1x128xf32, #tpu.memory_space<vmem>>, %arg19: memref<8x128xf32, #tpu.memory_space<vmem>>, %arg20: memref<8x32xbf16, #tpu.memory_space<vmem>>) attributes {dimension_semantics = [#tpu.dimension_semantics<parallel>], iteration_bounds = array<i64: 2>, scalar_prefetch = 0 : i64, scratch_operands = 1 : i64, tpu.core_type = #tpu.core_type<tc>, window_params = [{transform_indices = @transform_0, window_bounds = array<i64: 8, 128>}, {transform_indices = @transform_1, window_bounds = array<i64: 1, 1, 8>}, {pipeline_mode = #tpu.pipeline_mode<synchronous>, transform_indices = @transform_2, window_bounds = array<i64: 128, 128>}, {pipeline_mode = #tpu.pipeline_mode<synchronous>, transform_indices = @transform_3, window_bounds = array<i64: 1, 128>}, {pipeline_mode = #tpu.pipeline_mode<synchronous>, transform_indices = @transform_4, window_bounds = array<i64: 1, 128>}, {pipeline_mode = #tpu.pipeline_mode<synchronous>, transform_indices = @transform_5, window_bounds = array<i64: 1, 128>}, {pipeline_mode = #tpu.pipeline_mode<synchronous>, transform_indices = @transform_6, window_bounds = array<i64: 128, 96>}, {pipeline_mode = #tpu.pipeline_mode<synchronous>, transform_indices = @transform_7, window_bounds = array<i64: 1, 96>}, {pipeline_mode = #tpu.pipeline_mode<synchronous>, transform_indices = @transform_8, window_bounds = array<i64: 32, 128>}, {pipeline_mode = #tpu.pipeline_mode<synchronous>, transform_indices = @transform_9, window_bounds = array<i64: 1, 128>}, {pipeline_mode = #tpu.pipeline_mode<synchronous>, transform_indices = @transform_10, window_bounds = array<i64: 1, 128>}, {pipeline_mode = #tpu.pipeline_mode<synchronous>, transform_indices = @transform_11, window_bounds = array<i64: 1, 128>}, {pipeline_mode = #tpu.pipeline_mode<synchronous>, transform_indices = @transform_12, window_bounds = array<i64: 128, 128>}, {pipeline_mode = #tpu.pipeline_mode<synchronous>, transform_indices = @transform_13, window_bounds = array<i64: 1, 128>}, {pipeline_mode = #tpu.pipeline_mode<synchronous>, transform_indices = @transform_14, window_bounds = array<i64: 128, 128>}, {pipeline_mode = #tpu.pipeline_mode<synchronous>, transform_indices = @transform_15, window_bounds = array<i64: 1, 128>}, {pipeline_mode = #tpu.pipeline_mode<synchronous>, transform_indices = @transform_16, window_bounds = array<i64: 128, 128>}, {pipeline_mode = #tpu.pipeline_mode<synchronous>, transform_indices = @transform_17, window_bounds = array<i64: 1, 128>}, {transform_indices = @transform_18, window_bounds = array<i64: 8, 128>}]} {
    %c0 = arith.constant 0 : index
    %c0_0 = arith.constant 0 : index
    %0 = vector.load %arg1[%c0, %c0_0] : memref<8x128xbf16, #tpu.memory_space<vmem>>, vector<8x128xbf16>
    %c0_1 = arith.constant 0 : index
    %c0_2 = arith.constant 0 : index
    %1 = vector.load %arg3[%c0_1, %c0_2] : memref<128x128xbf16, #tpu.memory_space<vmem>>, vector<128x128xbf16>
    %cst = arith.constant dense<0.000000e+00> : vector<8x128xf32>
    %2 = tpu.matmul %0, %1, %cst {dimension_numbers = #tpu.dot_dimension_numbers<[1], [0], [0], [1], [0, 0, 1, 1], [], []>} : vector<8x128xbf16>, vector<128x128xbf16>, vector<8x128xf32> -> vector<8x128xf32>
    %c0_3 = arith.constant 0 : index
    %c0_4 = arith.constant 0 : index
    %3 = vector.load %arg4[%c0_3, %c0_4] : memref<1x128xf32, #tpu.memory_space<vmem>>, vector<1x128xf32>
    %4 = vector.broadcast %3 : vector<1x128xf32> to vector<8x128xf32>
    %5 = arith.addf %2, %4 : vector<8x128xf32>
    %c0_5 = arith.constant 0 : index
    %c0_6 = arith.constant 0 : index
    %6 = vector.load %arg5[%c0_5, %c0_6] : memref<1x128xf32, #tpu.memory_space<vmem>>, vector<1x128xf32>
    %c0_7 = arith.constant 0 : index
    %c0_8 = arith.constant 0 : index
    %7 = vector.load %arg6[%c0_7, %c0_8] : memref<1x128xf32, #tpu.memory_space<vmem>>, vector<1x128xf32>
    %cst_9 = arith.constant dense<0.000000e+00> : vector<8xf32>
    %8 = vector.multi_reduction <add>, %5, %cst_9 [1] : vector<8x128xf32> to vector<8xf32>
    %9 = vector.shape_cast %8 : vector<8xf32> to vector<8x1xf32>
    %cst_10 = arith.constant 3.125000e-02 : f32
    %10 = vector.broadcast %cst_10 : f32 to vector<8x1xf32>
    %11 = arith.mulf %9, %10 : vector<8x1xf32>
    %12 = arith.mulf %5, %5 : vector<8x128xf32>
    %cst_11 = arith.constant dense<0.000000e+00> : vector<8xf32>
    %13 = vector.multi_reduction <add>, %12, %cst_11 [1] : vector<8x128xf32> to vector<8xf32>
    %14 = vector.shape_cast %13 : vector<8xf32> to vector<8x1xf32>
    %cst_12 = arith.constant 3.125000e-02 : f32
    %15 = vector.broadcast %cst_12 : f32 to vector<8x1xf32>
    %16 = arith.mulf %14, %15 : vector<8x1xf32>
    %17 = arith.mulf %11, %11 : vector<8x1xf32>
    %18 = arith.subf %16, %17 : vector<8x1xf32>
    %19 = vector.broadcast %11 : vector<8x1xf32> to vector<8x128xf32>
    %20 = arith.subf %5, %19 : vector<8x128xf32>
    %cst_13 = arith.constant 9.99999974E-6 : f32
    %21 = vector.broadcast %cst_13 : f32 to vector<8x1xf32>
    %22 = arith.addf %18, %21 : vector<8x1xf32>
    %23 = math.rsqrt %22 : vector<8x1xf32>
    %24 = vector.broadcast %23 : vector<8x1xf32> to vector<8x128xf32>
    %25 = arith.mulf %20, %24 : vector<8x128xf32>
    %26 = vector.broadcast %6 : vector<1x128xf32> to vector<8x128xf32>
    %27 = arith.mulf %25, %26 : vector<8x128xf32>
    %28 = vector.broadcast %7 : vector<1x128xf32> to vector<8x128xf32>
    %29 = arith.addf %27, %28 : vector<8x128xf32>
    %30 = arith.truncf %29 : vector<8x128xf32> to vector<8x128xbf16>
    %c0_14 = arith.constant 0 : index
    %c0_15 = arith.constant 0 : index
    %31 = vector.load %arg7[%c0_14, %c0_15] : memref<128x96xbf16, #tpu.memory_space<vmem>>, vector<128x96xbf16>
    %cst_16 = arith.constant dense<0.000000e+00> : vector<8x96xf32>
    %32 = tpu.matmul %30, %31, %cst_16 {dimension_numbers = #tpu.dot_dimension_numbers<[1], [0], [0], [1], [0, 0, 1, 1], [], []>} : vector<8x128xbf16>, vector<128x96xbf16>, vector<8x96xf32> -> vector<8x96xf32>
    %c0_17 = arith.constant 0 : index
    %c0_18 = arith.constant 0 : index
    %33 = vector.load %arg8[%c0_17, %c0_18] : memref<1x96xf32, #tpu.memory_space<vmem>>, vector<1x96xf32>
    %34 = vector.broadcast %33 : vector<1x96xf32> to vector<8x96xf32>
    %35 = arith.addf %32, %34 : vector<8x96xf32>
    %36 = arith.truncf %35 : vector<8x96xf32> to vector<8x96xbf16>
    %c0_19 = arith.constant 0 : index
    %c0_20 = arith.constant 0 : index
    %c0_21 = arith.constant 0 : index
    %37 = vector.load %arg2[%c0_19, %c0_20, %c0_21] : memref<1x1x8xf32, #tpu.memory_space<vmem>>, vector<1x1x8xf32>
    %38 = vector.extract_strided_slice %36 {offsets = [0, 0], sizes = [8, 8], strides = [1, 1]} : vector<8x96xbf16> to vector<8x8xbf16>
    %39 = vector.shape_cast %38 : vector<8x8xbf16> to vector<1x8x8xbf16>
    %40 = vector.extract_strided_slice %36 {offsets = [0, 32], sizes = [8, 8], strides = [1, 1]} : vector<8x96xbf16> to vector<8x8xbf16>
    %41 = vector.shape_cast %40 : vector<8x8xbf16> to vector<1x8x8xbf16>
    %42 = vector.extract_strided_slice %36 {offsets = [0, 64], sizes = [8, 8], strides = [1, 1]} : vector<8x96xbf16> to vector<8x8xbf16>
    %43 = vector.shape_cast %42 : vector<8x8xbf16> to vector<1x8x8xbf16>
    "tpu.trace_start"() <{level = 10 : i32, message = "bqd,bkd->bqk"}> : () -> ()
    %cst_22 = arith.constant dense<0.000000e+00> : vector<1x8x8xf32>
    %44 = tpu.matmul %39, %41, %cst_22 {dimension_numbers = #tpu.dot_dimension_numbers<[2], [2], [1], [1], [0, 0, 0, 1, 1, 1], [0], [0]>} : vector<1x8x8xbf16>, vector<1x8x8xbf16>, vector<1x8x8xf32> -> vector<1x8x8xf32>
    "tpu.trace_stop"() : () -> ()
    %45 = vector.broadcast %37 : vector<1x1x8xf32> to vector<1x8x8xf32>
    %46 = arith.addf %44, %45 : vector<1x8x8xf32>
    %cst_23 = arith.constant dense<0xFF800000> : vector<1x8xf32>
    %47 = vector.multi_reduction <maximumf>, %46, %cst_23 [2] : vector<1x8x8xf32> to vector<1x8xf32>
    %48 = vector.shape_cast %47 : vector<1x8xf32> to vector<1x8x1xf32>
    %49 = vector.broadcast %48 : vector<1x8x1xf32> to vector<1x8x8xf32>
    %50 = arith.subf %46, %49 : vector<1x8x8xf32>
    %51 = math.exp %50 : vector<1x8x8xf32>
    %cst_24 = arith.constant dense<0.000000e+00> : vector<1x8xf32>
    %52 = vector.multi_reduction <add>, %51, %cst_24 [2] : vector<1x8x8xf32> to vector<1x8xf32>
    %53 = vector.shape_cast %52 : vector<1x8xf32> to vector<1x8x1xf32>
    %54 = tpu.reciprocal %53 {approx = true} : vector<1x8x1xf32> -> vector<1x8x1xf32>
    %55 = vector.broadcast %54 : vector<1x8x1xf32> to vector<1x8x8xf32>
    %56 = arith.mulf %51, %55 : vector<1x8x8xf32>
    %57 = arith.truncf %56 : vector<1x8x8xf32> to vector<1x8x8xbf16>
    "tpu.trace_start"() <{level = 10 : i32, message = "bqk,bkd->bqd"}> : () -> ()
    %cst_25 = arith.constant dense<0.000000e+00> : vector<1x8x8xf32>
    %58 = tpu.matmul %57, %43, %cst_25 {dimension_numbers = #tpu.dot_dimension_numbers<[2], [1], [1], [2], [0, 0, 0, 1, 1, 2], [0], [0]>} : vector<1x8x8xbf16>, vector<1x8x8xbf16>, vector<1x8x8xf32> -> vector<1x8x8xf32>
    "tpu.trace_stop"() : () -> ()
    %59 = vector.shape_cast %58 : vector<1x8x8xf32> to vector<8x8xf32>
    %60 = arith.truncf %59 : vector<8x8xf32> to vector<8x8xbf16>
    %c0_26 = arith.constant 0 : index
    %c0_27 = arith.constant 0 : index
    %61 = vector.load %arg20[%c0_26, %c0_27] : memref<8x32xbf16, #tpu.memory_space<vmem>>, vector<8x8xbf16>
    tpu.vector_store %arg20[%c0_26, %c0_27], %60 {strides = array<i32>} : memref<8x32xbf16, #tpu.memory_space<vmem>>, vector<8x8xbf16>,
    %62 = vector.extract_strided_slice %36 {offsets = [0, 8], sizes = [8, 8], strides = [1, 1]} : vector<8x96xbf16> to vector<8x8xbf16>
    %63 = vector.shape_cast %62 : vector<8x8xbf16> to vector<1x8x8xbf16>
    %64 = vector.extract_strided_slice %36 {offsets = [0, 40], sizes = [8, 8], strides = [1, 1]} : vector<8x96xbf16> to vector<8x8xbf16>
    %65 = vector.shape_cast %64 : vector<8x8xbf16> to vector<1x8x8xbf16>
    %66 = vector.extract_strided_slice %36 {offsets = [0, 72], sizes = [8, 8], strides = [1, 1]} : vector<8x96xbf16> to vector<8x8xbf16>
    %67 = vector.shape_cast %66 : vector<8x8xbf16> to vector<1x8x8xbf16>
    "tpu.trace_start"() <{level = 10 : i32, message = "bqd,bkd->bqk"}> : () -> ()
    %cst_28 = arith.constant dense<0.000000e+00> : vector<1x8x8xf32>
    %68 = tpu.matmul %63, %65, %cst_28 {dimension_numbers = #tpu.dot_dimension_numbers<[2], [2], [1], [1], [0, 0, 0, 1, 1, 1], [0], [0]>} : vector<1x8x8xbf16>, vector<1x8x8xbf16>, vector<1x8x8xf32> -> vector<1x8x8xf32>
    "tpu.trace_stop"() : () -> ()
    %69 = vector.broadcast %37 : vector<1x1x8xf32> to vector<1x8x8xf32>
    %70 = arith.addf %68, %69 : vector<1x8x8xf32>
    %cst_29 = arith.constant dense<0xFF800000> : vector<1x8xf32>
    %71 = vector.multi_reduction <maximumf>, %70, %cst_29 [2] : vector<1x8x8xf32> to vector<1x8xf32>
    %72 = vector.shape_cast %71 : vector<1x8xf32> to vector<1x8x1xf32>
    %73 = vector.broadcast %72 : vector<1x8x1xf32> to vector<1x8x8xf32>
    %74 = arith.subf %70, %73 : vector<1x8x8xf32>
    %75 = math.exp %74 : vector<1x8x8xf32>
    %cst_30 = arith.constant dense<0.000000e+00> : vector<1x8xf32>
    %76 = vector.multi_reduction <add>, %75, %cst_30 [2] : vector<1x8x8xf32> to vector<1x8xf32>
    %77 = vector.shape_cast %76 : vector<1x8xf32> to vector<1x8x1xf32>
    %78 = tpu.reciprocal %77 {approx = true} : vector<1x8x1xf32> -> vector<1x8x1xf32>
    %79 = vector.broadcast %78 : vector<1x8x1xf32> to vector<1x8x8xf32>
    %80 = arith.mulf %75, %79 : vector<1x8x8xf32>
    %81 = arith.truncf %80 : vector<1x8x8xf32> to vector<1x8x8xbf16>
    "tpu.trace_start"() <{level = 10 : i32, message = "bqk,bkd->bqd"}> : () -> ()
    %cst_31 = arith.constant dense<0.000000e+00> : vector<1x8x8xf32>
    %82 = tpu.matmul %81, %67, %cst_31 {dimension_numbers = #tpu.dot_dimension_numbers<[2], [1], [1], [2], [0, 0, 0, 1, 1, 2], [0], [0]>} : vector<1x8x8xbf16>, vector<1x8x8xbf16>, vector<1x8x8xf32> -> vector<1x8x8xf32>
    "tpu.trace_stop"() : () -> ()
    %83 = vector.shape_cast %82 : vector<1x8x8xf32> to vector<8x8xf32>
    %84 = arith.truncf %83 : vector<8x8xf32> to vector<8x8xbf16>
    %c0_32 = arith.constant 0 : index
    %c8 = arith.constant 8 : index
    %85 = vector.load %arg20[%c0_32, %c8] : memref<8x32xbf16, #tpu.memory_space<vmem>>, vector<8x8xbf16>
    tpu.vector_store %arg20[%c0_32, %c8], %84 {strides = array<i32>} : memref<8x32xbf16, #tpu.memory_space<vmem>>, vector<8x8xbf16>,
    %86 = vector.extract_strided_slice %36 {offsets = [0, 16], sizes = [8, 8], strides = [1, 1]} : vector<8x96xbf16> to vector<8x8xbf16>
    %87 = vector.shape_cast %86 : vector<8x8xbf16> to vector<1x8x8xbf16>
    %88 = vector.extract_strided_slice %36 {offsets = [0, 48], sizes = [8, 8], strides = [1, 1]} : vector<8x96xbf16> to vector<8x8xbf16>
    %89 = vector.shape_cast %88 : vector<8x8xbf16> to vector<1x8x8xbf16>
    %90 = vector.extract_strided_slice %36 {offsets = [0, 80], sizes = [8, 8], strides = [1, 1]} : vector<8x96xbf16> to vector<8x8xbf16>
    %91 = vector.shape_cast %90 : vector<8x8xbf16> to vector<1x8x8xbf16>
    "tpu.trace_start"() <{level = 10 : i32, message = "bqd,bkd->bqk"}> : () -> ()
    %cst_33 = arith.constant dense<0.000000e+00> : vector<1x8x8xf32>
    %92 = tpu.matmul %87, %89, %cst_33 {dimension_numbers = #tpu.dot_dimension_numbers<[2], [2], [1], [1], [0, 0, 0, 1, 1, 1], [0], [0]>} : vector<1x8x8xbf16>, vector<1x8x8xbf16>, vector<1x8x8xf32> -> vector<1x8x8xf32>
    "tpu.trace_stop"() : () -> ()
    %93 = vector.broadcast %37 : vector<1x1x8xf32> to vector<1x8x8xf32>
    %94 = arith.addf %92, %93 : vector<1x8x8xf32>
    %cst_34 = arith.constant dense<0xFF800000> : vector<1x8xf32>
    %95 = vector.multi_reduction <maximumf>, %94, %cst_34 [2] : vector<1x8x8xf32> to vector<1x8xf32>
    %96 = vector.shape_cast %95 : vector<1x8xf32> to vector<1x8x1xf32>
    %97 = vector.broadcast %96 : vector<1x8x1xf32> to vector<1x8x8xf32>
    %98 = arith.subf %94, %97 : vector<1x8x8xf32>
    %99 = math.exp %98 : vector<1x8x8xf32>
    %cst_35 = arith.constant dense<0.000000e+00> : vector<1x8xf32>
    %100 = vector.multi_reduction <add>, %99, %cst_35 [2] : vector<1x8x8xf32> to vector<1x8xf32>
    %101 = vector.shape_cast %100 : vector<1x8xf32> to vector<1x8x1xf32>
    %102 = tpu.reciprocal %101 {approx = true} : vector<1x8x1xf32> -> vector<1x8x1xf32>
    %103 = vector.broadcast %102 : vector<1x8x1xf32> to vector<1x8x8xf32>
    %104 = arith.mulf %99, %103 : vector<1x8x8xf32>
    %105 = arith.truncf %104 : vector<1x8x8xf32> to vector<1x8x8xbf16>
    "tpu.trace_start"() <{level = 10 : i32, message = "bqk,bkd->bqd"}> : () -> ()
    %cst_36 = arith.constant dense<0.000000e+00> : vector<1x8x8xf32>
    %106 = tpu.matmul %105, %91, %cst_36 {dimension_numbers = #tpu.dot_dimension_numbers<[2], [1], [1], [2], [0, 0, 0, 1, 1, 2], [0], [0]>} : vector<1x8x8xbf16>, vector<1x8x8xbf16>, vector<1x8x8xf32> -> vector<1x8x8xf32>
    "tpu.trace_stop"() : () -> ()
    %107 = vector.shape_cast %106 : vector<1x8x8xf32> to vector<8x8xf32>
    %108 = arith.truncf %107 : vector<8x8xf32> to vector<8x8xbf16>
    %c0_37 = arith.constant 0 : index
    %c16 = arith.constant 16 : index
    %109 = vector.load %arg20[%c0_37, %c16] : memref<8x32xbf16, #tpu.memory_space<vmem>>, vector<8x8xbf16>
    tpu.vector_store %arg20[%c0_37, %c16], %108 {strides = array<i32>} : memref<8x32xbf16, #tpu.memory_space<vmem>>, vector<8x8xbf16>,
    %110 = vector.extract_strided_slice %36 {offsets = [0, 24], sizes = [8, 8], strides = [1, 1]} : vector<8x96xbf16> to vector<8x8xbf16>
    %111 = vector.shape_cast %110 : vector<8x8xbf16> to vector<1x8x8xbf16>
    %112 = vector.extract_strided_slice %36 {offsets = [0, 56], sizes = [8, 8], strides = [1, 1]} : vector<8x96xbf16> to vector<8x8xbf16>
    %113 = vector.shape_cast %112 : vector<8x8xbf16> to vector<1x8x8xbf16>
    %114 = vector.extract_strided_slice %36 {offsets = [0, 88], sizes = [8, 8], strides = [1, 1]} : vector<8x96xbf16> to vector<8x8xbf16>
    %115 = vector.shape_cast %114 : vector<8x8xbf16> to vector<1x8x8xbf16>
    "tpu.trace_start"() <{level = 10 : i32, message = "bqd,bkd->bqk"}> : () -> ()
    %cst_38 = arith.constant dense<0.000000e+00> : vector<1x8x8xf32>
    %116 = tpu.matmul %111, %113, %cst_38 {dimension_numbers = #tpu.dot_dimension_numbers<[2], [2], [1], [1], [0, 0, 0, 1, 1, 1], [0], [0]>} : vector<1x8x8xbf16>, vector<1x8x8xbf16>, vector<1x8x8xf32> -> vector<1x8x8xf32>
    "tpu.trace_stop"() : () -> ()
    %117 = vector.broadcast %37 : vector<1x1x8xf32> to vector<1x8x8xf32>
    %118 = arith.addf %116, %117 : vector<1x8x8xf32>
    %cst_39 = arith.constant dense<0xFF800000> : vector<1x8xf32>
    %119 = vector.multi_reduction <maximumf>, %118, %cst_39 [2] : vector<1x8x8xf32> to vector<1x8xf32>
    %120 = vector.shape_cast %119 : vector<1x8xf32> to vector<1x8x1xf32>
    %121 = vector.broadcast %120 : vector<1x8x1xf32> to vector<1x8x8xf32>
    %122 = arith.subf %118, %121 : vector<1x8x8xf32>
    %123 = math.exp %122 : vector<1x8x8xf32>
    %cst_40 = arith.constant dense<0.000000e+00> : vector<1x8xf32>
    %124 = vector.multi_reduction <add>, %123, %cst_40 [2] : vector<1x8x8xf32> to vector<1x8xf32>
    %125 = vector.shape_cast %124 : vector<1x8xf32> to vector<1x8x1xf32>
    %126 = tpu.reciprocal %125 {approx = true} : vector<1x8x1xf32> -> vector<1x8x1xf32>
    %127 = vector.broadcast %126 : vector<1x8x1xf32> to vector<1x8x8xf32>
    %128 = arith.mulf %123, %127 : vector<1x8x8xf32>
    %129 = arith.truncf %128 : vector<1x8x8xf32> to vector<1x8x8xbf16>
    "tpu.trace_start"() <{level = 10 : i32, message = "bqk,bkd->bqd"}> : () -> ()
    %cst_41 = arith.constant dense<0.000000e+00> : vector<1x8x8xf32>
    %130 = tpu.matmul %129, %115, %cst_41 {dimension_numbers = #tpu.dot_dimension_numbers<[2], [1], [1], [2], [0, 0, 0, 1, 1, 2], [0], [0]>} : vector<1x8x8xbf16>, vector<1x8x8xbf16>, vector<1x8x8xf32> -> vector<1x8x8xf32>
    "tpu.trace_stop"() : () -> ()
    %131 = vector.shape_cast %130 : vector<1x8x8xf32> to vector<8x8xf32>
    %132 = arith.truncf %131 : vector<8x8xf32> to vector<8x8xbf16>
    %c0_42 = arith.constant 0 : index
    %c24 = arith.constant 24 : index
    %133 = vector.load %arg20[%c0_42, %c24] : memref<8x32xbf16, #tpu.memory_space<vmem>>, vector<8x8xbf16>
    tpu.vector_store %arg20[%c0_42, %c24], %132 {strides = array<i32>} : memref<8x32xbf16, #tpu.memory_space<vmem>>, vector<8x8xbf16>,
    %c0_43 = arith.constant 0 : index
    %c0_44 = arith.constant 0 : index
    %134 = vector.load %arg20[%c0_43, %c0_44] : memref<8x32xbf16, #tpu.memory_space<vmem>>, vector<8x32xbf16>
    %c0_45 = arith.constant 0 : index
    %c0_46 = arith.constant 0 : index
    %135 = vector.load %arg9[%c0_45, %c0_46] : memref<32x128xbf16, #tpu.memory_space<vmem>>, vector<32x128xbf16>
    %cst_47 = arith.constant dense<0.000000e+00> : vector<8x128xf32>
    %136 = tpu.matmul %134, %135, %cst_47 {dimension_numbers = #tpu.dot_dimension_numbers<[1], [0], [0], [1], [0, 0, 1, 1], [], []>} : vector<8x32xbf16>, vector<32x128xbf16>, vector<8x128xf32> -> vector<8x128xf32>
    %c0_48 = arith.constant 0 : index
    %c0_49 = arith.constant 0 : index
    %137 = vector.load %arg10[%c0_48, %c0_49] : memref<1x128xf32, #tpu.memory_space<vmem>>, vector<1x128xf32>
    %138 = vector.broadcast %137 : vector<1x128xf32> to vector<8x128xf32>
    %139 = arith.addf %136, %138 : vector<8x128xf32>
    %140 = arith.addf %5, %139 : vector<8x128xf32>
    %c0_50 = arith.constant 0 : index
    %c0_51 = arith.constant 0 : index
    %141 = vector.load %arg11[%c0_50, %c0_51] : memref<1x128xf32, #tpu.memory_space<vmem>>, vector<1x128xf32>
    %c0_52 = arith.constant 0 : index
    %c0_53 = arith.constant 0 : index
    %142 = vector.load %arg12[%c0_52, %c0_53] : memref<1x128xf32, #tpu.memory_space<vmem>>, vector<1x128xf32>
    %cst_54 = arith.constant dense<0.000000e+00> : vector<8xf32>
    %143 = vector.multi_reduction <add>, %140, %cst_54 [1] : vector<8x128xf32> to vector<8xf32>
    %144 = vector.shape_cast %143 : vector<8xf32> to vector<8x1xf32>
    %cst_55 = arith.constant 3.125000e-02 : f32
    %145 = vector.broadcast %cst_55 : f32 to vector<8x1xf32>
    %146 = arith.mulf %144, %145 : vector<8x1xf32>
    %147 = arith.mulf %140, %140 : vector<8x128xf32>
    %cst_56 = arith.constant dense<0.000000e+00> : vector<8xf32>
    %148 = vector.multi_reduction <add>, %147, %cst_56 [1] : vector<8x128xf32> to vector<8xf32>
    %149 = vector.shape_cast %148 : vector<8xf32> to vector<8x1xf32>
    %cst_57 = arith.constant 3.125000e-02 : f32
    %150 = vector.broadcast %cst_57 : f32 to vector<8x1xf32>
    %151 = arith.mulf %149, %150 : vector<8x1xf32>
    %152 = arith.mulf %146, %146 : vector<8x1xf32>
    %153 = arith.subf %151, %152 : vector<8x1xf32>
    %154 = vector.broadcast %146 : vector<8x1xf32> to vector<8x128xf32>
    %155 = arith.subf %140, %154 : vector<8x128xf32>
    %cst_58 = arith.constant 9.99999974E-6 : f32
    %156 = vector.broadcast %cst_58 : f32 to vector<8x1xf32>
    %157 = arith.addf %153, %156 : vector<8x1xf32>
    %158 = math.rsqrt %157 : vector<8x1xf32>
    %159 = vector.broadcast %158 : vector<8x1xf32> to vector<8x128xf32>
    %160 = arith.mulf %155, %159 : vector<8x128xf32>
    %161 = vector.broadcast %141 : vector<1x128xf32> to vector<8x128xf32>
    %162 = arith.mulf %160, %161 : vector<8x128xf32>
    %163 = vector.broadcast %142 : vector<1x128xf32> to vector<8x128xf32>
    %164 = arith.addf %162, %163 : vector<8x128xf32>
    %165 = arith.truncf %164 : vector<8x128xf32> to vector<8x128xbf16>
    %c0_59 = arith.constant 0 : index
    %c0_60 = arith.constant 0 : index
    %166 = vector.load %arg13[%c0_59, %c0_60] : memref<128x128xbf16, #tpu.memory_space<vmem>>, vector<128x128xbf16>
    %cst_61 = arith.constant dense<0.000000e+00> : vector<8x128xf32>
    %167 = tpu.matmul %165, %166, %cst_61 {dimension_numbers = #tpu.dot_dimension_numbers<[1], [0], [0], [1], [0, 0, 1, 1], [], []>} : vector<8x128xbf16>, vector<128x128xbf16>, vector<8x128xf32> -> vector<8x128xf32>
    %c0_62 = arith.constant 0 : index
    %c0_63 = arith.constant 0 : index
    %168 = vector.load %arg14[%c0_62, %c0_63] : memref<1x128xf32, #tpu.memory_space<vmem>>, vector<1x128xf32>
    %169 = vector.broadcast %168 : vector<1x128xf32> to vector<8x128xf32>
    %170 = arith.addf %167, %169 : vector<8x128xf32>
    %cst_64 = arith.constant 0.000000e+00 : f32
    %171 = vector.broadcast %cst_64 : f32 to vector<8x128xf32>
    %172 = arith.maximumf %170, %171 : vector<8x128xf32>
    %173 = arith.truncf %172 : vector<8x128xf32> to vector<8x128xbf16>
    %c0_65 = arith.constant 0 : index
    %c0_66 = arith.constant 0 : index
    %174 = vector.load %arg15[%c0_65, %c0_66] : memref<128x128xbf16, #tpu.memory_space<vmem>>, vector<128x128xbf16>
    %cst_67 = arith.constant dense<0.000000e+00> : vector<8x128xf32>
    %175 = tpu.matmul %173, %174, %cst_67 {dimension_numbers = #tpu.dot_dimension_numbers<[1], [0], [0], [1], [0, 0, 1, 1], [], []>} : vector<8x128xbf16>, vector<128x128xbf16>, vector<8x128xf32> -> vector<8x128xf32>
    %c0_68 = arith.constant 0 : index
    %c0_69 = arith.constant 0 : index
    %176 = vector.load %arg16[%c0_68, %c0_69] : memref<1x128xf32, #tpu.memory_space<vmem>>, vector<1x128xf32>
    %177 = vector.broadcast %176 : vector<1x128xf32> to vector<8x128xf32>
    %178 = arith.addf %175, %177 : vector<8x128xf32>
    %179 = arith.addf %140, %178 : vector<8x128xf32>
    %180 = arith.truncf %179 : vector<8x128xf32> to vector<8x128xbf16>
    %c0_70 = arith.constant 0 : index
    %c0_71 = arith.constant 0 : index
    %181 = vector.load %arg17[%c0_70, %c0_71] : memref<128x128xbf16, #tpu.memory_space<vmem>>, vector<128x128xbf16>
    %cst_72 = arith.constant dense<0.000000e+00> : vector<8x128xf32>
    %182 = tpu.matmul %180, %181, %cst_72 {dimension_numbers = #tpu.dot_dimension_numbers<[1], [0], [0], [1], [0, 0, 1, 1], [], []>} : vector<8x128xbf16>, vector<128x128xbf16>, vector<8x128xf32> -> vector<8x128xf32>
    %c0_73 = arith.constant 0 : index
    %c0_74 = arith.constant 0 : index
    %183 = vector.load %arg18[%c0_73, %c0_74] : memref<1x128xf32, #tpu.memory_space<vmem>>, vector<1x128xf32>
    %184 = vector.broadcast %183 : vector<1x128xf32> to vector<8x128xf32>
    %185 = arith.addf %182, %184 : vector<8x128xf32>
    %186 = math.tanh %185 : vector<8x128xf32>
    %c0_75 = arith.constant 0 : index
    %c0_76 = arith.constant 0 : index
    %187 = vector.load %arg19[%c0_75, %c0_76] : memref<8x128xf32, #tpu.memory_space<vmem>>, vector<8x128xf32>
    tpu.vector_store %arg19[%c0_75, %c0_76], %186 {strides = array<i32>} : memref<8x128xf32, #tpu.memory_space<vmem>>, vector<8x128xf32>,
    return
  }
  func.func @transform_0(%arg0: i32) -> (i32, i32) {
    %c0_i32 = arith.constant 0 : i32
    %c0_i32_0 = arith.constant 0 : i32
    return %arg0, %c0_i32 : i32, i32
  }
  func.func @transform_1(%arg0: i32) -> (i32, i32, i32) {
    %c0_i32 = arith.constant 0 : i32
    %c0_i32_0 = arith.constant 0 : i32
    %c0_i32_1 = arith.constant 0 : i32
    return %arg0, %c0_i32, %c0_i32_0 : i32, i32, i32
  }
  func.func @transform_2(%arg0: i32) -> (i32, i32) {
    %c0_i32 = arith.constant 0 : i32
    %c0_i32_0 = arith.constant 0 : i32
    %c0_i32_1 = arith.constant 0 : i32
    return %c0_i32, %c0_i32_0 : i32, i32
  }
  func.func @transform_3(%arg0: i32) -> (i32, i32) {
    %c0_i32 = arith.constant 0 : i32
    %c0_i32_0 = arith.constant 0 : i32
    %c0_i32_1 = arith.constant 0 : i32
    return %c0_i32, %c0_i32_0 : i32, i32
  }
  func.func @transform_4(%arg0: i32) -> (i32, i32) {
    %c0_i32 = arith.constant 0 : i32
    %c0_i32_0 = arith.constant 0 : i32
    %c0_i32_1 = arith.constant 0 : i32
    return %c0_i32, %c0_i32_0 : i32, i32
  }
  func.func @transform_5(%arg0: i32) -> (i32, i32) {
    %c0_i32 = arith.constant 0 : i32
    %c0_i32_0 = arith.constant 0 : i32
    %c0_i32_1 = arith.constant 0 : i32
    return %c0_i32, %c0_i32_0 : i32, i32
  }
  func.func @transform_6(%arg0: i32) -> (i32, i32) {
    %c0_i32 = arith.constant 0 : i32
    %c0_i32_0 = arith.constant 0 : i32
    %c0_i32_1 = arith.constant 0 : i32
    return %c0_i32, %c0_i32_0 : i32, i32
  }
  func.func @transform_7(%arg0: i32) -> (i32, i32) {
    %c0_i32 = arith.constant 0 : i32
    %c0_i32_0 = arith.constant 0 : i32
    %c0_i32_1 = arith.constant 0 : i32
    return %c0_i32, %c0_i32_0 : i32, i32
  }
  func.func @transform_8(%arg0: i32) -> (i32, i32) {
    %c0_i32 = arith.constant 0 : i32
    %c0_i32_0 = arith.constant 0 : i32
    %c0_i32_1 = arith.constant 0 : i32
    return %c0_i32, %c0_i32_0 : i32, i32
  }
  func.func @transform_9(%arg0: i32) -> (i32, i32) {
    %c0_i32 = arith.constant 0 : i32
    %c0_i32_0 = arith.constant 0 : i32
    %c0_i32_1 = arith.constant 0 : i32
    return %c0_i32, %c0_i32_0 : i32, i32
  }
  func.func @transform_10(%arg0: i32) -> (i32, i32) {
    %c0_i32 = arith.constant 0 : i32
    %c0_i32_0 = arith.constant 0 : i32
    %c0_i32_1 = arith.constant 0 : i32
    return %c0_i32, %c0_i32_0 : i32, i32
  }
  func.func @transform_11(%arg0: i32) -> (i32, i32) {
    %c0_i32 = arith.constant 0 : i32
    %c0_i32_0 = arith.constant 0 : i32
    %c0_i32_1 = arith.constant 0 : i32
    return %c0_i32, %c0_i32_0 : i32, i32
  }
  func.func @transform_12(%arg0: i32) -> (i32, i32) {
    %c0_i32 = arith.constant 0 : i32
    %c0_i32_0 = arith.constant 0 : i32
    %c0_i32_1 = arith.constant 0 : i32
    return %c0_i32, %c0_i32_0 : i32, i32
  }
  func.func @transform_13(%arg0: i32) -> (i32, i32) {
    %c0_i32 = arith.constant 0 : i32
    %c0_i32_0 = arith.constant 0 : i32
    %c0_i32_1 = arith.constant 0 : i32
    return %c0_i32, %c0_i32_0 : i32, i32
  }
  func.func @transform_14(%arg0: i32) -> (i32, i32) {
    %c0_i32 = arith.constant 0 : i32
    %c0_i32_0 = arith.constant 0 : i32
    %c0_i32_1 = arith.constant 0 : i32
    return %c0_i32, %c0_i32_0 : i32, i32
  }
  func.func @transform_15(%arg0: i32) -> (i32, i32) {
    %c0_i32 = arith.constant 0 : i32
    %c0_i32_0 = arith.constant 0 : i32
    %c0_i32_1 = arith.constant 0 : i32
    return %c0_i32, %c0_i32_0 : i32, i32
  }
  func.func @transform_16(%arg0: i32) -> (i32, i32) {
    %c0_i32 = arith.constant 0 : i32
    %c0_i32_0 = arith.constant 0 : i32
    %c0_i32_1 = arith.constant 0 : i32
    return %c0_i32, %c0_i32_0 : i32, i32
  }
  func.func @transform_17(%arg0: i32) -> (i32, i32) {
    %c0_i32 = arith.constant 0 : i32
    %c0_i32_0 = arith.constant 0 : i32
    %c0_i32_1 = arith.constant 0 : i32
    return %c0_i32, %c0_i32_0 : i32, i32
  }
  func.func @transform_18(%arg0: i32) -> (i32, i32) {
    %c0_i32 = arith.constant 0 : i32
    %c0_i32_0 = arith.constant 0 : i32
    return %arg0, %c0_i32 : i32, i32
  }
}

</mosaic_0001>

<bundles_post_ra>
// kernel: tpu_custom_call.1
= control target key start
LH: loop header
LB: loop body
LE: loop exit
PB: predicated region body
PF: predicated region fallthrough
CT: control target
= control target key end

     0   :  { %s3627_s0 = inlined_call_operand.hbm [shape: bf16[16,128], index: 0, kind: input, shape index: {}]   ;;  %s3628_s1 = inlined_call_operand.hbm [shape: f32[2,1,8], index: 1, kind: input, shape index: {}]   ;;  %s3629_s2 = inlined_call_operand.vmem [shape: bf16[128,128], index: 2, kind: input, shape index: {}]   ;;  %s3630_s3 = inlined_call_operand.hbm [shape: f32[1,128], index: 3, kind: input, shape index: {}]   ;;  %s3631_s4 = inlined_call_operand.hbm [shape: f32[1,128], index: 4, kind: input, shape index: {}]   ;;  %s3632_s5 = inlined_call_operand.hbm [shape: f32[1,128], index: 5, kind: input, shape index: {}]   ;;  %s3633_s6 = inlined_call_operand.vmem [shape: bf16[128,96], index: 6, kind: input, shape index: {}]   ;;  %s3634_s7 = inlined_call_operand.hbm [shape: f32[1,96], index: 7, kind: input, shape index: {}]   ;;  %s3635_s8 = inlined_call_operand.hbm [shape: bf16[32,128], index: 8, kind: input, shape index: {}]   ;;  %s3636_s9 = inlined_call_operand.hbm [shape: f32[1,128], index: 9, kind: input, shape index: {}]   ;;  %s3637_s10 = inlined_call_operand.vmem [shape: f32[1,128], index: 10, kind: input, shape index: {}]   ;;  %s3638_s11 = inlined_call_operand.vmem [shape: f32[1,128], index: 11, kind: input, shape index: {}]   ;;  %s3639_s12 = inlined_call_operand.vmem [shape: bf16[128,128], index: 12, kind: input, shape index: {}]   ;;  %s3640_s13 = inlined_call_operand.vmem [shape: f32[1,128], index: 13, kind: input, shape index: {}]   ;;  %s3641_s14 = inlined_call_operand.hbm [shape: bf16[128,128], index: 14, kind: input, shape index: {}]   ;;  %s3642_s15 = inlined_call_operand.vmem [shape: f32[1,128], index: 15, kind: input, shape index: {}]   ;;  %s3643_s16 = inlined_call_operand.hbm [shape: bf16[128,128], index: 16, kind: input, shape index: {}]   ;;  %s3644_s17 = inlined_call_operand.vmem [shape: f32[1,128], index: 17, kind: input, shape index: {}]   ;;  %s3645_s18 = inlined_call_operand.hbm [shape: f32[16,128], index: 18, kind: output, shape index: {}]  }
   0x1   :  { %3658 = sst [smem:[#allocation32_spill]] %s3627_s0 }
   0x2   :  { %3659 = sst [smem:[#allocation33_spill]] %s3628_s1 }
   0x3   :  { %3660 = sst [smem:[#allocation34_spill]] %s3629_s2 }
   0x4   :  { %3661 = sst [smem:[#allocation35_spill]] %s3630_s3 }
   0x5   :  { %3662 = sst [smem:[#allocation36_spill]] %s3631_s4 }
   0x6   :  { %3663 = sst [smem:[#allocation37_spill]] %s3632_s5 }
   0x7   :  { %3664 = sst [smem:[#allocation38_spill]] %s3634_s7 }
   0x8   :  { %3665 = sst [smem:[#allocation39_spill]] %s3635_s8 }
   0x9   :  { %3666 = sst [smem:[#allocation40_spill]] %s3636_s9 }
   0xa   :  { %3667 = sst [smem:[#allocation41_spill]] %s3641_s14 }
   0xb   :  { %3668 = sst [smem:[#allocation42_spill]] %s3643_s16 }
   0xc   :  { %3669 = sst [smem:[#allocation43_spill]] %s3644_s17 }
   0xd   :  { %3670 = sst [smem:[#allocation44_spill]] %s3645_s18 }
   0xe   :  { %23 = vsyncpa [#allocation4], 0 }
   0xf   :  { %25 = vsyncpa [#allocation4 + $0x1], 0 }
  0x10   :  { %26 = vsyncpa [#allocation7], 0 }
  0x11   :  { %28 = vsyncpa [#allocation7 + $0x1], 0 }
  0x12   :  { %29 = vsyncpa [#allocation10], 0 }
  0x13   :  { %30 = vsyncpa [#allocation13], 0 }
  0x14   :  { %31 = vsyncpa [#allocation16], 0 }
  0x15   :  { %32 = vsyncpa [#allocation19], 0 }
  0x16   :  { %33 = vsyncpa [#allocation5], 0 }
  0x17   :  { %35 = vsyncpa [#allocation5 + $0x1], 0  ;;  %s3091_s27 = smov 0   ;;  %s3093_s28 = smov 0  }
  0x18   :  { %s3095_s29 = smov 0   ;;  %s3097_s30 = smov 0  }
  0x19 LB: > { %3671 = sst [smem:[#allocation29_spill]] %s2961_s29  ;;  %s2967_s0 = smov [#allocation8]   ;;  %s2965_s30 = sphi %s3097_s30, %s3712_s30   ;;  %s2961_s29 = sphi %s3095_s29, %s3714_s29   ;;  %s2957_s28 = sphi %s3093_s28, %s3716_s28   ;;  %s2953_s27 = sphi %s3091_s27, %s3715_s27  }
  0x1a   : > { %s476_s19 = sshll.u32 %s2967_s0, 4  ;;  %s3112_s1 = sadd.s32 4294967295, %s2965_s30   ;;  %s477_s19 = int_to_ptr.vmem [resolvable:$true] %s476_s19 }
  0x1b   : > { %p2083_p0 = scmp.ge.s32.totalorder %s2965_s30, 1  ;;  %p3650_p1 = scmp.eq.s32.totalorder %s3112_s1, 0 }
  0x1c   : > { %p460_p2 = scmp.lt.s32.totalorder %s2965_s30, 3  ;;  %s2968_s21 = smov [#allocation9]  }
  0x1d   : > { %s487_s22 = sshll.u32 %s2968_s21, 4  ;;  %s2969_s2 = smov [#allocation12]   ;;  %s3124_s22 = int_to_ptr.vmem [resolvable:$true] %s487_s22 }
  0x1e   : > { %p3117_p3 = pnand %p2083_p0, %p460_p2  ;;  %s512_s23 = sshll.u32 %s2969_s2, 4  ;;  %s3132_s23 = int_to_ptr.vmem [resolvable:$true] %s512_s23 }
  0x1f   : > { %s2970_s25 = smov [#allocation15]   ;;  %s2624_s21 = scalar_lea.vmem %s477_s19, 16 }
  0x20   : > { %s3672_s20 = scalar_select %p3117_p3, 1, 0 }
  0x21   : > { %p2437_p5 = pneg %p3117_p3  ;;  %s3134_s26 = sshll.u32 %s2970_s25, 4  ;;  %s537_s26 = int_to_ptr.vmem [resolvable:$true] %s3134_s26 }
  0x22   : > { %p2625_p8 = scmp.ne.s32.totalorder %s477_s19, %s2624_s21  ;;  %s2631_s2 = scalar_lea.vmem %s477_s19, 32 }
  0x23   : > { %p3128_p6 = pnand %p2437_p5, %p3650_p1  ;;  %p2632_p11 = scmp.lt.s32.totalorder %s477_s19, %s477_s19 }
  0x24   : > { %p2633_p12 = scmp.lt.s32.totalorder %s2631_s2, %s2624_s21 }
  0x25   : > { %p3138_p7 = pneg %p3128_p6 }
  0x26   : > { %p2634_p13 = por %p2633_p12, %p2632_p11 }
  0x27   : > { %p2627_p9 = pnand %p2625_p8, %p3138_p7 }
  0x29   : > { %p2628_p10 = pneg %p2627_p9 }
  0x2b   : > { %p2635_p0 = pnand %p2634_p13, %p2628_p10 }
  0x2d   : > { %2638 = shalt.err (!%p2635_p0)
}
  0x2e   : > { %s3675_s3 = sld [smem:[#allocation35_spill]]  ;;  %s2650_s17 = scalar_lea.vmem %s3124_s22, 16 }
  0x2f   : > { %p2651_p2 = scmp.ne.s32.totalorder %s3124_s22, %s2650_s17  ;;  %s2657_s21 = scalar_lea.vmem %s3124_s22, 32 }
  0x30   : > { %p2658_p9 = scmp.lt.s32.totalorder %s3124_s22, %s3124_s22  ;;  %p2659_p10 = scmp.lt.s32.totalorder %s2657_s21, %s2650_s17 }
  0x31   : > { %p2653_p5 = pnand %p2651_p2, %p3138_p7 }
  0x32   : > { %p2660_p11 = por %p2659_p10, %p2658_p9 }
  0x33   : > { %p2654_p8 = pneg %p2653_p5 }
  0x34   : > { %2440 = dma.hbm_to_vmem [thread:$0]  (!%p3128_p6), %s3675_s3, 16, %s477_s19, [#allocation7]  }
  0x35   : > { %p2661_p12 = pnand %p2660_p11, %p2654_p8 }
  0x37   : > { %2664 = shalt.err (!%p2661_p12)
}
  0x38   : > { %s3676_s4 = sld [smem:[#allocation36_spill]]  ;;  %s2676_s19 = scalar_lea.vmem %s3132_s23, 16 }
  0x39   : > { %p2677_p13 = scmp.ne.s32.totalorder %s3132_s23, %s2676_s19  ;;  %s2683_s17 = scalar_lea.vmem %s3132_s23, 32 }
  0x3a   : > { %p2684_p5 = scmp.lt.s32.totalorder %s3132_s23, %s3132_s23  ;;  %p2685_p8 = scmp.lt.s32.totalorder %s2683_s17, %s2676_s19 }
  0x3b   : > { %p2679_p0 = pnand %p2677_p13, %p3138_p7 }
  0x3c   : > { %p2686_p9 = por %p2685_p8, %p2684_p5 }
  0x3d   : > { %p2680_p2 = pneg %p2679_p0 }
  0x3e   : > { %2443 = dma.hbm_to_vmem [thread:$0]  (!%p3128_p6), %s3676_s4, 16, %s3124_s22, [#allocation10]  }
  0x3f   : > { %p2687_p10 = pnand %p2686_p9, %p2680_p2 }
  0x41   : > { %2690 = shalt.err (!%p2687_p10)
}
  0x42   : > { %s3677_s7 = sld [smem:[#allocation38_spill]]  ;;  %s2971_s22 = smov [#allocation11]  }
  0x43   : > { %s498_s18 = sshll.u32 %s2971_s22, 4  ;;  %s2702_s2 = scalar_lea.vmem %s537_s26, 16  ;;  %s499_s18 = int_to_ptr.vmem [resolvable:$true] %s498_s18 }
  0x44   : > { %p2703_p11 = scmp.ne.s32.totalorder %s537_s26, %s2702_s2  ;;  %s2709_s19 = scalar_lea.vmem %s537_s26, 32 }
  0x45   : > { %p2710_p0 = scmp.lt.s32.totalorder %s537_s26, %s537_s26  ;;  %p2711_p2 = scmp.lt.s32.totalorder %s2709_s19, %s2702_s2 }
  0x46   : > { %p2705_p12 = pnand %p2703_p11, %p3138_p7 }
  0x47   : > { %p2712_p5 = por %p2711_p2, %p2710_p0 }
  0x48   : > { %2449 = dma.hbm_to_vmem [thread:$0]  (!%p3128_p6), %s3677_s7, 16, %s3132_s23, [#allocation13]  }
  0x49   : > { %p2706_p13 = pneg %p2705_p12 }
  0x4b   : > { %p2713_p8 = pnand %p2712_p5, %p2706_p13 }
  0x4d   : > { %2716 = shalt.err (!%p2713_p8)
}
  0x4e   : > { %s3678_s9 = sld [smem:[#allocation40_spill]]  ;;  %s2728_s23 = scalar_lea.vmem %s499_s18, 16 }
  0x4f   : > { %p2729_p9 = scmp.ne.s32.totalorder %s499_s18, %s2728_s23  ;;  %s2735_s21 = scalar_lea.vmem %s499_s18, 32 }
  0x50   : > { %p2736_p12 = scmp.lt.s32.totalorder %s499_s18, %s499_s18  ;;  %p2737_p4 = scmp.lt.s32.totalorder %s2735_s21, %s2728_s23 }
  0x51   : > { %p2731_p10 = pnand %p2729_p9, %p3138_p7 }
  0x52   : > { %p2738_p1 = por %p2737_p4, %p2736_p12 }
  0x53   : > { %p2732_p11 = pneg %p2731_p10 }
  0x54   : > { %2455 = dma.hbm_to_vmem [thread:$0]  (!%p3128_p6), %s3678_s9, 16, %s537_s26, [#allocation16]  }
  0x55   : > { %p2739_p0 = pnand %p2738_p1, %p2732_p11 }
  0x57   : > { %2742 = shalt.err (!%p2739_p0)
}
  0x58   : > { %s3679_s5 = sld [smem:[#allocation37_spill]]  ;;  %s2972_s26 = smov [#allocation14]  }
  0x59   : > { %s522_s19 = sshll.u32 %s2972_s26, 4  ;;  %s523_s19 = int_to_ptr.vmem [resolvable:$true] %s522_s19 }
  0x5a   : > { %s2754_s17 = scalar_lea.vmem %s523_s19, 256  ;;  %p2762_p8 = scmp.lt.s32.totalorder %s523_s19, %s523_s19 }
  0x5b   : > { %p2755_p13 = scmp.ne.s32.totalorder %s523_s19, %s2754_s17  ;;  %p2763_p9 = scmp.lt.s32.totalorder %s2754_s17, %s2754_s17 }
  0x5d   : > { %p2757_p2 = pnand %p2755_p13, %p3138_p7  ;;  %p2764_p4 = por %p2763_p9, %p2762_p8 }
  0x5e   : > { %2446 = dma.hbm_to_vmem [thread:$0]  (!%p3128_p6), %s3679_s5, 16, %s499_s18, [#allocation10]  }
  0x5f   : > { %p2758_p5 = pneg %p2757_p2 }
  0x61   : > { %p2765_p1 = pnand %p2764_p4, %p2758_p5 }
  0x63   : > { %2768 = shalt.err (!%p2765_p1)
}
  0x64   : > { %s2973_s25 = smov 64   ;;  %s2974_s23 = smov 4  }
  0x65   : > { %s3680_s8 = sld [smem:[#allocation39_spill]]  ;;  %s2975_s22 = smov [#allocation17]  }
  0x66   : > { %s558_s2 = sshll.u32 %s2975_s22, 4  ;;  %s2976_s26 = smov [#allocation18]   ;;  %s559_s2 = int_to_ptr.vmem [resolvable:$true] %s558_s2 }
  0x67   : > { %s574_s3 = sshll.u32 %s2976_s26, 4  ;;  %s2780_s17 = scalar_lea.vmem %s559_s2, 1024  ;;  %s575_s3 = int_to_ptr.vmem [resolvable:$true] %s574_s3 }
  0x68   : > { %p2781_p10 = scmp.ne.s32.totalorder %s559_s2, %s2780_s17  ;;  %p2788_p0 = scmp.lt.s32.totalorder %s559_s2, %s559_s2 }
  0x69   : > { %p2789_p13 = scmp.lt.s32.totalorder %s2780_s17, %s2780_s17 }
  0x6a   : > { %p2783_p11 = pnand %p2781_p10, %p3138_p7 }
  0x6b   : > { %2452 = dma.hbm_to_vmem [thread:$0]  (!%p3128_p6), %s3680_s8, 256, %s523_s19, [#allocation13], %s2973_s25, %s2973_s25, %s2974_s23  }
  0x6c   : > { %p2784_p12 = pneg %p2783_p11  ;;  %p2790_p2 = por %p2789_p13, %p2788_p0 }
  0x6e   : > { %p2791_p5 = pnand %p2790_p2, %p2784_p12 }
  0x70   : > { %2794 = shalt.err (!%p2791_p5)
}
  0x71   : > { %s3681_s14 = sld [smem:[#allocation41_spill]]  ;;  %s2806_s21 = scalar_lea.vmem %s575_s3, 1024 }
  0x72   : > { %p2807_p8 = scmp.ne.s32.totalorder %s575_s3, %s2806_s21  ;;  %p2814_p1 = scmp.lt.s32.totalorder %s575_s3, %s575_s3 }
  0x73   : > { %p2815_p10 = scmp.lt.s32.totalorder %s2806_s21, %s2806_s21 }
  0x74   : > { %p2809_p9 = pnand %p2807_p8, %p3138_p7 }
  0x75   : > { %p2816_p11 = por %p2815_p10, %p2814_p1 }
  0x76   : > { %p2810_p4 = pneg %p2809_p9 }
  0x77   : > { %2458 = dma.hbm_to_vmem [thread:$0]  (!%p3128_p6), %s3681_s14, 1024, %s559_s2, [#allocation16], %s2973_s25, %s2973_s25, %s2974_s23  }
  0x78   : > { %p2817_p12 = pnand %p2816_p11, %p2810_p4 }
  0x7a   : > { %2820 = shalt.err (!%p2817_p12)
}
  0x7b   : > { %s3682_s16 = sld [smem:[#allocation42_spill]]  ;;  %s2082_s24 = sadd.s32 4294967294, %s2965_s30  }
  0x7c   : > { %s3222_s0 = sadd.s32 1, %s2965_s30   ;;  %s48_s17 = sadd.s32 1, %s2961_s29 }
  0x7d   : > { %3683 = sst [smem:[#allocation30_spill]] %s3222_s0  ;;  %s45_s2 = ssub.s32 %s2965_s30, %s3222_s0 }
  0x7e   : > { %p46_p7 = scmp.eq.s32.totalorder %s45_s2, 0  ;;  %p55_p0 = scmp.ne.s32.totalorder %s2961_s29, %s2957_s28 }
  0x7f   : > { %p56_p13 = scmp.eq.s32.totalorder %s2965_s30, 0  ;;  %p61_p2 = scmp.ne.s32.totalorder %s2957_s28, %s2953_s27 }
  0x80   : > { %s3233_s19 = scalar_select %p46_p7, %s2961_s29, %s48_s17  }
  0x81   : > { %2461 = dma.hbm_to_vmem [thread:$0]  (!%p3128_p6), %s3682_s16, 1024, %s575_s3, [#allocation19], %s2973_s25, %s2973_s25, %s2974_s23  }
  0x82   : > { %3684 = sst [smem:[#allocation31_spill]] %s3233_s19  ;;  %p3235_p5 = por %p56_p13, %p55_p0 }
  0x83   : > { %p3686_p8 = scmp.eq.s32.totalorder %s3112_s1, 0  ;;  %p447_p9 = scmp.eq.s32.totalorder %s3112_s1, 1 }
  0x84   : > { %p453_p4 = scmp.eq.s32.totalorder %s2082_s24, 1  ;;  %p2481_p1 = scmp.lt.s32.totalorder %s2965_s30, 2 }
  0x85   : > { %p3241_p6 = por %p3686_p8, %p61_p2  ;;  %s3248_s25 = sand.u32 1, %s2961_s29  }
  0x86   : > { %p3250_p10 = por %p447_p9, %p55_p0  ;;  %p3254_p11 = por %p453_p4, %p61_p2 }
  0x87   : > { %s3687_s3 = scalar_select %p3241_p6, 1, 0 }
  0x88   : > { %s3688_s23 = scalar_select %p3250_p10, 1, 0 }
  0x89   : > { %s3689_s21 = scalar_select %p3254_p11, 1, 0 }
  0x8a   : > { %s2093_s22 = sshll.u32 %s3248_s25, 2  ;;  %s2094_s26 = sshll.u32 %s2965_s30, 6 }
  0x8b   : > { %s3690_s4 = sld [smem:[#allocation32_spill]]  ;;  %s595_s24 = scalar_lea.vmem [#allocation3], %s2093_s22 }
  0x8c   : > { %s602_s7 = sshll.u32 %s595_s24, 4  ;;  %p3269_p12 = pnand %p2481_p1, %p3235_p5  ;;  %s3265_s7 = int_to_ptr.vmem [resolvable:$true] %s602_s7 }
  0x8d   : > { %s592_s14 = scalar_lea.sflag [#allocation4], %s3248_s25 }
  0x8e   : > { %p2823_p0 = pneg %p3269_p12 }
  0x91   : > { %s3263_s5 = scalar_lea.hbm %s3690_s4, %s2094_s26  ;;  %s2826_s18 = scalar_lea.hbm %s3690_s4, 128 }
  0x92   : > { %s2821_s16 = scalar_lea.hbm %s3263_s5, 64  ;;  %p2827_p5 = scmp.lt.s32.totalorder %s3263_s5, %s3690_s4 }
  0x93   : > { %p2822_p7 = scmp.ne.s32.totalorder %s3263_s5, %s2821_s16  ;;  %p2828_p8 = scmp.lt.s32.totalorder %s2826_s18, %s2821_s16 }
  0x95   : > { %p2824_p13 = pnand %p2823_p0, %p2822_p7  ;;  %p2829_p9 = por %p2828_p8, %p2827_p5 }
  0x97   : > { %p2825_p2 = pneg %p2824_p13 }
  0x99   : > { %p2830_p4 = pnand %p2829_p9, %p2825_p2 }
  0x9b   : > { %2833 = shalt.err (!%p2830_p4)
}
  0x9c   : > { %s2834_s24 = scalar_lea.vmem %s3265_s7, 64  ;;  %s2977_s22 = smov [#allocation3]  }
  0x9d   : > { %p2835_p1 = scmp.ne.s32.totalorder %s3265_s7, %s2834_s24  ;;  %s2839_s26 = sshll.u32 %s2977_s22, 4  ;;  %s2840_s26 = int_to_ptr.vmem [resolvable:$false] %s2839_s26 }
  0x9e   : > { %s2841_s9 = scalar_lea.vmem %s2840_s26, 128  ;;  %p2842_p11 = scmp.lt.s32.totalorder %s3265_s7, %s2840_s26 }
  0x9f   : > { %p2837_p7 = pnand %p2835_p1, %p2823_p0  ;;  %p2843_p10 = scmp.lt.s32.totalorder %s2841_s9, %s2834_s24 }
  0xa1   : > { %p2838_p13 = pneg %p2837_p7  ;;  %p2844_p6 = por %p2843_p10, %p2842_p11 }
  0xa3   : > { %p2845_p5 = pnand %p2844_p6, %p2838_p13 }
  0xa5   : > { %2848 = shalt.err (!%p2845_p5)
}
  0xa6   : > { %2465 = dma.hbm_to_vmem [thread:$0]  (!%p3269_p12), %s3263_s5, 64, %s3265_s7, %s592_s14  }
  0xa7   : > { %s2095_s16 = sshll.u32 %s2965_s30, 4  ;;  %s612_s18 = scalar_lea.vmem [#allocation6], %s3248_s25 }
  0xa8   : > { %s619_s2 = sshll.u32 %s612_s18, 4  ;;  %s3692_s4 = sld [smem:[#allocation33_spill]]  ;;  %s620_s2 = int_to_ptr.vmem [resolvable:$true] %s619_s2 }
  0xa9   : > { %s3693_s9 = sand.u32 1, %s2965_s30  }
  0xaa   : > { %s610_s24 = scalar_lea.sflag [#allocation7], %s3693_s9 }
  0xae   : > { %s617_s26 = scalar_lea.hbm %s3692_s4, %s2095_s16  ;;  %s2854_s5 = scalar_lea.hbm %s3692_s4, 32 }
  0xaf   : > { %s2849_s19 = scalar_lea.hbm %s617_s26, 16  ;;  %p2855_p2 = scmp.lt.s32.totalorder %s617_s26, %s3692_s4 }
  0xb0   : > { %p2850_p6 = scmp.ne.s32.totalorder %s617_s26, %s2849_s19  ;;  %p2856_p8 = scmp.lt.s32.totalorder %s2854_s5, %s2849_s19 }
  0xb2   : > { %p2852_p10 = pnand %p2850_p6, %p2823_p0  ;;  %p2857_p9 = por %p2856_p8, %p2855_p2 }
  0xb4   : > { %p2853_p11 = pneg %p2852_p10 }
  0xb6   : > { %p2858_p4 = pnand %p2857_p9, %p2853_p11 }
  0xb8   : > { %2861 = shalt.err (!%p2858_p4)
}
  0xb9   : > { %s2862_s25 = scalar_lea.vmem %s620_s2, 16  ;;  %s2978_s16 = smov [#allocation6]  }
  0xba   : > { %p2863_p1 = scmp.ne.s32.totalorder %s620_s2, %s2862_s25  ;;  %s2867_s18 = sshll.u32 %s2978_s16, 4  ;;  %s2868_s18 = int_to_ptr.vmem [resolvable:$false] %s2867_s18 }
  0xbb   : > { %s2869_s29 = scalar_lea.vmem %s2868_s18, 32  ;;  %p2870_p5 = scmp.lt.s32.totalorder %s620_s2, %s2868_s18 }
  0xbc   : > { %p2865_p7 = pnand %p2863_p1, %p2823_p0  ;;  %p2871_p6 = scmp.lt.s32.totalorder %s2869_s29, %s2862_s25 }
  0xbe   : > { %p2866_p13 = pneg %p2865_p7  ;;  %p2872_p10 = por %p2871_p6, %p2870_p5 }
  0xc0   : > { %p2873_p3 = pnand %p2872_p10, %p2866_p13 }
  0xc2   : > { %2876 = shalt.err (!%p2873_p3)
}
  0xc3   : > { %2468 = dma.hbm_to_vmem [thread:$0]  (!%p3269_p12), %s617_s26, 16, %s620_s2, %s610_s24  }
  0xc4   : > { %p3694_p11 = scmp.ne.s32.totalorder %s3672_s20, 0 }
  0xc5   : > { %s3323_s0 = sand.u32 (!%p3694_p11), 1, %s2957_s28   ;;  %p3695_p0 = scmp.ne.s32.totalorder (!%p3694_p11), %s3687_s3, 0 }
  0xc6   : > { %628 = sbr.rel (%p3694_p11) target bundleno = 3290 (0xcda), region = 92  ;;  %s2097_s19 = sshll.u32 (!%p3694_p11), %s3323_s0, 2 }
  0xc7   : > { %s631_s17 = scalar_lea.sflag (!%p3694_p11), [#allocation4], %s3323_s0  ;;  %s3327_s22 = scalar_lea.vmem (!%p3694_p11), [#allocation3], %s2097_s19 }
  0xcb   : > { %2920 = dma.done.wait (%p3695_p0), %s631_s17, 64  }
  0xcc   : > { %2922 = vsyncadd (%p3695_p0), %s631_s17, 4294967232  ;;  %s639_s8 = sand.u32 1, %s3112_s1   ;;  %s642_s2 = scalar_lea.vmem [#allocation6], %s3323_s0 }
  0xcd   : > { %s640_s20 = scalar_lea.sflag [#allocation7], %s639_s8 }
  0xce   : > { %2924 = dma.done.wait (%p3695_p0), %s640_s20, 16  }
  0xcf   : > { %2926 = vsyncadd (%p3695_p0), %s640_s20, 4294967280  ;;  %p3696_p3 = scmp.eq.s32.totalorder %s3112_s1, 0 }
  0xd1   : > { %2928 = dma.done.wait (%p3696_p3), [#allocation7], 16   ;;  %p3697_p12 = pmov %p3696_p3 }
  0xd2   : > { %p3698_p2 = pmov %p3696_p3 }
  0xd3   : > { %2930 = vsyncadd (%p3697_p12), [#allocation7], 4294967280 }
  0xd4   : > { %2932 = dma.done.wait (%p3698_p2), [#allocation10], 32   ;;  %p3699_p8 = pmov %p3698_p2 }
  0xd5   : > { %p3700_p9 = pmov %p3698_p2 }
  0xd6   : > { %2934 = vsyncadd (%p3699_p8), [#allocation10], 4294967264 }
  0xd7   : > { %2936 = dma.done.wait (%p3700_p9), [#allocation13], 272   ;;  %p3701_p4 = pmov %p3698_p2 }
  0xd8   : > { %p3702_p1 = pmov %p3698_p2 }
  0xd9   : > { %2938 = vsyncadd (%p3701_p4), [#allocation13], 4294967024 }
  0xda   : > { %2940 = dma.done.wait (%p3702_p1), [#allocation16], 1040   ;;  %p3703_p7 = pmov %p3702_p1 }
  0xdb   : > { %p3704_p13 = pmov %p3702_p1 }
  0xdc   : > { %2942 = vsyncadd (%p3703_p7), [#allocation16], 4294966256 }
  0xdd   : > { %2944 = dma.done.wait (%p3704_p13), [#allocation19], 1024   ;;  %p3705_p5 = pmov %p3702_p1 }
  0xde   : > { %v2979_v0 = vmov 0.0   ;;  %vm2980_vm0 = vmmov 0   ;;  %s3706_s9 = sld [smem:[#allocation34_spill]]  ;;  %v732_v9 = vld [vmem:[%s3327_s22] sm:$0xf]  ;;  %v2557_v17 = vld [vmem:[%s3633_s6 + $0x38] sm:$0xff]  }
  0xdf   : > { %2946 = vsyncadd (%p3705_p5), [#allocation19], 4294966272  ;;  %2243 = vmatprep.subr.bf16.mxu0 %v2979_v0  ;;  %2259 = vmatprep.mubr.msk.bf16.mxu0 %vm2980_vm0, %v2979_v0  ;;  %v2107_v10 = vld [vmem:[#allocation8] ss:$0 sm:$0xff]  ;;  %v2558_v18 = vld [vmem:[%s3633_s6 + $0x30] sm:$0xff]   ;;  %s2981_s24 = smov 64  }
  0xe0   : > { %2263 = vmatprep.subr.bf16.mxu1 %v2979_v0  ;;  %2279 = vmatprep.mubr.msk.bf16.mxu1 %vm2980_vm0, %v2979_v0  ;;  %v2559_v19 = vld [vmem:[%s3633_s6 + $0x28] sm:$0xff]   ;;  %v2560_v20 = vld [vmem:[%s3633_s6 + $0x20] sm:$0xff]   ;;  %v2561_v21 = vld [vmem:[%s3633_s6 + $0x18] sm:$0xff]   ;;  %s2982_s5 = smov 96   ;;  %vm996_vm1 = vcmask 64512   ;;  %vm1060_vm2 = vcmask 1043456  }
  0xe1   : > { %2264 = vmatpush3.bf16.msra.mxu1 %v2557_v17  ;;  %v2562_v22 = vld [vmem:[%s3633_s6 + $0x10] sm:$0xff]   ;;  %v2563_v23 = vld [vmem:[%s3633_s6 + $0x8] sm:$0xff]   ;;  %v2564_v24 = vld [vmem:[%s3633_s6] sm:$0xff]   ;;  %s2983_s7 = smov 80   ;;  %s2985_s14 = smov 120   ;;  %vm1105_vm3 = vcmask 60416  }
  0xe2   : > { %2265 = vmatprep.subr.bf16.mxu1 %v2979_v0  ;;  %v2116_v34 = vld [vmem:[#allocation9] ss:$0 sm:$0xff]  ;;  %v2117_v36 = vld [vmem:[#allocation11] ss:$0 sm:$0xff]  ;;  %v2118_v40 = vld [vmem:[#allocation12] ss:$0 sm:$0xff] }
  0xe3   : > { %v3454_v51 = vld [vmem:[%s642_s2] ss:$0 sm:$0xff]  ;;  %s2984_s2 = smov 88   ;;  %s2986_s25 = smov 112   ;;  %vm1224_vm4 = vcmask 126016   ;;  %vm1343_vm5 = vcmask 191616  }
  0xe4   : > { %v2549_v1 = vld [vmem:[%s3706_s9 + $0x38] sm:$0xff]   ;;  %v2550_v2 = vld [vmem:[%s3706_s9 + $0x30] sm:$0xff]   ;;  %v2551_v3 = vld [vmem:[%s3706_s9 + $0x28] sm:$0xff]   ;;  %s2987_s16 = smov 72   ;;  %s2988_s18 = smov 104   ;;  %vm1462_vm6 = vcmask 257216  }
  0xe5   : > { %2244 = vmatpush3.bf16.msra.mxu0 %v2549_v1  ;;  %v2552_v4 = vld [vmem:[%s3706_s9 + $0x20] sm:$0xff]   ;;  %v2553_v5 = vld [vmem:[%s3706_s9 + $0x18] sm:$0xff]   ;;  %v2554_v6 = vld [vmem:[%s3706_s9 + $0x10] sm:$0xff]   ;;  %2266 = vmatpush3.bf16.msra.mxu1 %v2558_v18  ;;  %s2989_s29 = smov 48   ;;  %s2990_s19 = smov 56   ;;  %vm1488_vm7 = vcmask 261120  }
  0xe6   : > { %2245 = vmatprep.subr.bf16.mxu0 %v2979_v0  ;;  %v2555_v7 = vld [vmem:[%s3706_s9 + $0x8] sm:$0xff]   ;;  %v2556_v8 = vld [vmem:[%s3706_s9] sm:$0xff]   ;;  %2267 = vmatprep.subr.bf16.mxu1 %v2979_v0  ;;  %s2991_s17 = smov 40   ;;  %s2992_s8 = smov 8  }
  0xe7   : > { %s2993_s20 = smov 16   ;;  %s2994_s3 = smov 24  }
  0xe8   : > { %s3708_s22 = sld [smem:[#allocation44_spill]]  ;;  %p3709_p10 = scmp.ne.s32.totalorder %s3688_s23, 0 }
  0xe9   : > { %2246 = vmatpush3.bf16.msra.mxu0 %v2550_v2  ;;  %2268 = vmatpush3.bf16.msra.mxu1 %v2559_v19 }
  0xea   : > { %2247 = vmatprep.subr.bf16.mxu0 %v2979_v0  ;;  %2269 = vmatprep.subr.bf16.mxu1 %v2979_v0 }
  0xed   : > { %2248 = vmatpush3.bf16.msra.mxu0 %v2551_v3  ;;  %2270 = vmatpush3.bf16.msra.mxu1 %v2560_v20 }
  0xee   : > { %2249 = vmatprep.subr.bf16.mxu0 %v2979_v0  ;;  %2271 = vmatprep.subr.bf16.mxu1 %v2979_v0 }
  0xf1   : > { %2250 = vmatpush3.bf16.msra.mxu0 %v2552_v4  ;;  %2272 = vmatpush3.bf16.msra.mxu1 %v2561_v21 }
  0xf2   : > { %2251 = vmatprep.subr.bf16.mxu0 %v2979_v0  ;;  %2273 = vmatprep.subr.bf16.mxu1 %v2979_v0 }
  0xf5   : > { %2252 = vmatpush3.bf16.msra.mxu0 %v2553_v5  ;;  %2274 = vmatpush3.bf16.msra.mxu1 %v2562_v22 }
  0xf6   : > { %2253 = vmatprep.subr.bf16.mxu0 %v2979_v0  ;;  %2275 = vmatprep.subr.bf16.mxu1 %v2979_v0 }
  0xf9   : > { %2254 = vmatpush3.bf16.msra.mxu0 %v2554_v6  ;;  %2276 = vmatpush3.bf16.msra.mxu1 %v2563_v23 }
  0xfa   : > { %2255 = vmatprep.subr.bf16.mxu0 %v2979_v0  ;;  %2277 = vmatprep.subr.bf16.mxu1 %v2979_v0 }
  0xfd   : > { %2256 = vmatpush3.bf16.msra.mxu0 %v2555_v7  ;;  %2278 = vmatpush3.bf16.msra.mxu1 %v2564_v24 }
  0xfe   : > { %2257 = vmatprep.subr.bf16.mxu0 %v2979_v0  ;;  %2301 = vmatprep.subr.bf16.mxu1 %v2979_v0 }
 0x101   : > { %2258 = vmatpush3.bf16.msra.mxu0 %v2556_v8 }
 0x102   : > { %2283 = vmatprep.subr.bf16.mxu0 %v2979_v0 }
 0x104   : > { %2260 = vmatmul.mubr.bf16.vlgmr.msra.gmra.mxu0 %v732_v9 }
 0x105   : > { %2285 = vmatprep.mubr.msk.bf16.mxu0 %vm2980_vm0, %v2979_v0 }
 0x1c4   : > { %v838_v11 = vpop.f32.mrf.mxu0 }
 0x1c5   : > { %v3400_v12 = vadd.f32 %v2107_v10, %v838_v11 }
 0x1c6   : > { %v2261_v13 = vpop.f32.mrf.mxu0 }
 0x1c7   : > { %846 = vadd.xlane.f32.xlu0 %v3400_v12  ;;  %v849_v15 = vmul.f32 %v3400_v12, %v3400_v12 }
 0x1c8   : > { %v841_v14 = vpop.f32.mrf.mxu0 }
 0x1ca   : > { %v2262_v16 = vpop.f32.mrf.mxu0 }
 0x1cb   : > { %850 = vadd.xlane.f32.xlu0 %v849_v15 }
 0x250   : > { %v847_v25 = vpop.xlane.xlu0 %846 }
 0x251   : > { %v848_v26 = vmul.f32 0.03125, %v847_v25 }
 0x253   : > { %v853_v28 = vmul.f32 %v848_v26, %v848_v26  ;;  %v855_v32 = vsub.f32 %v3400_v12, %v848_v26 }
 0x254   : > { %v851_v27 = vpop.xlane.xlu0 %850 }
 0x255   : > { %v852_v29 = vmul.f32 0.03125, %v851_v27 }
 0x257   : > { %v854_v30 = vsub.f32 %v852_v29, %v853_v28 }
 0x259   : > { %v856_v31 = vadd.f32 1e-05, %v854_v30 }
 0x25b   : > { %2591 = vrsqrt.f32 %v856_v31 }
 0x268   : > { %v2592_v33 = vpop.eup %2591 }
 0x269   : > { %v858_v35 = vmul.f32 %v2592_v33, %v855_v32 }
 0x26b   : > { %v865_v37 = vmul.f32 %v2116_v34, %v858_v35 }
 0x26d   : > { %v872_v38 = vadd.f32 %v2117_v36, %v865_v37 }
 0x26f   : > { %v873_v39 = vpack.c.bf16 %v872_v38, %v872_v38 }
 0x271   : > { %2280 = vmatmul.mubr.bf16.vlgmr.msra.gmra.mxu1 %v873_v39 }
 0x272   : > { %2303 = vmatprep.mubr.msk.bf16.mxu1 %vm2980_vm0, %v2979_v0 }
 0x331   : > { %v979_v41 = vpop.f32.mrf.mxu1 }
 0x332   : > { %v980_v42 = vadd.f32 %v2118_v40, %v979_v41 }
 0x333   : > { %v2281_v43 = vpop.f32.mrf.mxu1 }
 0x334   : > { %v3440_v44 = vpack.c.bf16 %v980_v42, %v980_v42 }
 0x335   : > { %v982_v45 = vpop.f32.mrf.mxu1 }
 0x336   : > { %1055 = vrot.lane.b32.xlu0 %v3440_v44, %s2981_s24  ;;  %994 = vrot.lane.b32.xlu1 %v3440_v44, %s2982_s5  ;;  %s1903_s5 = scalar_lea.sflag [#allocation5], %s3323_s0 }
 0x337   : > { %v2282_v46 = vpop.f32.mrf.mxu1 }
 0x3a8   : > { %v995_v47 = vpop.permute.xlu1 %994  ;;  %v1056_v49 = vpop.permute.xlu0 %1055 }
 0x3a9   : > { %v1001_v48 = vsel %vm996_vm1, %v995_v47, 0  ;;  %v1062_v50 = vsel %vm1060_vm2, %v1056_v49, 0 }
 0x3aa   : > { %2284 = vmatpush3.bf16.xpose.msra.mxu0 %v1001_v48 }
 0x3ab   : > { %2289 = vmatprep.subr.bf16.mxu0 %v2979_v0 }
 0x3b1   : > { %2286 = vmatmul.mubr.msk.bf16.vlgmr.msra.gmra.mxu0 %vm996_vm1, %v3440_v44 }
 0x3b2   : > { %2290 = vmatpush3.bf16.msra.mxu0 %v1062_v50  ;;  %2291 = vmatprep.mubr.msk.bf16.mxu0 %vm2980_vm0, %v2979_v0 }
 0x3b3   : > { %2295 = vmatprep.subr.bf16.mxu0 %v2979_v0 }
 0x471   : > { %v1037_v52 = vpop.f32.mrf.mxu0 }
 0x472   : > { %v1038_v53 = vadd.f32 %v3454_v51, %v1037_v52 }
 0x473   : > { %v2287_v54 = vpop.f32.mrf.mxu0 }
 0x474   : > { %v1043_v55 = vsel %vm996_vm1, %v1038_v53, -inf }
 0x475   : > { %1044 = vmax.xlane.f32.xlu1 %v1043_v55  ;;  %v1040_v56 = vpop.f32.mrf.mxu0 }
 0x477   : > { %v2288_v57 = vpop.f32.mrf.mxu0 }
 0x486   : > { %1228 = vrot.lane.b32.xlu1 %v3440_v44, %s2983_s7 }
 0x4fe   : > { %v1045_v58 = vpop.xlane.xlu1 %1044 }
 0x4ff   : > { %v1046_v59 = vsub.f32 %v1038_v53, %v1045_v58 }
 0x501   : > { %v1047_v60 = vmul.f32 1.442695, %v1046_v59 }
 0x502   : > { %v1229_v7 = vpop.permute.xlu1 %1228 }
 0x503   : > { %2593 = vpow2.f32 %v1047_v60  ;;  %v1234_v9 = vsel %vm996_vm1, %v1229_v7, 0 }
 0x510   : > { %v2594_v61 = vpop.eup %2593 }
 0x511   : > { %v1049_v62 = vsel %vm996_vm1, %v2594_v61, 0.0 }
 0x512   : > { %1050 = vadd.xlane.f32.xlu0 %v1049_v62 }
 0x528   : > { %1109 = vrot.lane.b32.xlu0 %v3440_v44, %s2984_s2  ;;  %s2995_s2 = smov [#allocation20]  }
 0x52c   : > { %1107 = vrot.lane.b32.xlu0 %v3440_v44, %s2985_s14  ;;  %s2881_s14 = sshll.u32 %s2995_s2, 4  ;;  %s2882_s14 = int_to_ptr.vmem [resolvable:$false] %s2881_s14 }
 0x530   : > { %1226 = vrot.lane.b32.xlu0 %v3440_v44, %s2986_s25 }
 0x534   : > { %1347 = vrot.lane.b32.xlu0 %v3440_v44, %s2987_s16 }
 0x538   : > { %1345 = vrot.lane.b32.xlu0 %v3440_v44, %s2988_s18 }
 0x59b   : > { %v1051_v63 = vpop.xlane.xlu0 %1050 }
 0x59c   : > { %2595 = vrcp.f32 %v1051_v63 }
 0x59f   : > { %v1110_v2 = vpop.permute.xlu0 %1109 }
 0x5a0   : > { %v1115_v5 = vsel %vm996_vm1, %v1110_v2, 0 }
 0x5a3   : > { %v1108_v6 = vpop.permute.xlu0 %1107 }
 0x5a7   : > { %v1227_v8 = vpop.permute.xlu0 %1226 }
 0x5a9   : > { %v2596_v1 = vpop.eup %2595 }
 0x5aa   : > { %v1053_v3 = vmul.f32 %v2596_v1, %v2594_v61 }
 0x5ab   : > { %v1348_v10 = vpop.permute.xlu0 %1347 }
 0x5ac   : > { %v1054_v4 = vpack.c.bf16 %v1053_v3, %v1053_v3  ;;  %v1353_v11 = vsel %vm996_vm1, %v1348_v10, 0 }
 0x5ae   : > { %2292 = vmatmul.mubr.msk.bf16.vlgmr.msra.gmra.mxu0 %vm996_vm1, %v1054_v4 }
 0x5af   : > { %2296 = vmatpush3.bf16.xpose.msra.mxu0 %v1115_v5  ;;  %2297 = vmatprep.mubr.msk.bf16.mxu0 %vm2980_vm0, %v2979_v0  ;;  %v1346_v13 = vpop.permute.xlu0 %1345 }
 0x5b0   : > { %2307 = vmatprep.subr.bf16.mxu0 %v2979_v0 }
 0x5b6   : > { %2298 = vmatmul.mubr.msk.bf16.vlgmr.msra.gmra.mxu0 %vm996_vm1, %v1108_v6 }
 0x5b7   : > { %2308 = vmatpush3.bf16.xpose.msra.mxu0 %v1234_v9  ;;  %2309 = vmatprep.mubr.msk.bf16.mxu0 %vm2980_vm0, %v2979_v0 }
 0x5b8   : > { %2319 = vmatprep.subr.bf16.mxu0 %v2979_v0 }
 0x5be   : > { %2310 = vmatmul.mubr.msk.bf16.vlgmr.msra.gmra.mxu0 %vm996_vm1, %v1227_v8 }
 0x5bf   : > { %2320 = vmatpush3.bf16.xpose.msra.mxu0 %v1353_v11  ;;  %2321 = vmatprep.mubr.msk.bf16.mxu0 %vm2980_vm0, %v2979_v0 }
 0x5c0   : > { %2331 = vmatprep.subr.bf16.mxu0 %v2979_v0 }
 0x5c6   : > { %2322 = vmatmul.mubr.msk.bf16.vlgmr.msra.gmra.mxu0 %vm996_vm1, %v1346_v13  ;;  %v2565_v13 = vld [vmem:[#allocation14 + $0x8] sm:$0xff]  }
 0x5c7   : > { %2335 = vmatprep.mubr.msk.bf16.mxu0 %vm2980_vm0, %v2979_v0  ;;  %2332 = vmatpush3.bf16.msra.mxu0 %v2565_v13 }
 0x5c8   : > { %2333 = vmatprep.subr.bf16.mxu0 %v2979_v0 }
 0x66e   : > { %v1098_v14 = vpop.f32.mrf.mxu0 }
 0x66f   : > { %v1104_v15 = vpack.c.bf16 %v1098_v14, %v1098_v14 }
 0x670   : > { %v2293_v16 = vpop.f32.mrf.mxu0 }
 0x671   : > { %1106 = vst.msk [vmem:[#allocation2] sm:$0xf] %vm1105_vm3, %v1104_v15  ;;  %v2566_v15 = vld [vmem:[#allocation14] sm:$0xff]  }
 0x672   : > { %v1101_v17 = vpop.f32.mrf.mxu0  ;;  %2334 = vmatpush3.bf16.msra.mxu0 %v2566_v15 }
 0x673   : > { %2359 = vmatprep.subr.bf16.mxu0 %v2979_v0 }
 0x674   : > { %v2294_v18 = vpop.f32.mrf.mxu0 }
 0x676   : > { %v1151_v19 = vpop.f32.mrf.mxu0 }
 0x677   : > { %v1152_v20 = vadd.f32 %v3454_v51, %v1151_v19 }
 0x678   : > { %v2299_v21 = vpop.f32.mrf.mxu0 }
 0x679   : > { %v1157_v22 = vsel %vm996_vm1, %v1152_v20, -inf }
 0x67a   : > { %1158 = vmax.xlane.f32.xlu0 %v1157_v22  ;;  %v1154_v23 = vpop.f32.mrf.mxu0 }
 0x67c   : > { %v2300_v24 = vpop.f32.mrf.mxu0 }
 0x67e   : > { %v1270_v25 = vpop.f32.mrf.mxu0 }
 0x67f   : > { %v1271_v26 = vadd.f32 %v3454_v51, %v1270_v25 }
 0x680   : > { %v2311_v27 = vpop.f32.mrf.mxu0 }
 0x681   : > { %v1276_v28 = vsel %vm996_vm1, %v1271_v26, -inf }
 0x682   : > { %1277 = vmax.xlane.f32.xlu1 %v1276_v28  ;;  %v1273_v29 = vpop.f32.mrf.mxu0 }
 0x683   : > { %v2567_v29 = vld [vmem:[%s3639_s12 + $0x38] sm:$0xff]  }
 0x684   : > { %v2312_v30 = vpop.f32.mrf.mxu0 }
 0x685   : > { %v2139_v30 = vld [vmem:[#allocation15] ss:$0 sm:$0xff] }
 0x686   : > { %v1389_v31 = vpop.f32.mrf.mxu0 }
 0x687   : > { %v1390_v32 = vadd.f32 %v3454_v51, %v1389_v31 }
 0x688   : > { %v2323_v33 = vpop.f32.mrf.mxu0 }
 0x689   : > { %v1395_v34 = vsel %vm996_vm1, %v1390_v32, -inf }
 0x68a   : > { %1396 = vmax.xlane.f32.xlu0 %v1395_v34  ;;  %v1392_v35 = vpop.f32.mrf.mxu0 }
 0x68c   : > { %v2324_v36 = vpop.f32.mrf.mxu0 }
 0x693   : > { %1288 = vrot.lane.b32.xlu1 %v3440_v44, %s2989_s29  ;;  %s3707_s29 = sld [smem:[#allocation43_spill]] }
 0x703   : > { %v1159_v37 = vpop.xlane.xlu0 %1158 }
 0x704   : > { %v1160_v38 = vsub.f32 %v1152_v20, %v1159_v37 }
 0x706   : > { %v1161_v39 = vmul.f32 1.442695, %v1160_v38  ;;  %v2568_v38 = vld [vmem:[%s3639_s12 + $0x30] sm:$0xff]  }
 0x708   : > { %2597 = vpow2.f32 %v1161_v39  ;;  %v2570_v39 = vld [vmem:[%s3639_s12 + $0x20] sm:$0xff]  }
 0x70b   : > { %v1278_v40 = vpop.xlane.xlu1 %1277 }
 0x70c   : > { %v1279_v41 = vsub.f32 %v1271_v26, %v1278_v40  ;;  %v2571_v40 = vld [vmem:[%s3639_s12 + $0x18] sm:$0xff]  }
 0x70e   : > { %v1280_v42 = vmul.f32 1.442695, %v1279_v41  ;;  %v2572_v41 = vld [vmem:[%s3639_s12 + $0x10] sm:$0xff]  }
 0x70f   : > { %v1289_v55 = vpop.permute.xlu1 %1288 }
 0x710   : > { %2599 = vpow2.f32 %v1280_v42  ;;  %v1294_v62 = vsel %vm1060_vm2, %v1289_v55, 0  ;;  %v2573_v42 = vld [vmem:[%s3639_s12 + $0x8] sm:$0xff]  }
 0x713   : > { %v1397_v43 = vpop.xlane.xlu0 %1396 }
 0x714   : > { %v1398_v45 = vsub.f32 %v1390_v32, %v1397_v43  ;;  %v2574_v43 = vld [vmem:[%s3639_s12] sm:$0xff]  }
 0x715   : > { %v2598_v46 = vpop.eup %2597 }
 0x716   : > { %v1399_v47 = vmul.f32 1.442695, %v1398_v45  ;;  %v1163_v48 = vsel %vm996_vm1, %v2598_v46, 0.0  ;;  %v2575_v45 = vld [vmem:[#allocation17 + $0x38] sm:$0xff]  }
 0x717   : > { %1164 = vadd.xlane.f32.xlu0 %v1163_v48  ;;  %v2578_v48 = vld [vmem:[#allocation17 + $0x20] sm:$0xff]  }
 0x718   : > { %2601 = vpow2.f32 %v1399_v47  ;;  %v2577_v47 = vld [vmem:[#allocation17 + $0x28] sm:$0xff]  }
 0x71d   : > { %v2600_v49 = vpop.eup %2599 }
 0x71e   : > { %v1282_v50 = vsel %vm996_vm1, %v2600_v49, 0.0 }
 0x71f   : > { %1283 = vadd.xlane.f32.xlu0 %v1282_v50  ;;  %v2580_v50 = vld [vmem:[#allocation17 + $0x10] sm:$0xff]  }
 0x725   : > { %v2602_v51 = vpop.eup %2601 }
 0x726   : > { %v1401_v52 = vsel %vm996_vm1, %v2602_v51, 0.0 }
 0x727   : > { %1402 = vadd.xlane.f32.xlu1 %v1401_v52 }
 0x735   : > { %1169 = vrot.lane.b32.xlu0 %v3440_v44, %s2990_s19  ;;  %s2106_s19 = sshll.u32 %s3323_s0, 3 }
 0x738   : > { %1407 = vrot.lane.b32.xlu1 %v3440_v44, %s2991_s17  ;;  %s2173_s17 = sshll.u32 %s3112_s1, 7  ;;  %s2883_s1 = scalar_lea.vmem %s2882_s14, 256 }
 0x739   : > { %s3590_s24 = scalar_lea.hbm %s3708_s22, %s2173_s17 }
 0x7a0   : > { %v1165_v53 = vpop.xlane.xlu0 %1164 }
 0x7a1   : > { %2603 = vrcp.f32 %v1165_v53 }
 0x7a8   : > { %v1284_v54 = vpop.xlane.xlu0 %1283 }
 0x7a9   : > { %2605 = vrcp.f32 %v1284_v54 }
 0x7ac   : > { %v1170_v56 = vpop.permute.xlu0 %1169 }
 0x7ad   : > { %v1175_v57 = vsel %vm1060_vm2, %v1170_v56, 0 }
 0x7ae   : > { %v2604_v58 = vpop.eup %2603  ;;  %2302 = vmatpush3.bf16.msra.mxu1 %v1175_v57 }
 0x7af   : > { %2313 = vmatprep.subr.bf16.mxu1 %v2979_v0  ;;  %v1167_v59 = vmul.f32 %v2604_v58, %v2598_v46  ;;  %v2576_v46 = vld [vmem:[#allocation17 + $0x30] sm:$0xff]  }
 0x7b0   : > { %v1403_v60 = vpop.xlane.xlu1 %1402 }
 0x7b1   : > { %2607 = vrcp.f32 %v1403_v60  ;;  %v1168_v61 = vpack.c.bf16 %v1167_v59, %v1167_v59  ;;  %v2143_v60 = vld [vmem:[%s3637_s10] ss:$0 sm:$0xff] }
 0x7b3   : > { %2304 = vmatmul.mubr.msk.bf16.vlgmr.msra.gmra.mxu1 %vm996_vm1, %v1168_v61 }
 0x7b4   : > { %2314 = vmatpush3.bf16.msra.mxu1 %v1294_v62  ;;  %2315 = vmatprep.mubr.msk.bf16.mxu1 %vm2980_vm0, %v2979_v0  ;;  %v1408_v1 = vpop.permute.xlu1 %1407  ;;  %v2144_v62 = vld [vmem:[%s3638_s11] ss:$0 sm:$0xff] }
 0x7b5   : > { %2325 = vmatprep.subr.bf16.mxu1 %v2979_v0  ;;  %v1413_v3 = vsel %vm1060_vm2, %v1408_v1, 0 }
 0x7b6   : > { %v2606_v44 = vpop.eup %2605 }
 0x7b7   : > { %v1286_v63 = vmul.f32 %v2606_v44, %v2600_v49  ;;  %v2579_v49 = vld [vmem:[#allocation17 + $0x18] sm:$0xff]  }
 0x7b9   : > { %v1287_v2 = vpack.c.bf16 %v1286_v63, %v1286_v63 }
 0x7bb   : > { %2316 = vmatmul.mubr.msk.bf16.vlgmr.msra.gmra.mxu1 %vm996_vm1, %v1287_v2  ;;  %v2581_v2 = vld [vmem:[#allocation17 + $0x8] sm:$0xff]  }
 0x7bc   : > { %2326 = vmatpush3.bf16.msra.mxu1 %v1413_v3  ;;  %2327 = vmatprep.mubr.msk.bf16.mxu1 %vm2980_vm0, %v2979_v0  ;;  %v2582_v3 = vld [vmem:[#allocation17] sm:$0xff]  }
 0x7bd   : > { %2339 = vmatprep.subr.bf16.mxu1 %v2979_v0 }
 0x7be   : > { %v2608_v4 = vpop.eup %2607 }
 0x7bf   : > { %v1405_v5 = vmul.f32 %v2608_v4, %v2602_v51  ;;  %v2583_v4 = vld [vmem:[#allocation18 + $0x38] sm:$0xff]  }
 0x7c1   : > { %v1406_v6 = vpack.c.bf16 %v1405_v5, %v1405_v5  ;;  %v2584_v5 = vld [vmem:[#allocation18 + $0x30] sm:$0xff]  }
 0x7c3   : > { %2328 = vmatmul.mubr.msk.bf16.vlgmr.msra.gmra.mxu1 %vm996_vm1, %v1406_v6  ;;  %v2585_v6 = vld [vmem:[#allocation18 + $0x28] sm:$0xff]  }
 0x7c4   : > { %2355 = vmatprep.mubr.msk.bf16.mxu1 %vm2980_vm0, %v2979_v0  ;;  %2340 = vmatpush3.bf16.msra.mxu1 %v2567_v29 }
 0x7c5   : > { %2341 = vmatprep.subr.bf16.mxu1 %v2979_v0 }
 0x7c8   : > { %2342 = vmatpush3.bf16.msra.mxu1 %v2568_v38 }
 0x7c9   : > { %2343 = vmatprep.subr.bf16.mxu1 %v2979_v0 }
 0x873   : > { %v1211_v7 = vpop.f32.mrf.mxu1 }
 0x874   : > { %v2176_v8 = vpack.c.bf16 %v1211_v7, %v1211_v7  ;;  %v2586_v7 = vld [vmem:[#allocation18 + $0x20] sm:$0xff]  }
 0x875   : > { %v2305_v9 = vpop.f32.mrf.mxu1 }
 0x876   : > { %1221 = vrot.lane.b32.xlu1 %v2176_v8, %s2992_s8  ;;  %v2587_v8 = vld [vmem:[#allocation18 + $0x18] sm:$0xff]   ;;  %v2588_v9 = vld [vmem:[#allocation18 + $0x10] sm:$0xff]   ;;  %s730_s8 = scalar_lea.vmem [#allocation20], %s2106_s19 }
 0x877   : > { %v1214_v10 = vpop.f32.mrf.mxu1 }
 0x878   : > { %v2145_v10 = vld [vmem:[%s3640_s13] ss:$0 sm:$0xff] }
 0x879   : > { %v2306_v11 = vpop.f32.mrf.mxu1 }
 0x87b   : > { %v1330_v14 = vpop.f32.mrf.mxu1 }
 0x87c   : > { %v2177_v16 = vpack.c.bf16 %v1330_v14, %v1330_v14 }
 0x87d   : > { %v2317_v17 = vpop.f32.mrf.mxu1 }
 0x87e   : > { %1340 = vrot.lane.b32.xlu0 %v2177_v16, %s2993_s20  ;;  %s1916_s20 = sshll.u32 %s730_s8, 4  ;;  %s1917_s20 = int_to_ptr.vmem [resolvable:$true] %s1916_s20 }
 0x87f   : > { %v1333_v18 = vpop.f32.mrf.mxu1  ;;  %s2877_s7 = scalar_lea.vmem %s1917_s20, 128  ;;  %p2884_p3 = scmp.lt.s32.totalorder %s1917_s20, %s2882_s14 }
 0x880   : > { %p2878_p6 = scmp.ne.s32.totalorder %s1917_s20, %s2877_s7  ;;  %p2885_p12 = scmp.lt.s32.totalorder %s2883_s1, %s2877_s7 }
 0x881   : > { %v2318_v19 = vpop.f32.mrf.mxu1 }
 0x882   : > { %v2589_v19 = vld [vmem:[#allocation18 + $0x8] sm:$0xff]   ;;  %p2879_p11 = pnand %p2878_p6, %p3709_p10  ;;  %p2886_p2 = por %p2885_p12, %p2884_p3 }
 0x883   : > { %v1449_v20 = vpop.f32.mrf.mxu1 }
 0x884   : > { %v2178_v21 = vpack.c.bf16 %v1449_v20, %v1449_v20  ;;  %v2590_v20 = vld [vmem:[#allocation18] sm:$0xff]   ;;  %p2880_p0 = pneg %p2879_p11 }
 0x885   : > { %v2329_v22 = vpop.f32.mrf.mxu1 }
 0x886   : > { %1459 = vrot.lane.b32.xlu1 %v2178_v21, %s2994_s3  ;;  %v2154_v21 = vld [vmem:[%s3642_s15] ss:$0 sm:$0xff]  ;;  %p2887_p8 = pnand %p2886_p2, %p2880_p0 }
 0x887   : > { %v1452_v23 = vpop.f32.mrf.mxu1 }
 0x889   : > { %v2330_v24 = vpop.f32.mrf.mxu1 }
 0x8e8   : > { %v1222_v25 = vpop.permute.xlu1 %1221 }
 0x8e9   : > { %1225 = vst.msk [vmem:[#allocation2] sm:$0xf] %vm1224_vm4, %v1222_v25 }
 0x8f0   : > { %v1341_v26 = vpop.permute.xlu0 %1340 }
 0x8f1   : > { %1344 = vst.msk [vmem:[#allocation2] sm:$0xf] %vm1343_vm5, %v1341_v26 }
 0x8f8   : > { %v1460_v27 = vpop.permute.xlu1 %1459 }
 0x8f9   : > { %1463 = vst.msk [vmem:[#allocation2] sm:$0xf] %vm1462_vm6, %v1460_v27 }
 0x900   : > { %v1464_v28 = vld [vmem:[#allocation2] sm:$0xf] }
 0x901   : > { %2336 = vmatmul.mubr.msk.bf16.vlgmr.msra.gmra.mxu0 %vm1488_vm7, %v1464_v28 }
 0x902   : > { %2375 = vmatprep.mubr.msk.bf16.mxu0 %vm2980_vm0, %v2979_v0  ;;  %2360 = vmatpush3.bf16.msra.mxu0 %v2575_v45 }
 0x903   : > { %2361 = vmatprep.subr.bf16.mxu0 %v2979_v0 }
 0x906   : > { %2362 = vmatpush3.bf16.msra.mxu0 %v2576_v46 }
 0x907   : > { %2363 = vmatprep.subr.bf16.mxu0 %v2979_v0 }
 0x90a   : > { %2364 = vmatpush3.bf16.msra.mxu0 %v2577_v47 }
 0x90b   : > { %2365 = vmatprep.subr.bf16.mxu0 %v2979_v0 }
 0x90e   : > { %2366 = vmatpush3.bf16.msra.mxu0 %v2578_v48 }
 0x90f   : > { %2367 = vmatprep.subr.bf16.mxu0 %v2979_v0 }
 0x912   : > { %2368 = vmatpush3.bf16.msra.mxu0 %v2579_v49 }
 0x913   : > { %2369 = vmatprep.subr.bf16.mxu0 %v2979_v0 }
 0x916   : > { %2370 = vmatpush3.bf16.msra.mxu0 %v2580_v50 }
 0x917   : > { %2371 = vmatprep.subr.bf16.mxu0 %v2979_v0 }
 0x91a   : > { %2372 = vmatpush3.bf16.msra.mxu0 %v2581_v2 }
 0x91b   : > { %2373 = vmatprep.subr.bf16.mxu0 %v2979_v0 }
 0x91e   : > { %2374 = vmatpush3.bf16.msra.mxu0 %v2582_v3 }
 0x9c1   : > { %v1526_v31 = vpop.f32.mrf.mxu0 }
 0x9c2   : > { %v1527_v32 = vadd.f32 %v2139_v30, %v1526_v31 }
 0x9c3   : > { %v2337_v33 = vpop.f32.mrf.mxu0 }
 0x9c4   : > { %v3519_v34 = vadd.f32 %v1527_v32, %v3400_v12  ;;  %v2569_v12 = vld [vmem:[%s3639_s12 + $0x28] sm:$0xff]  }
 0x9c5   : > { %v1529_v35 = vpop.f32.mrf.mxu0  ;;  %2344 = vmatpush3.bf16.msra.mxu1 %v2569_v12 }
 0x9c6   : > { %1535 = vadd.xlane.f32.xlu0 %v3519_v34  ;;  %v1538_v36 = vmul.f32 %v3519_v34, %v3519_v34  ;;  %2345 = vmatprep.subr.bf16.mxu1 %v2979_v0 }
 0x9c7   : > { %v2338_v37 = vpop.f32.mrf.mxu0 }
 0x9c8   : > { %1539 = vadd.xlane.f32.xlu1 %v1538_v36 }
 0x9c9   : > { %2346 = vmatpush3.bf16.msra.mxu1 %v2570_v39 }
 0x9ca   : > { %2347 = vmatprep.subr.bf16.mxu1 %v2979_v0 }
 0x9cd   : > { %2348 = vmatpush3.bf16.msra.mxu1 %v2571_v40 }
 0x9ce   : > { %2349 = vmatprep.subr.bf16.mxu1 %v2979_v0 }
 0x9d1   : > { %2350 = vmatpush3.bf16.msra.mxu1 %v2572_v41 }
 0x9d2   : > { %2351 = vmatprep.subr.bf16.mxu1 %v2979_v0 }
 0x9d5   : > { %2352 = vmatpush3.bf16.msra.mxu1 %v2573_v42 }
 0x9d6   : > { %2353 = vmatprep.subr.bf16.mxu1 %v2979_v0 }
 0x9d9   : > { %2354 = vmatpush3.bf16.msra.mxu1 %v2574_v43 }
 0x9da   : > { %2379 = vmatprep.subr.bf16.mxu1 %v2979_v0 }
 0xa4f   : > { %v1536_v51 = vpop.xlane.xlu0 %1535 }
 0xa50   : > { %v1537_v52 = vmul.f32 0.03125, %v1536_v51 }
 0xa51   : > { %v1540_v53 = vpop.xlane.xlu1 %1539 }
 0xa52   : > { %v1542_v54 = vmul.f32 %v1537_v52, %v1537_v52  ;;  %v1541_v55 = vmul.f32 0.03125, %v1540_v53  ;;  %v1544_v58 = vsub.f32 %v3519_v34, %v1537_v52 }
 0xa54   : > { %v1543_v56 = vsub.f32 %v1541_v55, %v1542_v54 }
 0xa56   : > { %v1545_v57 = vadd.f32 1e-05, %v1543_v56 }
 0xa58   : > { %2609 = vrsqrt.f32 %v1545_v57 }
 0xa65   : > { %v2610_v59 = vpop.eup %2609 }
 0xa66   : > { %v1547_v61 = vmul.f32 %v2610_v59, %v1544_v58 }
 0xa68   : > { %v1554_v44 = vmul.f32 %v2143_v60, %v1547_v61 }
 0xa6a   : > { %v1561_v63 = vadd.f32 %v2144_v62, %v1554_v44 }
 0xa6c   : > { %v1562_v1 = vpack.c.bf16 %v1561_v63, %v1561_v63 }
 0xa6e   : > { %2356 = vmatmul.mubr.bf16.vlgmr.msra.gmra.mxu1 %v1562_v1 }
 0xa6f   : > { %2395 = vmatprep.mubr.msk.bf16.mxu1 %vm2980_vm0, %v2979_v0  ;;  %2380 = vmatpush3.bf16.msra.mxu1 %v2583_v4 }
 0xa70   : > { %2381 = vmatprep.subr.bf16.mxu1 %v2979_v0 }
 0xa73   : > { %2382 = vmatpush3.bf16.msra.mxu1 %v2584_v5 }
 0xa74   : > { %2383 = vmatprep.subr.bf16.mxu1 %v2979_v0 }
 0xa77   : > { %2384 = vmatpush3.bf16.msra.mxu1 %v2585_v6 }
 0xa78   : > { %2385 = vmatprep.subr.bf16.mxu1 %v2979_v0 }
 0xa7b   : > { %2386 = vmatpush3.bf16.msra.mxu1 %v2586_v7 }
 0xa7c   : > { %2387 = vmatprep.subr.bf16.mxu1 %v2979_v0 }
 0xa7f   : > { %2388 = vmatpush3.bf16.msra.mxu1 %v2587_v8 }
 0xa80   : > { %2389 = vmatprep.subr.bf16.mxu1 %v2979_v0 }
 0xa83   : > { %2390 = vmatpush3.bf16.msra.mxu1 %v2588_v9 }
 0xa84   : > { %2391 = vmatprep.subr.bf16.mxu1 %v2979_v0 }
 0xa87   : > { %2392 = vmatpush3.bf16.msra.mxu1 %v2589_v19 }
 0xa88   : > { %2393 = vmatprep.subr.bf16.mxu1 %v2979_v0  ;;  %v2163_v0 = vld [vmem:[%s3707_s29] ss:$0 sm:$0xff] }
 0xa8b   : > { %2394 = vmatpush3.bf16.msra.mxu1 %v2590_v20 }
 0xb2e   : > { %v1668_v11 = vpop.f32.mrf.mxu1 }
 0xb2f   : > { %v1669_v13 = vadd.f32 %v2145_v10, %v1668_v11 }
 0xb30   : > { %v2357_v14 = vpop.f32.mrf.mxu1 }
 0xb31   : > { %v1674_v15 = vmax.f32 %v1669_v13, 0.0 }
 0xb32   : > { %v1671_v16 = vpop.f32.mrf.mxu1 }
 0xb33   : > { %v1675_v17 = vpack.c.bf16 %v1674_v15, %v1674_v15 }
 0xb34   : > { %v2358_v18 = vpop.f32.mrf.mxu1 }
 0xb35   : > { %2376 = vmatmul.mubr.bf16.vlgmr.msra.gmra.mxu0 %v1675_v17 }
 0xbf5   : > { %v1781_v22 = vpop.f32.mrf.mxu0 }
 0xbf6   : > { %v1782_v23 = vadd.f32 %v2154_v21, %v1781_v22 }
 0xbf7   : > { %v2377_v24 = vpop.f32.mrf.mxu0 }
 0xbf8   : > { %v1787_v25 = vadd.f32 %v1782_v23, %v3519_v34 }
 0xbf9   : > { %v1784_v26 = vpop.f32.mrf.mxu0 }
 0xbfa   : > { %v1788_v27 = vpack.c.bf16 %v1787_v25, %v1787_v25 }
 0xbfb   : > { %v2378_v28 = vpop.f32.mrf.mxu0 }
 0xbfc   : > { %2396 = vmatmul.mubr.bf16.vlgmr.msra.gmra.mxu1 %v1788_v27 }
 0xcbc   : > { %v1894_v29 = vpop.f32.mrf.mxu1 }
 0xcbd   : > { %v1895_v30 = vadd.f32 %v2163_v0, %v1894_v29 }
 0xcbe   : > { %v2397_v31 = vpop.f32.mrf.mxu1 }
 0xcbf   : > { %2611 = vtanh.f32 %v1895_v30 }
 0xcc0   : > { %v1897_v32 = vpop.f32.mrf.mxu1 }
 0xcc2   : > { %v2398_v33 = vpop.f32.mrf.mxu1 }
 0xccc   : > { %v2612_v34 = vpop.eup %2611 }
 0xccd   : > { %1901 = vst [vmem:[%s730_s8] sm:$0xff] %v2612_v34 }
 0xcce   : > { %2890 = shalt.err (!%p2887_p8)
}
 0xccf   : > { %s2891_s25 = scalar_lea.hbm %s3590_s24, 128  ;;  %s2895_s18 = scalar_lea.hbm %s3708_s22, 256 }
 0xcd0   : > { %p2892_p9 = scmp.ne.s32.totalorder %s3590_s24, %s2891_s25  ;;  %p2896_p7 = scmp.lt.s32.totalorder %s3590_s24, %s3708_s22 }
 0xcd1   : > { %p2897_p13 = scmp.lt.s32.totalorder %s2895_s18, %s2891_s25 }
 0xcd2   : > { %p2893_p4 = pnand %p2892_p9, %p3709_p10 }
 0xcd3   : > { %p2898_p5 = por %p2897_p13, %p2896_p7 }
 0xcd4   : > { %p2894_p1 = pneg %p2893_p4 }
 0xcd6   : > { %p2899_p6 = pnand %p2898_p5, %p2894_p1 }
 0xcd8   : > { %2902 = shalt.err (!%p2899_p6)
}
 0xcd9   : > { %2435 = dma.vmem_to_hbm [thread:$0]  (%p3709_p10), %s1917_s20, 128, %s3590_s24, %s1903_s5  }
 0xcda PF: > { %s1928_s17 = sand.u32 1, %s2953_s27   ;;  %p3710_p11 = scmp.ne.s32.totalorder %s3689_s21, 0 }
 0xcdb   : > { %p3711_p0 = scmp.ge.s32.totalorder %s2965_s30, 2  ;;  %s1929_s8 = scalar_lea.sflag [#allocation5], %s1928_s17 }
 0xcdd   : > { %p2470_p3 = pnand %p3711_p0, %p3710_p11 }
 0xcdf   : > { %p2471_p12 = pneg %p2470_p3 }
 0xce1   : > { %2948 = dma.done.wait (%p2471_p12), %s1929_s8, 128  }
 0xce2   : > { %2950 = vsyncadd (%p2471_p12), %s1929_s8, 4294967168  ;;  %s3712_s30 = sld [smem:[#allocation30_spill]]  ;;  %s3715_s27 = smov %s2957_s28 }
 0xce3   : > { %s3713_s3 = sld [smem:[#allocation29_spill]] }
 0xce4   : > { %s3714_s29 = sld [smem:[#allocation31_spill]] }
 0xce8   : > { %p38_p2 = scmp.ge.s32.totalorder %s3712_s30, 4  }
 0xce9   : > { %s3716_s28 = smov %s3713_s3 }
 0xcea   :  { %40 = sbr.rel (!%p38_p2) target bundleno = 25 (0x19), region = 182 }
 0xcef   :  { %1934 = vsyncpa [#allocation4], 1 }
 0xcf0   :  { %1936 = vsyncpa [#allocation4 + $0x1], 1 }
 0xcf1   :  { %1937 = vsyncpa [#allocation7], 1 }
 0xcf2   :  { %1939 = vsyncpa [#allocation7 + $0x1], 1 }
 0xcf3   :  { %1940 = vsyncpa [#allocation10], 1 }
 0xcf4   :  { %1941 = vsyncpa [#allocation13], 1 }
 0xcf5   :  { %1942 = vsyncpa [#allocation16], 1 }
 0xcf6   :  { %1943 = vsyncpa [#allocation19], 1 }
 0xcf7   :  { %1944 = vsyncpa [#allocation5], 1 }
 0xcf8   :  { %1946 = vsyncpa [#allocation5 + $0x1], 1 }

// kernel: tpu_custom_call.1
= control target key start
LH: loop header
LB: loop body
LE: loop exit
PB: predicated region body
PF: predicated region fallthrough
CT: control target
= control target key end

     0   :  { %s3627_s0 = inlined_call_operand.hbm [shape: bf16[16,128], index: 0, kind: input, shape index: {}]   ;;  %s3628_s1 = inlined_call_operand.hbm [shape: f32[2,1,8], index: 1, kind: input, shape index: {}]   ;;  %s3629_s2 = inlined_call_operand.vmem [shape: bf16[128,128], index: 2, kind: input, shape index: {}]   ;;  %s3630_s3 = inlined_call_operand.hbm [shape: f32[1,128], index: 3, kind: input, shape index: {}]   ;;  %s3631_s4 = inlined_call_operand.hbm [shape: f32[1,128], index: 4, kind: input, shape index: {}]   ;;  %s3632_s5 = inlined_call_operand.hbm [shape: f32[1,128], index: 5, kind: input, shape index: {}]   ;;  %s3633_s6 = inlined_call_operand.vmem [shape: bf16[128,96], index: 6, kind: input, shape index: {}]   ;;  %s3634_s7 = inlined_call_operand.hbm [shape: f32[1,96], index: 7, kind: input, shape index: {}]   ;;  %s3635_s8 = inlined_call_operand.hbm [shape: bf16[32,128], index: 8, kind: input, shape index: {}]   ;;  %s3636_s9 = inlined_call_operand.hbm [shape: f32[1,128], index: 9, kind: input, shape index: {}]   ;;  %s3637_s10 = inlined_call_operand.vmem [shape: f32[1,128], index: 10, kind: input, shape index: {}]   ;;  %s3638_s11 = inlined_call_operand.vmem [shape: f32[1,128], index: 11, kind: input, shape index: {}]   ;;  %s3639_s12 = inlined_call_operand.vmem [shape: bf16[128,128], index: 12, kind: input, shape index: {}]   ;;  %s3640_s13 = inlined_call_operand.vmem [shape: f32[1,128], index: 13, kind: input, shape index: {}]   ;;  %s3641_s14 = inlined_call_operand.hbm [shape: bf16[128,128], index: 14, kind: input, shape index: {}]   ;;  %s3642_s15 = inlined_call_operand.vmem [shape: f32[1,128], index: 15, kind: input, shape index: {}]   ;;  %s3643_s16 = inlined_call_operand.hbm [shape: bf16[128,128], index: 16, kind: input, shape index: {}]   ;;  %s3644_s17 = inlined_call_operand.vmem [shape: f32[1,128], index: 17, kind: input, shape index: {}]   ;;  %s3645_s18 = inlined_call_operand.hbm [shape: f32[16,128], index: 18, kind: output, shape index: {}]  }
   0x1   :  { %3658 = sst [smem:[#allocation32_spill]] %s3627_s0 }
   0x2   :  { %3659 = sst [smem:[#allocation33_spill]] %s3628_s1 }
   0x3   :  { %3660 = sst [smem:[#allocation34_spill]] %s3629_s2 }
   0x4   :  { %3661 = sst [smem:[#allocation35_spill]] %s3630_s3 }
   0x5   :  { %3662 = sst [smem:[#allocation36_spill]] %s3631_s4 }
   0x6   :  { %3663 = sst [smem:[#allocation37_spill]] %s3632_s5 }
   0x7   :  { %3664 = sst [smem:[#allocation38_spill]] %s3634_s7 }
   0x8   :  { %3665 = sst [smem:[#allocation39_spill]] %s3635_s8 }
   0x9   :  { %3666 = sst [smem:[#allocation40_spill]] %s3636_s9 }
   0xa   :  { %3667 = sst [smem:[#allocation41_spill]] %s3641_s14 }
   0xb   :  { %3668 = sst [smem:[#allocation42_spill]] %s3643_s16 }
   0xc   :  { %3669 = sst [smem:[#allocation43_spill]] %s3644_s17 }
   0xd   :  { %3670 = sst [smem:[#allocation44_spill]] %s3645_s18 }
   0xe   :  { %23 = vsyncpa [#allocation4], 0 }
   0xf   :  { %25 = vsyncpa [#allocation4 + $0x1], 0 }
  0x10   :  { %26 = vsyncpa [#allocation7], 0 }
  0x11   :  { %28 = vsyncpa [#allocation7 + $0x1], 0 }
  0x12   :  { %29 = vsyncpa [#allocation10], 0 }
  0x13   :  { %30 = vsyncpa [#allocation13], 0 }
  0x14   :  { %31 = vsyncpa [#allocation16], 0 }
  0x15   :  { %32 = vsyncpa [#allocation19], 0 }
  0x16   :  { %33 = vsyncpa [#allocation5], 0 }
  0x17   :  { %35 = vsyncpa [#allocation5 + $0x1], 0  ;;  %s3091_s27 = smov 0   ;;  %s3093_s28 = smov 0  }
  0x18   :  { %s3095_s29 = smov 0   ;;  %s3097_s30 = smov 0  }
  0x19 LB: > { %3671 = sst [smem:[#allocation29_spill]] %s2961_s29  ;;  %s2967_s0 = smov [#allocation8]   ;;  %s2965_s30 = sphi %s3097_s30, %s3712_s30   ;;  %s2961_s29 = sphi %s3095_s29, %s3714_s29   ;;  %s2957_s28 = sphi %s3093_s28, %s3716_s28   ;;  %s2953_s27 = sphi %s3091_s27, %s3715_s27  }
  0x1a   : > { %s476_s19 = sshll.u32 %s2967_s0, 4  ;;  %s3112_s1 = sadd.s32 4294967295, %s2965_s30   ;;  %s477_s19 = int_to_ptr.vmem [resolvable:$true] %s476_s19 }
  0x1b   : > { %p2083_p0 = scmp.ge.s32.totalorder %s2965_s30, 1  ;;  %p3650_p1 = scmp.eq.s32.totalorder %s3112_s1, 0 }
  0x1c   : > { %p460_p2 = scmp.lt.s32.totalorder %s2965_s30, 3  ;;  %s2968_s21 = smov [#allocation9]  }
  0x1d   : > { %s487_s22 = sshll.u32 %s2968_s21, 4  ;;  %s2969_s2 = smov [#allocation12]   ;;  %s3124_s22 = int_to_ptr.vmem [resolvable:$true] %s487_s22 }
  0x1e   : > { %p3117_p3 = pnand %p2083_p0, %p460_p2  ;;  %s512_s23 = sshll.u32 %s2969_s2, 4  ;;  %s3132_s23 = int_to_ptr.vmem [resolvable:$true] %s512_s23 }
  0x1f   : > { %s2970_s25 = smov [#allocation15]   ;;  %s2624_s21 = scalar_lea.vmem %s477_s19, 16 }
  0x20   : > { %s3672_s20 = scalar_select %p3117_p3, 1, 0 }
  0x21   : > { %p2437_p5 = pneg %p3117_p3  ;;  %s3134_s26 = sshll.u32 %s2970_s25, 4  ;;  %s537_s26 = int_to_ptr.vmem [resolvable:$true] %s3134_s26 }
  0x22   : > { %p2625_p8 = scmp.ne.s32.totalorder %s477_s19, %s2624_s21  ;;  %s2631_s2 = scalar_lea.vmem %s477_s19, 32 }
  0x23   : > { %p3128_p6 = pnand %p2437_p5, %p3650_p1  ;;  %p2632_p11 = scmp.lt.s32.totalorder %s477_s19, %s477_s19 }
  0x24   : > { %p2633_p12 = scmp.lt.s32.totalorder %s2631_s2, %s2624_s21 }
  0x25   : > { %p3138_p7 = pneg %p3128_p6 }
  0x26   : > { %p2634_p13 = por %p2633_p12, %p2632_p11 }
  0x27   : > { %p2627_p9 = pnand %p2625_p8, %p3138_p7 }
  0x29   : > { %p2628_p10 = pneg %p2627_p9 }
  0x2b   : > { %p2635_p0 = pnand %p2634_p13, %p2628_p10 }
  0x2d   : > { %2638 = shalt.err (!%p2635_p0)
}
  0x2e   : > { %s3675_s3 = sld [smem:[#allocation35_spill]]  ;;  %s2650_s17 = scalar_lea.vmem %s3124_s22, 16 }
  0x2f   : > { %p2651_p2 = scmp.ne.s32.totalorder %s3124_s22, %s2650_s17  ;;  %s2657_s21 = scalar_lea.vmem %s3124_s22, 32 }
  0x30   : > { %p2658_p9 = scmp.lt.s32.totalorder %s3124_s22, %s3124_s22  ;;  %p2659_p10 = scmp.lt.s32.totalorder %s2657_s21, %s2650_s17 }
  0x31   : > { %p2653_p5 = pnand %p2651_p2, %p3138_p7 }
  0x32   : > { %p2660_p11 = por %p2659_p10, %p2658_p9 }
  0x33   : > { %p2654_p8 = pneg %p2653_p5 }
  0x34   : > { %2440 = dma.hbm_to_vmem [thread:$0]  (!%p3128_p6), %s3675_s3, 16, %s477_s19, [#allocation7]  }
  0x35   : > { %p2661_p12 = pnand %p2660_p11, %p2654_p8 }
  0x37   : > { %2664 = shalt.err (!%p2661_p12)
}
  0x38   : > { %s3676_s4 = sld [smem:[#allocation36_spill]]  ;;  %s2676_s19 = scalar_lea.vmem %s3132_s23, 16 }
  0x39   : > { %p2677_p13 = scmp.ne.s32.totalorder %s3132_s23, %s2676_s19  ;;  %s2683_s17 = scalar_lea.vmem %s3132_s23, 32 }
  0x3a   : > { %p2684_p5 = scmp.lt.s32.totalorder %s3132_s23, %s3132_s23  ;;  %p2685_p8 = scmp.lt.s32.totalorder %s2683_s17, %s2676_s19 }
  0x3b   : > { %p2679_p0 = pnand %p2677_p13, %p3138_p7 }
  0x3c   : > { %p2686_p9 = por %p2685_p8, %p2684_p5 }
  0x3d   : > { %p2680_p2 = pneg %p2679_p0 }
  0x3e   : > { %2443 = dma.hbm_to_vmem [thread:$0]  (!%p3128_p6), %s3676_s4, 16, %s3124_s22, [#allocation10]  }
  0x3f   : > { %p2687_p10 = pnand %p2686_p9, %p2680_p2 }
  0x41   : > { %2690 = shalt.err (!%p2687_p10)
}
  0x42   : > { %s3677_s7 = sld [smem:[#allocation38_spill]]  ;;  %s2971_s22 = smov [#allocation11]  }
  0x43   : > { %s498_s18 = sshll.u32 %s2971_s22, 4  ;;  %s2702_s2 = scalar_lea.vmem %s537_s26, 16  ;;  %s499_s18 = int_to_ptr.vmem [resolvable:$true] %s498_s18 }
  0x44   : > { %p2703_p11 = scmp.ne.s32.totalorder %s537_s26, %s2702_s2  ;;  %s2709_s19 = scalar_lea.vmem %s537_s26, 32 }
  0x45   : > { %p2710_p0 = scmp.lt.s32.totalorder %s537_s26, %s537_s26  ;;  %p2711_p2 = scmp.lt.s32.totalorder %s2709_s19, %s2702_s2 }
  0x46   : > { %p2705_p12 = pnand %p2703_p11, %p3138_p7 }
  0x47   : > { %p2712_p5 = por %p2711_p2, %p2710_p0 }
  0x48   : > { %2449 = dma.hbm_to_vmem [thread:$0]  (!%p3128_p6), %s3677_s7, 16, %s3132_s23, [#allocation13]  }
  0x49   : > { %p2706_p13 = pneg %p2705_p12 }
  0x4b   : > { %p2713_p8 = pnand %p2712_p5, %p2706_p13 }
  0x4d   : > { %2716 = shalt.err (!%p2713_p8)
}
  0x4e   : > { %s3678_s9 = sld [smem:[#allocation40_spill]]  ;;  %s2728_s23 = scalar_lea.vmem %s499_s18, 16 }
  0x4f   : > { %p2729_p9 = scmp.ne.s32.totalorder %s499_s18, %s2728_s23  ;;  %s2735_s21 = scalar_lea.vmem %s499_s18, 32 }
  0x50   : > { %p2736_p12 = scmp.lt.s32.totalorder %s499_s18, %s499_s18  ;;  %p2737_p4 = scmp.lt.s32.totalorder %s2735_s21, %s2728_s23 }
  0x51   : > { %p2731_p10 = pnand %p2729_p9, %p3138_p7 }
  0x52   : > { %p2738_p1 = por %p2737_p4, %p2736_p12 }
  0x53   : > { %p2732_p11 = pneg %p2731_p10 }
  0x54   : > { %2455 = dma.hbm_to_vmem [thread:$0]  (!%p3128_p6), %s3678_s9, 16, %s537_s26, [#allocation16]  }
  0x55   : > { %p2739_p0 = pnand %p2738_p1, %p2732_p11 }
  0x57   : > { %2742 = shalt.err (!%p2739_p0)
}
  0x58   : > { %s3679_s5 = sld [smem:[#allocation37_spill]]  ;;  %s2972_s26 = smov [#allocation14]  }
  0x59   : > { %s522_s19 = sshll.u32 %s2972_s26, 4  ;;  %s523_s19 = int_to_ptr.vmem [resolvable:$true] %s522_s19 }
  0x5a   : > { %s2754_s17 = scalar_lea.vmem %s523_s19, 256  ;;  %p2762_p8 = scmp.lt.s32.totalorder %s523_s19, %s523_s19 }
  0x5b   : > { %p2755_p13 = scmp.ne.s32.totalorder %s523_s19, %s2754_s17  ;;  %p2763_p9 = scmp.lt.s32.totalorder %s2754_s17, %s2754_s17 }
  0x5d   : > { %p2757_p2 = pnand %p2755_p13, %p3138_p7  ;;  %p2764_p4 = por %p2763_p9, %p2762_p8 }
  0x5e   : > { %2446 = dma.hbm_to_vmem [thread:$0]  (!%p3128_p6), %s3679_s5, 16, %s499_s18, [#allocation10]  }
  0x5f   : > { %p2758_p5 = pneg %p2757_p2 }
  0x61   : > { %p2765_p1 = pnand %p2764_p4, %p2758_p5 }
  0x63   : > { %2768 = shalt.err (!%p2765_p1)
}
  0x64   : > { %s2973_s25 = smov 64   ;;  %s2974_s23 = smov 4  }
  0x65   : > { %s3680_s8 = sld [smem:[#allocation39_spill]]  ;;  %s2975_s22 = smov [#allocation17]  }
  0x66   : > { %s558_s2 = sshll.u32 %s2975_s22, 4  ;;  %s2976_s26 = smov [#allocation18]   ;;  %s559_s2 = int_to_ptr.vmem [resolvable:$true] %s558_s2 }
  0x67   : > { %s574_s3 = sshll.u32 %s2976_s26, 4  ;;  %s2780_s17 = scalar_lea.vmem %s559_s2, 1024  ;;  %s575_s3 = int_to_ptr.vmem [resolvable:$true] %s574_s3 }
  0x68   : > { %p2781_p10 = scmp.ne.s32.totalorder %s559_s2, %s2780_s17  ;;  %p2788_p0 = scmp.lt.s32.totalorder %s559_s2, %s559_s2 }
  0x69   : > { %p2789_p13 = scmp.lt.s32.totalorder %s2780_s17, %s2780_s17 }
  0x6a   : > { %p2783_p11 = pnand %p2781_p10, %p3138_p7 }
  0x6b   : > { %2452 = dma.hbm_to_vmem [thread:$0]  (!%p3128_p6), %s3680_s8, 256, %s523_s19, [#allocation13], %s2973_s25, %s2973_s25, %s2974_s23  }
  0x6c   : > { %p2784_p12 = pneg %p2783_p11  ;;  %p2790_p2 = por %p2789_p13, %p2788_p0 }
  0x6e   : > { %p2791_p5 = pnand %p2790_p2, %p2784_p12 }
  0x70   : > { %2794 = shalt.err (!%p2791_p5)
}
  0x71   : > { %s3681_s14 = sld [smem:[#allocation41_spill]]  ;;  %s2806_s21 = scalar_lea.vmem %s575_s3, 1024 }
  0x72   : > { %p2807_p8 = scmp.ne.s32.totalorder %s575_s3, %s2806_s21  ;;  %p2814_p1 = scmp.lt.s32.totalorder %s575_s3, %s575_s3 }
  0x73   : > { %p2815_p10 = scmp.lt.s32.totalorder %s2806_s21, %s2806_s21 }
  0x74   : > { %p2809_p9 = pnand %p2807_p8, %p3138_p7 }
  0x75   : > { %p2816_p11 = por %p2815_p10, %p2814_p1 }
  0x76   : > { %p2810_p4 = pneg %p2809_p9 }
  0x77   : > { %2458 = dma.hbm_to_vmem [thread:$0]  (!%p3128_p6), %s3681_s14, 1024, %s559_s2, [#allocation16], %s2973_s25, %s2973_s25, %s2974_s23  }
  0x78   : > { %p2817_p12 = pnand %p2816_p11, %p2810_p4 }
  0x7a   : > { %2820 = shalt.err (!%p2817_p12)
}
  0x7b   : > { %s3682_s16 = sld [smem:[#allocation42_spill]]  ;;  %s2082_s24 = sadd.s32 4294967294, %s2965_s30  }
  0x7c   : > { %s3222_s0 = sadd.s32 1, %s2965_s30   ;;  %s48_s17 = sadd.s32 1, %s2961_s29 }
  0x7d   : > { %3683 = sst [smem:[#allocation30_spill]] %s3222_s0  ;;  %s45_s2 = ssub.s32 %s2965_s30, %s3222_s0 }
  0x7e   : > { %p46_p7 = scmp.eq.s32.totalorder %s45_s2, 0  ;;  %p55_p0 = scmp.ne.s32.totalorder %s2961_s29, %s2957_s28 }
  0x7f   : > { %p56_p13 = scmp.eq.s32.totalorder %s2965_s30, 0  ;;  %p61_p2 = scmp.ne.s32.totalorder %s2957_s28, %s2953_s27 }
  0x80   : > { %s3233_s19 = scalar_select %p46_p7, %s2961_s29, %s48_s17  }
  0x81   : > { %2461 = dma.hbm_to_vmem [thread:$0]  (!%p3128_p6), %s3682_s16, 1024, %s575_s3, [#allocation19], %s2973_s25, %s2973_s25, %s2974_s23  }
  0x82   : > { %3684 = sst [smem:[#allocation31_spill]] %s3233_s19  ;;  %p3235_p5 = por %p56_p13, %p55_p0 }
  0x83   : > { %p3686_p8 = scmp.eq.s32.totalorder %s3112_s1, 0  ;;  %p447_p9 = scmp.eq.s32.totalorder %s3112_s1, 1 }
  0x84   : > { %p453_p4 = scmp.eq.s32.totalorder %s2082_s24, 1  ;;  %p2481_p1 = scmp.lt.s32.totalorder %s2965_s30, 2 }
  0x85   : > { %p3241_p6 = por %p3686_p8, %p61_p2  ;;  %s3248_s25 = sand.u32 1, %s2961_s29  }
  0x86   : > { %p3250_p10 = por %p447_p9, %p55_p0  ;;  %p3254_p11 = por %p453_p4, %p61_p2 }
  0x87   : > { %s3687_s3 = scalar_select %p3241_p6, 1, 0 }
  0x88   : > { %s3688_s23 = scalar_select %p3250_p10, 1, 0 }
  0x89   : > { %s3689_s21 = scalar_select %p3254_p11, 1, 0 }
  0x8a   : > { %s2093_s22 = sshll.u32 %s3248_s25, 2  ;;  %s2094_s26 = sshll.u32 %s2965_s30, 6 }
  0x8b   : > { %s3690_s4 = sld [smem:[#allocation32_spill]]  ;;  %s595_s24 = scalar_lea.vmem [#allocation3], %s2093_s22 }
  0x8c   : > { %s602_s7 = sshll.u32 %s595_s24, 4  ;;  %p3269_p12 = pnand %p2481_p1, %p3235_p5  ;;  %s3265_s7 = int_to_ptr.vmem [resolvable:$true] %s602_s7 }
  0x8d   : > { %s592_s14 = scalar_lea.sflag [#allocation4], %s3248_s25 }
  0x8e   : > { %p2823_p0 = pneg %p3269_p12 }
  0x91   : > { %s3263_s5 = scalar_lea.hbm %s3690_s4, %s2094_s26  ;;  %s2826_s18 = scalar_lea.hbm %s3690_s4, 128 }
  0x92   : > { %s2821_s16 = scalar_lea.hbm %s3263_s5, 64  ;;  %p2827_p5 = scmp.lt.s32.totalorder %s3263_s5, %s3690_s4 }
  0x93   : > { %p2822_p7 = scmp.ne.s32.totalorder %s3263_s5, %s2821_s16  ;;  %p2828_p8 = scmp.lt.s32.totalorder %s2826_s18, %s2821_s16 }
  0x95   : > { %p2824_p13 = pnand %p2823_p0, %p2822_p7  ;;  %p2829_p9 = por %p2828_p8, %p2827_p5 }
  0x97   : > { %p2825_p2 = pneg %p2824_p13 }
  0x99   : > { %p2830_p4 = pnand %p2829_p9, %p2825_p2 }
  0x9b   : > { %2833 = shalt.err (!%p2830_p4)
}
  0x9c   : > { %s2834_s24 = scalar_lea.vmem %s3265_s7, 64  ;;  %s2977_s22 = smov [#allocation3]  }
  0x9d   : > { %p2835_p1 = scmp.ne.s32.totalorder %s3265_s7, %s2834_s24  ;;  %s2839_s26 = sshll.u32 %s2977_s22, 4  ;;  %s2840_s26 = int_to_ptr.vmem [resolvable:$false] %s2839_s26 }
  0x9e   : > { %s2841_s9 = scalar_lea.vmem %s2840_s26, 128  ;;  %p2842_p11 = scmp.lt.s32.totalorder %s3265_s7, %s2840_s26 }
  0x9f   : > { %p2837_p7 = pnand %p2835_p1, %p2823_p0  ;;  %p2843_p10 = scmp.lt.s32.totalorder %s2841_s9, %s2834_s24 }
  0xa1   : > { %p2838_p13 = pneg %p2837_p7  ;;  %p2844_p6 = por %p2843_p10, %p2842_p11 }
  0xa3   : > { %p2845_p5 = pnand %p2844_p6, %p2838_p13 }
  0xa5   : > { %2848 = shalt.err (!%p2845_p5)
}
  0xa6   : > { %2465 = dma.hbm_to_vmem [thread:$0]  (!%p3269_p12), %s3263_s5, 64, %s3265_s7, %s592_s14  }
  0xa7   : > { %s2095_s16 = sshll.u32 %s2965_s30, 4  ;;  %s612_s18 = scalar_lea.vmem [#allocation6], %s3248_s25 }
  0xa8   : > { %s619_s2 = sshll.u32 %s612_s18, 4  ;;  %s3692_s4 = sld [smem:[#allocation33_spill]]  ;;  %s620_s2 = int_to_ptr.vmem [resolvable:$true] %s619_s2 }
  0xa9   : > { %s3693_s9 = sand.u32 1, %s2965_s30  }
  0xaa   : > { %s610_s24 = scalar_lea.sflag [#allocation7], %s3693_s9 }
  0xae   : > { %s617_s26 = scalar_lea.hbm %s3692_s4, %s2095_s16  ;;  %s2854_s5 = scalar_lea.hbm %s3692_s4, 32 }
  0xaf   : > { %s2849_s19 = scalar_lea.hbm %s617_s26, 16  ;;  %p2855_p2 = scmp.lt.s32.totalorder %s617_s26, %s3692_s4 }
  0xb0   : > { %p2850_p6 = scmp.ne.s32.totalorder %s617_s26, %s2849_s19  ;;  %p2856_p8 = scmp.lt.s32.totalorder %s2854_s5, %s2849_s19 }
  0xb2   : > { %p2852_p10 = pnand %p2850_p6, %p2823_p0  ;;  %p2857_p9 = por %p2856_p8, %p2855_p2 }
  0xb4   : > { %p2853_p11 = pneg %p2852_p10 }
  0xb6   : > { %p2858_p4 = pnand %p2857_p9, %p2853_p11 }
  0xb8   : > { %2861 = shalt.err (!%p2858_p4)
}
  0xb9   : > { %s2862_s25 = scalar_lea.vmem %s620_s2, 16  ;;  %s2978_s16 = smov [#allocation6]  }
  0xba   : > { %p2863_p1 = scmp.ne.s32.totalorder %s620_s2, %s2862_s25  ;;  %s2867_s18 = sshll.u32 %s2978_s16, 4  ;;  %s2868_s18 = int_to_ptr.vmem [resolvable:$false] %s2867_s18 }
  0xbb   : > { %s2869_s29 = scalar_lea.vmem %s2868_s18, 32  ;;  %p2870_p5 = scmp.lt.s32.totalorder %s620_s2, %s2868_s18 }
  0xbc   : > { %p2865_p7 = pnand %p2863_p1, %p2823_p0  ;;  %p2871_p6 = scmp.lt.s32.totalorder %s2869_s29, %s2862_s25 }
  0xbe   : > { %p2866_p13 = pneg %p2865_p7  ;;  %p2872_p10 = por %p2871_p6, %p2870_p5 }
  0xc0   : > { %p2873_p3 = pnand %p2872_p10, %p2866_p13 }
  0xc2   : > { %2876 = shalt.err (!%p2873_p3)
}
  0xc3   : > { %2468 = dma.hbm_to_vmem [thread:$0]  (!%p3269_p12), %s617_s26, 16, %s620_s2, %s610_s24  }
  0xc4   : > { %p3694_p11 = scmp.ne.s32.totalorder %s3672_s20, 0 }
  0xc5   : > { %s3323_s0 = sand.u32 (!%p3694_p11), 1, %s2957_s28   ;;  %p3695_p0 = scmp.ne.s32.totalorder (!%p3694_p11), %s3687_s3, 0 }
  0xc6   : > { %628 = sbr.rel (%p3694_p11) target bundleno = 3290 (0xcda), region = 92  ;;  %s2097_s19 = sshll.u32 (!%p3694_p11), %s3323_s0, 2 }
  0xc7   : > { %s631_s17 = scalar_lea.sflag (!%p3694_p11), [#allocation4], %s3323_s0  ;;  %s3327_s22 = scalar_lea.vmem (!%p3694_p11), [#allocation3], %s2097_s19 }
  0xcb   : > { %2920 = dma.done.wait (%p3695_p0), %s631_s17, 64  }
  0xcc   : > { %2922 = vsyncadd (%p3695_p0), %s631_s17, 4294967232  ;;  %s639_s8 = sand.u32 1, %s3112_s1   ;;  %s642_s2 = scalar_lea.vmem [#allocation6], %s3323_s0 }
  0xcd   : > { %s640_s20 = scalar_lea.sflag [#allocation7], %s639_s8 }
  0xce   : > { %2924 = dma.done.wait (%p3695_p0), %s640_s20, 16  }
  0xcf   : > { %2926 = vsyncadd (%p3695_p0), %s640_s20, 4294967280  ;;  %p3696_p3 = scmp.eq.s32.totalorder %s3112_s1, 0 }
  0xd1   : > { %2928 = dma.done.wait (%p3696_p3), [#allocation7], 16   ;;  %p3697_p12 = pmov %p3696_p3 }
  0xd2   : > { %p3698_p2 = pmov %p3696_p3 }
  0xd3   : > { %2930 = vsyncadd (%p3697_p12), [#allocation7], 4294967280 }
  0xd4   : > { %2932 = dma.done.wait (%p3698_p2), [#allocation10], 32   ;;  %p3699_p8 = pmov %p3698_p2 }
  0xd5   : > { %p3700_p9 = pmov %p3698_p2 }
  0xd6   : > { %2934 = vsyncadd (%p3699_p8), [#allocation10], 4294967264 }
  0xd7   : > { %2936 = dma.done.wait (%p3700_p9), [#allocation13], 272   ;;  %p3701_p4 = pmov %p3698_p2 }
  0xd8   : > { %p3702_p1 = pmov %p3698_p2 }
  0xd9   : > { %2938 = vsyncadd (%p3701_p4), [#allocation13], 4294967024 }
  0xda   : > { %2940 = dma.done.wait (%p3702_p1), [#allocation16], 1040   ;;  %p3703_p7 = pmov %p3702_p1 }
  0xdb   : > { %p3704_p13 = pmov %p3702_p1 }
  0xdc   : > { %2942 = vsyncadd (%p3703_p7), [#allocation16], 4294966256 }
  0xdd   : > { %2944 = dma.done.wait (%p3704_p13), [#allocation19], 1024   ;;  %p3705_p5 = pmov %p3702_p1 }
  0xde   : > { %v2979_v0 = vmov 0.0   ;;  %vm2980_vm0 = vmmov 0   ;;  %s3706_s9 = sld [smem:[#allocation34_spill]]  ;;  %v732_v9 = vld [vmem:[%s3327_s22] sm:$0xf]  ;;  %v2557_v17 = vld [vmem:[%s3633_s6 + $0x38] sm:$0xff]  }
  0xdf   : > { %2946 = vsyncadd (%p3705_p5), [#allocation19], 4294966272  ;;  %2243 = vmatprep.subr.bf16.mxu0 %v2979_v0  ;;  %2259 = vmatprep.mubr.msk.bf16.mxu0 %vm2980_vm0, %v2979_v0  ;;  %v2107_v10 = vld [vmem:[#allocation8] ss:$0 sm:$0xff]  ;;  %v2558_v18 = vld [vmem:[%s3633_s6 + $0x30] sm:$0xff]   ;;  %s2981_s24 = smov 64  }
  0xe0   : > { %2263 = vmatprep.subr.bf16.mxu1 %v2979_v0  ;;  %2279 = vmatprep.mubr.msk.bf16.mxu1 %vm2980_vm0, %v2979_v0  ;;  %v2559_v19 = vld [vmem:[%s3633_s6 + $0x28] sm:$0xff]   ;;  %v2560_v20 = vld [vmem:[%s3633_s6 + $0x20] sm:$0xff]   ;;  %v2561_v21 = vld [vmem:[%s3633_s6 + $0x18] sm:$0xff]   ;;  %s2982_s5 = smov 96   ;;  %vm996_vm1 = vcmask 64512   ;;  %vm1060_vm2 = vcmask 1043456  }
  0xe1   : > { %2264 = vmatpush3.bf16.msra.mxu1 %v2557_v17  ;;  %v2562_v22 = vld [vmem:[%s3633_s6 + $0x10] sm:$0xff]   ;;  %v2563_v23 = vld [vmem:[%s3633_s6 + $0x8] sm:$0xff]   ;;  %v2564_v24 = vld [vmem:[%s3633_s6] sm:$0xff]   ;;  %s2983_s7 = smov 80   ;;  %s2985_s14 = smov 120   ;;  %vm1105_vm3 = vcmask 60416  }
  0xe2   : > { %2265 = vmatprep.subr.bf16.mxu1 %v2979_v0  ;;  %v2116_v34 = vld [vmem:[#allocation9] ss:$0 sm:$0xff]  ;;  %v2117_v36 = vld [vmem:[#allocation11] ss:$0 sm:$0xff]  ;;  %v2118_v40 = vld [vmem:[#allocation12] ss:$0 sm:$0xff] }
  0xe3   : > { %v3454_v51 = vld [vmem:[%s642_s2] ss:$0 sm:$0xff]  ;;  %s2984_s2 = smov 88   ;;  %s2986_s25 = smov 112   ;;  %vm1224_vm4 = vcmask 126016   ;;  %vm1343_vm5 = vcmask 191616  }
  0xe4   : > { %v2549_v1 = vld [vmem:[%s3706_s9 + $0x38] sm:$0xff]   ;;  %v2550_v2 = vld [vmem:[%s3706_s9 + $0x30] sm:$0xff]   ;;  %v2551_v3 = vld [vmem:[%s3706_s9 + $0x28] sm:$0xff]   ;;  %s2987_s16 = smov 72   ;;  %s2988_s18 = smov 104   ;;  %vm1462_vm6 = vcmask 257216  }
  0xe5   : > { %2244 = vmatpush3.bf16.msra.mxu0 %v2549_v1  ;;  %v2552_v4 = vld [vmem:[%s3706_s9 + $0x20] sm:$0xff]   ;;  %v2553_v5 = vld [vmem:[%s3706_s9 + $0x18] sm:$0xff]   ;;  %v2554_v6 = vld [vmem:[%s3706_s9 + $0x10] sm:$0xff]   ;;  %2266 = vmatpush3.bf16.msra.mxu1 %v2558_v18  ;;  %s2989_s29 = smov 48   ;;  %s2990_s19 = smov 56   ;;  %vm1488_vm7 = vcmask 261120  }
  0xe6   : > { %2245 = vmatprep.subr.bf16.mxu0 %v2979_v0  ;;  %v2555_v7 = vld [vmem:[%s3706_s9 + $0x8] sm:$0xff]   ;;  %v2556_v8 = vld [vmem:[%s3706_s9] sm:$0xff]   ;;  %2267 = vmatprep.subr.bf16.mxu1 %v2979_v0  ;;  %s2991_s17 = smov 40   ;;  %s2992_s8 = smov 8  }
  0xe7   : > { %s2993_s20 = smov 16   ;;  %s2994_s3 = smov 24  }
  0xe8   : > { %s3708_s22 = sld [smem:[#allocation44_spill]]  ;;  %p3709_p10 = scmp.ne.s32.totalorder %s3688_s23, 0 }
  0xe9   : > { %2246 = vmatpush3.bf16.msra.mxu0 %v2550_v2  ;;  %2268 = vmatpush3.bf16.msra.mxu1 %v2559_v19 }
  0xea   : > { %2247 = vmatprep.subr.bf16.mxu0 %v2979_v0  ;;  %2269 = vmatprep.subr.bf16.mxu1 %v2979_v0 }
  0xed   : > { %2248 = vmatpush3.bf16.msra.mxu0 %v2551_v3  ;;  %2270 = vmatpush3.bf16.msra.mxu1 %v2560_v20 }
  0xee   : > { %2249 = vmatprep.subr.bf16.mxu0 %v2979_v0  ;;  %2271 = vmatprep.subr.bf16.mxu1 %v2979_v0 }
  0xf1   : > { %2250 = vmatpush3.bf16.msra.mxu0 %v2552_v4  ;;  %2272 = vmatpush3.bf16.msra.mxu1 %v2561_v21 }
  0xf2   : > { %2251 = vmatprep.subr.bf16.mxu0 %v2979_v0  ;;  %2273 = vmatprep.subr.bf16.mxu1 %v2979_v0 }
  0xf5   : > { %2252 = vmatpush3.bf16.msra.mxu0 %v2553_v5  ;;  %2274 = vmatpush3.bf16.msra.mxu1 %v2562_v22 }
  0xf6   : > { %2253 = vmatprep.subr.bf16.mxu0 %v2979_v0  ;;  %2275 = vmatprep.subr.bf16.mxu1 %v2979_v0 }
  0xf9   : > { %2254 = vmatpush3.bf16.msra.mxu0 %v2554_v6  ;;  %2276 = vmatpush3.bf16.msra.mxu1 %v2563_v23 }
  0xfa   : > { %2255 = vmatprep.subr.bf16.mxu0 %v2979_v0  ;;  %2277 = vmatprep.subr.bf16.mxu1 %v2979_v0 }
  0xfd   : > { %2256 = vmatpush3.bf16.msra.mxu0 %v2555_v7  ;;  %2278 = vmatpush3.bf16.msra.mxu1 %v2564_v24 }
  0xfe   : > { %2257 = vmatprep.subr.bf16.mxu0 %v2979_v0  ;;  %2301 = vmatprep.subr.bf16.mxu1 %v2979_v0 }
 0x101   : > { %2258 = vmatpush3.bf16.msra.mxu0 %v2556_v8 }
 0x102   : > { %2283 = vmatprep.subr.bf16.mxu0 %v2979_v0 }
 0x104   : > { %2260 = vmatmul.mubr.bf16.vlgmr.msra.gmra.mxu0 %v732_v9 }
 0x105   : > { %2285 = vmatprep.mubr.msk.bf16.mxu0 %vm2980_vm0, %v2979_v0 }
 0x1c4   : > { %v838_v11 = vpop.f32.mrf.mxu0 }
 0x1c5   : > { %v3400_v12 = vadd.f32 %v2107_v10, %v838_v11 }
 0x1c6   : > { %v2261_v13 = vpop.f32.mrf.mxu0 }
 0x1c7   : > { %846 = vadd.xlane.f32.xlu0 %v3400_v12  ;;  %v849_v15 = vmul.f32 %v3400_v12, %v3400_v12 }
 0x1c8   : > { %v841_v14 = vpop.f32.mrf.mxu0 }
 0x1ca   : > { %v2262_v16 = vpop.f32.mrf.mxu0 }
 0x1cb   : > { %850 = vadd.xlane.f32.xlu0 %v849_v15 }
 0x250   : > { %v847_v25 = vpop.xlane.xlu0 %846 }
 0x251   : > { %v848_v26 = vmul.f32 0.03125, %v847_v25 }
 0x253   : > { %v853_v28 = vmul.f32 %v848_v26, %v848_v26  ;;  %v855_v32 = vsub.f32 %v3400_v12, %v848_v26 }
 0x254   : > { %v851_v27 = vpop.xlane.xlu0 %850 }
 0x255   : > { %v852_v29 = vmul.f32 0.03125, %v851_v27 }
 0x257   : > { %v854_v30 = vsub.f32 %v852_v29, %v853_v28 }
 0x259   : > { %v856_v31 = vadd.f32 1e-05, %v854_v30 }
 0x25b   : > { %2591 = vrsqrt.f32 %v856_v31 }
 0x268   : > { %v2592_v33 = vpop.eup %2591 }
 0x269   : > { %v858_v35 = vmul.f32 %v2592_v33, %v855_v32 }
 0x26b   : > { %v865_v37 = vmul.f32 %v2116_v34, %v858_v35 }
 0x26d   : > { %v872_v38 = vadd.f32 %v2117_v36, %v865_v37 }
 0x26f   : > { %v873_v39 = vpack.c.bf16 %v872_v38, %v872_v38 }
 0x271   : > { %2280 = vmatmul.mubr.bf16.vlgmr.msra.gmra.mxu1 %v873_v39 }
 0x272   : > { %2303 = vmatprep.mubr.msk.bf16.mxu1 %vm2980_vm0, %v2979_v0 }
 0x331   : > { %v979_v41 = vpop.f32.mrf.mxu1 }
 0x332   : > { %v980_v42 = vadd.f32 %v2118_v40, %v979_v41 }
 0x333   : > { %v2281_v43 = vpop.f32.mrf.mxu1 }
 0x334   : > { %v3440_v44 = vpack.c.bf16 %v980_v42, %v980_v42 }
 0x335   : > { %v982_v45 = vpop.f32.mrf.mxu1 }
 0x336   : > { %1055 = vrot.lane.b32.xlu0 %v3440_v44, %s2981_s24  ;;  %994 = vrot.lane.b32.xlu1 %v3440_v44, %s2982_s5  ;;  %s1903_s5 = scalar_lea.sflag [#allocation5], %s3323_s0 }
 0x337   : > { %v2282_v46 = vpop.f32.mrf.mxu1 }
 0x3a8   : > { %v995_v47 = vpop.permute.xlu1 %994  ;;  %v1056_v49 = vpop.permute.xlu0 %1055 }
 0x3a9   : > { %v1001_v48 = vsel %vm996_vm1, %v995_v47, 0  ;;  %v1062_v50 = vsel %vm1060_vm2, %v1056_v49, 0 }
 0x3aa   : > { %2284 = vmatpush3.bf16.xpose.msra.mxu0 %v1001_v48 }
 0x3ab   : > { %2289 = vmatprep.subr.bf16.mxu0 %v2979_v0 }
 0x3b1   : > { %2286 = vmatmul.mubr.msk.bf16.vlgmr.msra.gmra.mxu0 %vm996_vm1, %v3440_v44 }
 0x3b2   : > { %2290 = vmatpush3.bf16.msra.mxu0 %v1062_v50  ;;  %2291 = vmatprep.mubr.msk.bf16.mxu0 %vm2980_vm0, %v2979_v0 }
 0x3b3   : > { %2295 = vmatprep.subr.bf16.mxu0 %v2979_v0 }
 0x471   : > { %v1037_v52 = vpop.f32.mrf.mxu0 }
 0x472   : > { %v1038_v53 = vadd.f32 %v3454_v51, %v1037_v52 }
 0x473   : > { %v2287_v54 = vpop.f32.mrf.mxu0 }
 0x474   : > { %v1043_v55 = vsel %vm996_vm1, %v1038_v53, -inf }
 0x475   : > { %1044 = vmax.xlane.f32.xlu1 %v1043_v55  ;;  %v1040_v56 = vpop.f32.mrf.mxu0 }
 0x477   : > { %v2288_v57 = vpop.f32.mrf.mxu0 }
 0x486   : > { %1228 = vrot.lane.b32.xlu1 %v3440_v44, %s2983_s7 }
 0x4fe   : > { %v1045_v58 = vpop.xlane.xlu1 %1044 }
 0x4ff   : > { %v1046_v59 = vsub.f32 %v1038_v53, %v1045_v58 }
 0x501   : > { %v1047_v60 = vmul.f32 1.442695, %v1046_v59 }
 0x502   : > { %v1229_v7 = vpop.permute.xlu1 %1228 }
 0x503   : > { %2593 = vpow2.f32 %v1047_v60  ;;  %v1234_v9 = vsel %vm996_vm1, %v1229_v7, 0 }
 0x510   : > { %v2594_v61 = vpop.eup %2593 }
 0x511   : > { %v1049_v62 = vsel %vm996_vm1, %v2594_v61, 0.0 }
 0x512   : > { %1050 = vadd.xlane.f32.xlu0 %v1049_v62 }
 0x528   : > { %1109 = vrot.lane.b32.xlu0 %v3440_v44, %s2984_s2  ;;  %s2995_s2 = smov [#allocation20]  }
 0x52c   : > { %1107 = vrot.lane.b32.xlu0 %v3440_v44, %s2985_s14  ;;  %s2881_s14 = sshll.u32 %s2995_s2, 4  ;;  %s2882_s14 = int_to_ptr.vmem [resolvable:$false] %s2881_s14 }
 0x530   : > { %1226 = vrot.lane.b32.xlu0 %v3440_v44, %s2986_s25 }
 0x534   : > { %1347 = vrot.lane.b32.xlu0 %v3440_v44, %s2987_s16 }
 0x538   : > { %1345 = vrot.lane.b32.xlu0 %v3440_v44, %s2988_s18 }
 0x59b   : > { %v1051_v63 = vpop.xlane.xlu0 %1050 }
 0x59c   : > { %2595 = vrcp.f32 %v1051_v63 }
 0x59f   : > { %v1110_v2 = vpop.permute.xlu0 %1109 }
 0x5a0   : > { %v1115_v5 = vsel %vm996_vm1, %v1110_v2, 0 }
 0x5a3   : > { %v1108_v6 = vpop.permute.xlu0 %1107 }
 0x5a7   : > { %v1227_v8 = vpop.permute.xlu0 %1226 }
 0x5a9   : > { %v2596_v1 = vpop.eup %2595 }
 0x5aa   : > { %v1053_v3 = vmul.f32 %v2596_v1, %v2594_v61 }
 0x5ab   : > { %v1348_v10 = vpop.permute.xlu0 %1347 }
 0x5ac   : > { %v1054_v4 = vpack.c.bf16 %v1053_v3, %v1053_v3  ;;  %v1353_v11 = vsel %vm996_vm1, %v1348_v10, 0 }
 0x5ae   : > { %2292 = vmatmul.mubr.msk.bf16.vlgmr.msra.gmra.mxu0 %vm996_vm1, %v1054_v4 }
 0x5af   : > { %2296 = vmatpush3.bf16.xpose.msra.mxu0 %v1115_v5  ;;  %2297 = vmatprep.mubr.msk.bf16.mxu0 %vm2980_vm0, %v2979_v0  ;;  %v1346_v13 = vpop.permute.xlu0 %1345 }
 0x5b0   : > { %2307 = vmatprep.subr.bf16.mxu0 %v2979_v0 }
 0x5b6   : > { %2298 = vmatmul.mubr.msk.bf16.vlgmr.msra.gmra.mxu0 %vm996_vm1, %v1108_v6 }
 0x5b7   : > { %2308 = vmatpush3.bf16.xpose.msra.mxu0 %v1234_v9  ;;  %2309 = vmatprep.mubr.msk.bf16.mxu0 %vm2980_vm0, %v2979_v0 }
 0x5b8   : > { %2319 = vmatprep.subr.bf16.mxu0 %v2979_v0 }
 0x5be   : > { %2310 = vmatmul.mubr.msk.bf16.vlgmr.msra.gmra.mxu0 %vm996_vm1, %v1227_v8 }
 0x5bf   : > { %2320 = vmatpush3.bf16.xpose.msra.mxu0 %v1353_v11  ;;  %2321 = vmatprep.mubr.msk.bf16.mxu0 %vm2980_vm0, %v2979_v0 }
 0x5c0   : > { %2331 = vmatprep.subr.bf16.mxu0 %v2979_v0 }
 0x5c6   : > { %2322 = vmatmul.mubr.msk.bf16.vlgmr.msra.gmra.mxu0 %vm996_vm1, %v1346_v13  ;;  %v2565_v13 = vld [vmem:[#allocation14 + $0x8] sm:$0xff]  }
 0x5c7   : > { %2335 = vmatprep.mubr.msk.bf16.mxu0 %vm2980_vm0, %v2979_v0  ;;  %2332 = vmatpush3.bf16.msra.mxu0 %v2565_v13 }
 0x5c8   : > { %2333 = vmatprep.subr.bf16.mxu0 %v2979_v0 }
 0x66e   : > { %v1098_v14 = vpop.f32.mrf.mxu0 }
 0x66f   : > { %v1104_v15 = vpack.c.bf16 %v1098_v14, %v1098_v14 }
 0x670   : > { %v2293_v16 = vpop.f32.mrf.mxu0 }
 0x671   : > { %1106 = vst.msk [vmem:[#allocation2] sm:$0xf] %vm1105_vm3, %v1104_v15  ;;  %v2566_v15 = vld [vmem:[#allocation14] sm:$0xff]  }
 0x672   : > { %v1101_v17 = vpop.f32.mrf.mxu0  ;;  %2334 = vmatpush3.bf16.msra.mxu0 %v2566_v15 }
 0x673   : > { %2359 = vmatprep.subr.bf16.mxu0 %v2979_v0 }
 0x674   : > { %v2294_v18 = vpop.f32.mrf.mxu0 }
 0x676   : > { %v1151_v19 = vpop.f32.mrf.mxu0 }
 0x677   : > { %v1152_v20 = vadd.f32 %v3454_v51, %v1151_v19 }
 0x678   : > { %v2299_v21 = vpop.f32.mrf.mxu0 }
 0x679   : > { %v1157_v22 = vsel %vm996_vm1, %v1152_v20, -inf }
 0x67a   : > { %1158 = vmax.xlane.f32.xlu0 %v1157_v22  ;;  %v1154_v23 = vpop.f32.mrf.mxu0 }
 0x67c   : > { %v2300_v24 = vpop.f32.mrf.mxu0 }
 0x67e   : > { %v1270_v25 = vpop.f32.mrf.mxu0 }
 0x67f   : > { %v1271_v26 = vadd.f32 %v3454_v51, %v1270_v25 }
 0x680   : > { %v2311_v27 = vpop.f32.mrf.mxu0 }
 0x681   : > { %v1276_v28 = vsel %vm996_vm1, %v1271_v26, -inf }
 0x682   : > { %1277 = vmax.xlane.f32.xlu1 %v1276_v28  ;;  %v1273_v29 = vpop.f32.mrf.mxu0 }
 0x683   : > { %v2567_v29 = vld [vmem:[%s3639_s12 + $0x38] sm:$0xff]  }
 0x684   : > { %v2312_v30 = vpop.f32.mrf.mxu0 }
 0x685   : > { %v2139_v30 = vld [vmem:[#allocation15] ss:$0 sm:$0xff] }
 0x686   : > { %v1389_v31 = vpop.f32.mrf.mxu0 }
 0x687   : > { %v1390_v32 = vadd.f32 %v3454_v51, %v1389_v31 }
 0x688   : > { %v2323_v33 = vpop.f32.mrf.mxu0 }
 0x689   : > { %v1395_v34 = vsel %vm996_vm1, %v1390_v32, -inf }
 0x68a   : > { %1396 = vmax.xlane.f32.xlu0 %v1395_v34  ;;  %v1392_v35 = vpop.f32.mrf.mxu0 }
 0x68c   : > { %v2324_v36 = vpop.f32.mrf.mxu0 }
 0x693   : > { %1288 = vrot.lane.b32.xlu1 %v3440_v44, %s2989_s29  ;;  %s3707_s29 = sld [smem:[#allocation43_spill]] }
 0x703   : > { %v1159_v37 = vpop.xlane.xlu0 %1158 }
 0x704   : > { %v1160_v38 = vsub.f32 %v1152_v20, %v1159_v37 }
 0x706   : > { %v1161_v39 = vmul.f32 1.442695, %v1160_v38  ;;  %v2568_v38 = vld [vmem:[%s3639_s12 + $0x30] sm:$0xff]  }
 0x708   : > { %2597 = vpow2.f32 %v1161_v39  ;;  %v2570_v39 = vld [vmem:[%s3639_s12 + $0x20] sm:$0xff]  }
 0x70b   : > { %v1278_v40 = vpop.xlane.xlu1 %1277 }
 0x70c   : > { %v1279_v41 = vsub.f32 %v1271_v26, %v1278_v40  ;;  %v2571_v40 = vld [vmem:[%s3639_s12 + $0x18] sm:$0xff]  }
 0x70e   : > { %v1280_v42 = vmul.f32 1.442695, %v1279_v41  ;;  %v2572_v41 = vld [vmem:[%s3639_s12 + $0x10] sm:$0xff]  }
 0x70f   : > { %v1289_v55 = vpop.permute.xlu1 %1288 }
 0x710   : > { %2599 = vpow2.f32 %v1280_v42  ;;  %v1294_v62 = vsel %vm1060_vm2, %v1289_v55, 0  ;;  %v2573_v42 = vld [vmem:[%s3639_s12 + $0x8] sm:$0xff]  }
 0x713   : > { %v1397_v43 = vpop.xlane.xlu0 %1396 }
 0x714   : > { %v1398_v45 = vsub.f32 %v1390_v32, %v1397_v43  ;;  %v2574_v43 = vld [vmem:[%s3639_s12] sm:$0xff]  }
 0x715   : > { %v2598_v46 = vpop.eup %2597 }
 0x716   : > { %v1399_v47 = vmul.f32 1.442695, %v1398_v45  ;;  %v1163_v48 = vsel %vm996_vm1, %v2598_v46, 0.0  ;;  %v2575_v45 = vld [vmem:[#allocation17 + $0x38] sm:$0xff]  }
 0x717   : > { %1164 = vadd.xlane.f32.xlu0 %v1163_v48  ;;  %v2578_v48 = vld [vmem:[#allocation17 + $0x20] sm:$0xff]  }
 0x718   : > { %2601 = vpow2.f32 %v1399_v47  ;;  %v2577_v47 = vld [vmem:[#allocation17 + $0x28] sm:$0xff]  }
 0x71d   : > { %v2600_v49 = vpop.eup %2599 }
 0x71e   : > { %v1282_v50 = vsel %vm996_vm1, %v2600_v49, 0.0 }
 0x71f   : > { %1283 = vadd.xlane.f32.xlu0 %v1282_v50  ;;  %v2580_v50 = vld [vmem:[#allocation17 + $0x10] sm:$0xff]  }
 0x725   : > { %v2602_v51 = vpop.eup %2601 }
 0x726   : > { %v1401_v52 = vsel %vm996_vm1, %v2602_v51, 0.0 }
 0x727   : > { %1402 = vadd.xlane.f32.xlu1 %v1401_v52 }
 0x735   : > { %1169 = vrot.lane.b32.xlu0 %v3440_v44, %s2990_s19  ;;  %s2106_s19 = sshll.u32 %s3323_s0, 3 }
 0x738   : > { %1407 = vrot.lane.b32.xlu1 %v3440_v44, %s2991_s17  ;;  %s2173_s17 = sshll.u32 %s3112_s1, 7  ;;  %s2883_s1 = scalar_lea.vmem %s2882_s14, 256 }
 0x739   : > { %s3590_s24 = scalar_lea.hbm %s3708_s22, %s2173_s17 }
 0x7a0   : > { %v1165_v53 = vpop.xlane.xlu0 %1164 }
 0x7a1   : > { %2603 = vrcp.f32 %v1165_v53 }
 0x7a8   : > { %v1284_v54 = vpop.xlane.xlu0 %1283 }
 0x7a9   : > { %2605 = vrcp.f32 %v1284_v54 }
 0x7ac   : > { %v1170_v56 = vpop.permute.xlu0 %1169 }
 0x7ad   : > { %v1175_v57 = vsel %vm1060_vm2, %v1170_v56, 0 }
 0x7ae   : > { %v2604_v58 = vpop.eup %2603  ;;  %2302 = vmatpush3.bf16.msra.mxu1 %v1175_v57 }
 0x7af   : > { %2313 = vmatprep.subr.bf16.mxu1 %v2979_v0  ;;  %v1167_v59 = vmul.f32 %v2604_v58, %v2598_v46  ;;  %v2576_v46 = vld [vmem:[#allocation17 + $0x30] sm:$0xff]  }
 0x7b0   : > { %v1403_v60 = vpop.xlane.xlu1 %1402 }
 0x7b1   : > { %2607 = vrcp.f32 %v1403_v60  ;;  %v1168_v61 = vpack.c.bf16 %v1167_v59, %v1167_v59  ;;  %v2143_v60 = vld [vmem:[%s3637_s10] ss:$0 sm:$0xff] }
 0x7b3   : > { %2304 = vmatmul.mubr.msk.bf16.vlgmr.msra.gmra.mxu1 %vm996_vm1, %v1168_v61 }
 0x7b4   : > { %2314 = vmatpush3.bf16.msra.mxu1 %v1294_v62  ;;  %2315 = vmatprep.mubr.msk.bf16.mxu1 %vm2980_vm0, %v2979_v0  ;;  %v1408_v1 = vpop.permute.xlu1 %1407  ;;  %v2144_v62 = vld [vmem:[%s3638_s11] ss:$0 sm:$0xff] }
 0x7b5   : > { %2325 = vmatprep.subr.bf16.mxu1 %v2979_v0  ;;  %v1413_v3 = vsel %vm1060_vm2, %v1408_v1, 0 }
 0x7b6   : > { %v2606_v44 = vpop.eup %2605 }
 0x7b7   : > { %v1286_v63 = vmul.f32 %v2606_v44, %v2600_v49  ;;  %v2579_v49 = vld [vmem:[#allocation17 + $0x18] sm:$0xff]  }
 0x7b9   : > { %v1287_v2 = vpack.c.bf16 %v1286_v63, %v1286_v63 }
 0x7bb   : > { %2316 = vmatmul.mubr.msk.bf16.vlgmr.msra.gmra.mxu1 %vm996_vm1, %v1287_v2  ;;  %v2581_v2 = vld [vmem:[#allocation17 + $0x8] sm:$0xff]  }
 0x7bc   : > { %2326 = vmatpush3.bf16.msra.mxu1 %v1413_v3  ;;  %2327 = vmatprep.mubr.msk.bf16.mxu1 %vm2980_vm0, %v2979_v0  ;;  %v2582_v3 = vld [vmem:[#allocation17] sm:$0xff]  }
 0x7bd   : > { %2339 = vmatprep.subr.bf16.mxu1 %v2979_v0 }
 0x7be   : > { %v2608_v4 = vpop.eup %2607 }
 0x7bf   : > { %v1405_v5 = vmul.f32 %v2608_v4, %v2602_v51  ;;  %v2583_v4 = vld [vmem:[#allocation18 + $0x38] sm:$0xff]  }
 0x7c1   : > { %v1406_v6 = vpack.c.bf16 %v1405_v5, %v1405_v5  ;;  %v2584_v5 = vld [vmem:[#allocation18 + $0x30] sm:$0xff]  }
 0x7c3   : > { %2328 = vmatmul.mubr.msk.bf16.vlgmr.msra.gmra.mxu1 %vm996_vm1, %v1406_v6  ;;  %v2585_v6 = vld [vmem:[#allocation18 + $0x28] sm:$0xff]  }
 0x7c4   : > { %2355 = vmatprep.mubr.msk.bf16.mxu1 %vm2980_vm0, %v2979_v0  ;;  %2340 = vmatpush3.bf16.msra.mxu1 %v2567_v29 }
 0x7c5   : > { %2341 = vmatprep.subr.bf16.mxu1 %v2979_v0 }
 0x7c8   : > { %2342 = vmatpush3.bf16.msra.mxu1 %v2568_v38 }
 0x7c9   : > { %2343 = vmatprep.subr.bf16.mxu1 %v2979_v0 }
 0x873   : > { %v1211_v7 = vpop.f32.mrf.mxu1 }
 0x874   : > { %v2176_v8 = vpack.c.bf16 %v1211_v7, %v1211_v7  ;;  %v2586_v7 = vld [vmem:[#allocation18 + $0x20] sm:$0xff]  }
 0x875   : > { %v2305_v9 = vpop.f32.mrf.mxu1 }
 0x876   : > { %1221 = vrot.lane.b32.xlu1 %v2176_v8, %s2992_s8  ;;  %v2587_v8 = vld [vmem:[#allocation18 + $0x18] sm:$0xff]   ;;  %v2588_v9 = vld [vmem:[#allocation18 + $0x10] sm:$0xff]   ;;  %s730_s8 = scalar_lea.vmem [#allocation20], %s2106_s19 }
 0x877   : > { %v1214_v10 = vpop.f32.mrf.mxu1 }
 0x878   : > { %v2145_v10 = vld [vmem:[%s3640_s13] ss:$0 sm:$0xff] }
 0x879   : > { %v2306_v11 = vpop.f32.mrf.mxu1 }
 0x87b   : > { %v1330_v14 = vpop.f32.mrf.mxu1 }
 0x87c   : > { %v2177_v16 = vpack.c.bf16 %v1330_v14, %v1330_v14 }
 0x87d   : > { %v2317_v17 = vpop.f32.mrf.mxu1 }
 0x87e   : > { %1340 = vrot.lane.b32.xlu0 %v2177_v16, %s2993_s20  ;;  %s1916_s20 = sshll.u32 %s730_s8, 4  ;;  %s1917_s20 = int_to_ptr.vmem [resolvable:$true] %s1916_s20 }
 0x87f   : > { %v1333_v18 = vpop.f32.mrf.mxu1  ;;  %s2877_s7 = scalar_lea.vmem %s1917_s20, 128  ;;  %p2884_p3 = scmp.lt.s32.totalorder %s1917_s20, %s2882_s14 }
 0x880   : > { %p2878_p6 = scmp.ne.s32.totalorder %s1917_s20, %s2877_s7  ;;  %p2885_p12 = scmp.lt.s32.totalorder %s2883_s1, %s2877_s7 }
 0x881   : > { %v2318_v19 = vpop.f32.mrf.mxu1 }
 0x882   : > { %v2589_v19 = vld [vmem:[#allocation18 + $0x8] sm:$0xff]   ;;  %p2879_p11 = pnand %p2878_p6, %p3709_p10  ;;  %p2886_p2 = por %p2885_p12, %p2884_p3 }
 0x883   : > { %v1449_v20 = vpop.f32.mrf.mxu1 }
 0x884   : > { %v2178_v21 = vpack.c.bf16 %v1449_v20, %v1449_v20  ;;  %v2590_v20 = vld [vmem:[#allocation18] sm:$0xff]   ;;  %p2880_p0 = pneg %p2879_p11 }
 0x885   : > { %v2329_v22 = vpop.f32.mrf.mxu1 }
 0x886   : > { %1459 = vrot.lane.b32.xlu1 %v2178_v21, %s2994_s3  ;;  %v2154_v21 = vld [vmem:[%s3642_s15] ss:$0 sm:$0xff]  ;;  %p2887_p8 = pnand %p2886_p2, %p2880_p0 }
 0x887   : > { %v1452_v23 = vpop.f32.mrf.mxu1 }
 0x889   : > { %v2330_v24 = vpop.f32.mrf.mxu1 }
 0x8e8   : > { %v1222_v25 = vpop.permute.xlu1 %1221 }
 0x8e9   : > { %1225 = vst.msk [vmem:[#allocation2] sm:$0xf] %vm1224_vm4, %v1222_v25 }
 0x8f0   : > { %v1341_v26 = vpop.permute.xlu0 %1340 }
 0x8f1   : > { %1344 = vst.msk [vmem:[#allocation2] sm:$0xf] %vm1343_vm5, %v1341_v26 }
 0x8f8   : > { %v1460_v27 = vpop.permute.xlu1 %1459 }
 0x8f9   : > { %1463 = vst.msk [vmem:[#allocation2] sm:$0xf] %vm1462_vm6, %v1460_v27 }
 0x900   : > { %v1464_v28 = vld [vmem:[#allocation2] sm:$0xf] }
 0x901   : > { %2336 = vmatmul.mubr.msk.bf16.vlgmr.msra.gmra.mxu0 %vm1488_vm7, %v1464_v28 }
 0x902   : > { %2375 = vmatprep.mubr.msk.bf16.mxu0 %vm2980_vm0, %v2979_v0  ;;  %2360 = vmatpush3.bf16.msra.mxu0 %v2575_v45 }
 0x903   : > { %2361 = vmatprep.subr.bf16.mxu0 %v2979_v0 }
 0x906   : > { %2362 = vmatpush3.bf16.msra.mxu0 %v2576_v46 }
 0x907   : > { %2363 = vmatprep.subr.bf16.mxu0 %v2979_v0 }
 0x90a   : > { %2364 = vmatpush3.bf16.msra.mxu0 %v2577_v47 }
 0x90b   : > { %2365 = vmatprep.subr.bf16.mxu0 %v2979_v0 }
 0x90e   : > { %2366 = vmatpush3.bf16.msra.mxu0 %v2578_v48 }
 0x90f   : > { %2367 = vmatprep.subr.bf16.mxu0 %v2979_v0 }
 0x912   : > { %2368 = vmatpush3.bf16.msra.mxu0 %v2579_v49 }
 0x913   : > { %2369 = vmatprep.subr.bf16.mxu0 %v2979_v0 }
 0x916   : > { %2370 = vmatpush3.bf16.msra.mxu0 %v2580_v50 }
 0x917   : > { %2371 = vmatprep.subr.bf16.mxu0 %v2979_v0 }
 0x91a   : > { %2372 = vmatpush3.bf16.msra.mxu0 %v2581_v2 }
 0x91b   : > { %2373 = vmatprep.subr.bf16.mxu0 %v2979_v0 }
 0x91e   : > { %2374 = vmatpush3.bf16.msra.mxu0 %v2582_v3 }
 0x9c1   : > { %v1526_v31 = vpop.f32.mrf.mxu0 }
 0x9c2   : > { %v1527_v32 = vadd.f32 %v2139_v30, %v1526_v31 }
 0x9c3   : > { %v2337_v33 = vpop.f32.mrf.mxu0 }
 0x9c4   : > { %v3519_v34 = vadd.f32 %v1527_v32, %v3400_v12  ;;  %v2569_v12 = vld [vmem:[%s3639_s12 + $0x28] sm:$0xff]  }
 0x9c5   : > { %v1529_v35 = vpop.f32.mrf.mxu0  ;;  %2344 = vmatpush3.bf16.msra.mxu1 %v2569_v12 }
 0x9c6   : > { %1535 = vadd.xlane.f32.xlu0 %v3519_v34  ;;  %v1538_v36 = vmul.f32 %v3519_v34, %v3519_v34  ;;  %2345 = vmatprep.subr.bf16.mxu1 %v2979_v0 }
 0x9c7   : > { %v2338_v37 = vpop.f32.mrf.mxu0 }
 0x9c8   : > { %1539 = vadd.xlane.f32.xlu1 %v1538_v36 }
 0x9c9   : > { %2346 = vmatpush3.bf16.msra.mxu1 %v2570_v39 }
 0x9ca   : > { %2347 = vmatprep.subr.bf16.mxu1 %v2979_v0 }
 0x9cd   : > { %2348 = vmatpush3.bf16.msra.mxu1 %v2571_v40 }
 0x9ce   : > { %2349 = vmatprep.subr.bf16.mxu1 %v2979_v0 }
 0x9d1   : > { %2350 = vmatpush3.bf16.msra.mxu1 %v2572_v41 }
 0x9d2   : > { %2351 = vmatprep.subr.bf16.mxu1 %v2979_v0 }
 0x9d5   : > { %2352 = vmatpush3.bf16.msra.mxu1 %v2573_v42 }
 0x9d6   : > { %2353 = vmatprep.subr.bf16.mxu1 %v2979_v0 }
 0x9d9   : > { %2354 = vmatpush3.bf16.msra.mxu1 %v2574_v43 }
 0x9da   : > { %2379 = vmatprep.subr.bf16.mxu1 %v2979_v0 }
 0xa4f   : > { %v1536_v51 = vpop.xlane.xlu0 %1535 }
 0xa50   : > { %v1537_v52 = vmul.f32 0.03125, %v1536_v51 }
 0xa51   : > { %v1540_v53 = vpop.xlane.xlu1 %1539 }
 0xa52   : > { %v1542_v54 = vmul.f32 %v1537_v52, %v1537_v52  ;;  %v1541_v55 = vmul.f32 0.03125, %v1540_v53  ;;  %v1544_v58 = vsub.f32 %v3519_v34, %v1537_v52 }
 0xa54   : > { %v1543_v56 = vsub.f32 %v1541_v55, %v1542_v54 }
 0xa56   : > { %v1545_v57 = vadd.f32 1e-05, %v1543_v56 }
 0xa58   : > { %2609 = vrsqrt.f32 %v1545_v57 }
 0xa65   : > { %v2610_v59 = vpop.eup %2609 }
 0xa66   : > { %v1547_v61 = vmul.f32 %v2610_v59, %v1544_v58 }
 0xa68   : > { %v1554_v44 = vmul.f32 %v2143_v60, %v1547_v61 }
 0xa6a   : > { %v1561_v63 = vadd.f32 %v2144_v62, %v1554_v44 }
 0xa6c   : > { %v1562_v1 = vpack.c.bf16 %v1561_v63, %v1561_v63 }
 0xa6e   : > { %2356 = vmatmul.mubr.bf16.vlgmr.msra.gmra.mxu1 %v1562_v1 }
 0xa6f   : > { %2395 = vmatprep.mubr.msk.bf16.mxu1 %vm2980_vm0, %v2979_v0  ;;  %2380 = vmatpush3.bf16.msra.mxu1 %v2583_v4 }
 0xa70   : > { %2381 = vmatprep.subr.bf16.mxu1 %v2979_v0 }
 0xa73   : > { %2382 = vmatpush3.bf16.msra.mxu1 %v2584_v5 }
 0xa74   : > { %2383 = vmatprep.subr.bf16.mxu1 %v2979_v0 }
 0xa77   : > { %2384 = vmatpush3.bf16.msra.mxu1 %v2585_v6 }
 0xa78   : > { %2385 = vmatprep.subr.bf16.mxu1 %v2979_v0 }
 0xa7b   : > { %2386 = vmatpush3.bf16.msra.mxu1 %v2586_v7 }
 0xa7c   : > { %2387 = vmatprep.subr.bf16.mxu1 %v2979_v0 }
 0xa7f   : > { %2388 = vmatpush3.bf16.msra.mxu1 %v2587_v8 }
 0xa80   : > { %2389 = vmatprep.subr.bf16.mxu1 %v2979_v0 }
 0xa83   : > { %2390 = vmatpush3.bf16.msra.mxu1 %v2588_v9 }
 0xa84   : > { %2391 = vmatprep.subr.bf16.mxu1 %v2979_v0 }
 0xa87   : > { %2392 = vmatpush3.bf16.msra.mxu1 %v2589_v19 }
 0xa88   : > { %2393 = vmatprep.subr.bf16.mxu1 %v2979_v0  ;;  %v2163_v0 = vld [vmem:[%s3707_s29] ss:$0 sm:$0xff] }
 0xa8b   : > { %2394 = vmatpush3.bf16.msra.mxu1 %v2590_v20 }
 0xb2e   : > { %v1668_v11 = vpop.f32.mrf.mxu1 }
 0xb2f   : > { %v1669_v13 = vadd.f32 %v2145_v10, %v1668_v11 }
 0xb30   : > { %v2357_v14 = vpop.f32.mrf.mxu1 }
 0xb31   : > { %v1674_v15 = vmax.f32 %v1669_v13, 0.0 }
 0xb32   : > { %v1671_v16 = vpop.f32.mrf.mxu1 }
 0xb33   : > { %v1675_v17 = vpack.c.bf16 %v1674_v15, %v1674_v15 }
 0xb34   : > { %v2358_v18 = vpop.f32.mrf.mxu1 }
 0xb35   : > { %2376 = vmatmul.mubr.bf16.vlgmr.msra.gmra.mxu0 %v1675_v17 }
 0xbf5   : > { %v1781_v22 = vpop.f32.mrf.mxu0 }
 0xbf6   : > { %v1782_v23 = vadd.f32 %v2154_v21, %v1781_v22 }
 0xbf7   : > { %v2377_v24 = vpop.f32.mrf.mxu0 }
 0xbf8   : > { %v1787_v25 = vadd.f32 %v1782_v23, %v3519_v34 }
 0xbf9   : > { %v1784_v26 = vpop.f32.mrf.mxu0 }
 0xbfa   : > { %v1788_v27 = vpack.c.bf16 %v1787_v25, %v1787_v25 }
 0xbfb   : > { %v2378_v28 = vpop.f32.mrf.mxu0 }
 0xbfc   : > { %2396 = vmatmul.mubr.bf16.vlgmr.msra.gmra.mxu1 %v1788_v27 }
 0xcbc   : > { %v1894_v29 = vpop.f32.mrf.mxu1 }
 0xcbd   : > { %v1895_v30 = vadd.f32 %v2163_v0, %v1894_v29 }
 0xcbe   : > { %v2397_v31 = vpop.f32.mrf.mxu1 }
 0xcbf   : > { %2611 = vtanh.f32 %v1895_v30 }
 0xcc0   : > { %v1897_v32 = vpop.f32.mrf.mxu1 }
 0xcc2   : > { %v2398_v33 = vpop.f32.mrf.mxu1 }
 0xccc   : > { %v2612_v34 = vpop.eup %2611 }
 0xccd   : > { %1901 = vst [vmem:[%s730_s8] sm:$0xff] %v2612_v34 }
 0xcce   : > { %2890 = shalt.err (!%p2887_p8)
}
 0xccf   : > { %s2891_s25 = scalar_lea.hbm %s3590_s24, 128  ;;  %s2895_s18 = scalar_lea.hbm %s3708_s22, 256 }
 0xcd0   : > { %p2892_p9 = scmp.ne.s32.totalorder %s3590_s24, %s2891_s25  ;;  %p2896_p7 = scmp.lt.s32.totalorder %s3590_s24, %s3708_s22 }
 0xcd1   : > { %p2897_p13 = scmp.lt.s32.totalorder %s2895_s18, %s2891_s25 }
 0xcd2   : > { %p2893_p4 = pnand %p2892_p9, %p3709_p10 }
 0xcd3   : > { %p2898_p5 = por %p2897_p13, %p2896_p7 }
 0xcd4   : > { %p2894_p1 = pneg %p2893_p4 }
 0xcd6   : > { %p2899_p6 = pnand %p2898_p5, %p2894_p1 }
 0xcd8   : > { %2902 = shalt.err (!%p2899_p6)
}
 0xcd9   : > { %2435 = dma.vmem_to_hbm [thread:$0]  (%p3709_p10), %s1917_s20, 128, %s3590_s24, %s1903_s5  }
 0xcda PF: > { %s1928_s17 = sand.u32 1, %s2953_s27   ;;  %p3710_p11 = scmp.ne.s32.totalorder %s3689_s21, 0 }
 0xcdb   : > { %p3711_p0 = scmp.ge.s32.totalorder %s2965_s30, 2  ;;  %s1929_s8 = scalar_lea.sflag [#allocation5], %s1928_s17 }
 0xcdd   : > { %p2470_p3 = pnand %p3711_p0, %p3710_p11 }
 0xcdf   : > { %p2471_p12 = pneg %p2470_p3 }
 0xce1   : > { %2948 = dma.done.wait (%p2471_p12), %s1929_s8, 128  }
 0xce2   : > { %2950 = vsyncadd (%p2471_p12), %s1929_s8, 4294967168  ;;  %s3712_s30 = sld [smem:[#allocation30_spill]]  ;;  %s3715_s27 = smov %s2957_s28 }
 0xce3   : > { %s3713_s3 = sld [smem:[#allocation29_spill]] }
 0xce4   : > { %s3714_s29 = sld [smem:[#allocation31_spill]] }
 0xce8   : > { %p38_p2 = scmp.ge.s32.totalorder %s3712_s30, 4  }
 0xce9   : > { %s3716_s28 = smov %s3713_s3 }
 0xcea   :  { %40 = sbr.rel (!%p38_p2) target bundleno = 25 (0x19), region = 182 }
 0xcef   :  { %1934 = vsyncpa [#allocation4], 1 }
 0xcf0   :  { %1936 = vsyncpa [#allocation4 + $0x1], 1 }
 0xcf1   :  { %1937 = vsyncpa [#allocation7], 1 }
 0xcf2   :  { %1939 = vsyncpa [#allocation7 + $0x1], 1 }
 0xcf3   :  { %1940 = vsyncpa [#allocation10], 1 }
 0xcf4   :  { %1941 = vsyncpa [#allocation13], 1 }
 0xcf5   :  { %1942 = vsyncpa [#allocation16], 1 }
 0xcf6   :  { %1943 = vsyncpa [#allocation19], 1 }
 0xcf7   :  { %1944 = vsyncpa [#allocation5], 1 }
 0xcf8   :  { %1946 = vsyncpa [#allocation5 + $0x1], 1 }

</bundles_post_ra>
